<compile_context>
chip_gen: v7x
topology: tpu7x:2x2x1
jax: 0.10.0
libtpu: 0.0.40
codegen_flags: <defaults>
</compile_context>

<pallas_src>
import functools

import jax
import jax.numpy as jnp
from jax.experimental import pallas as pl
from jax.experimental.pallas import tpu as pltpu


_VMEM = pl.BlockSpec(memory_space=pltpu.MemorySpace.VMEM)
_VMEM_LIMIT = 32 * 1024 * 1024  # above the 16 MiB v5e scoped default, safe on v6e/v7x


def _round_up(x, m):
    return ((x + m - 1) // m) * m


def _fold_bn(bn, eps=1e-5):
    """Eval-mode BatchNorm -> per-channel (scale, shift) in f32."""
    gamma, beta, mean, var = bn
    scale = gamma / jnp.sqrt(var + eps)
    shift = beta - mean * scale
    return scale.astype(jnp.float32), shift.astype(jnp.float32)


# ----------------------------- Pallas kernels --------------------------------

def _fused_matmul_kernel(x_ref, w_ref, b_ref, isc_ref, ish_ref, osc_ref, osh_ref,
                         o_ref, acc_ref, *, pre_act, post_act):
    """o = epilogue(prologue(x) @ w + b); prologue/epilogue = relu(z*scale+shift).

    bf16 MXU inputs, f32 VMEM accumulator across the K ('arbitrary') grid axis.
    """
    kidx = pl.program_id(2)

    @pl.when(kidx == 0)
    def _():
        acc_ref[...] = jnp.zeros_like(acc_ref)

    x = x_ref[...]
    if pre_act:
        # fused eval-mode BN + ReLU on the input tile (f32 elementwise math,
        # valid on v5e), then back to bf16 for the MXU.
        x = jnp.maximum(x.astype(jnp.float32) * isc_ref[...] + ish_ref[...], 0.0)
        x = x.astype(jnp.bfloat16)
    acc_ref[...] += jnp.dot(x, w_ref[...], preferred_element_type=jnp.float32)

    @pl.when(kidx == pl.num_programs(2) - 1)
    def _():
        y = acc_ref[...] + b_ref[...]
        if post_act:
            y = jnp.maximum(y * osc_ref[...] + osh_ref[...], 0.0)
        o_ref[...] = y.astype(o_ref.dtype)


def _tap_max_kernel(x_ref, o_ref):
    """Running max over the window-tap grid axis (output block is resident)."""
    t = pl.program_id(1)
    v = x_ref[0].astype(jnp.float32)

    @pl.when(t == 0)
    def _():
        o_ref[...] = v.astype(o_ref.dtype)

    @pl.when(t != 0)
    def _():
        o_ref[...] = jnp.maximum(o_ref[...].astype(jnp.float32), v).astype(o_ref.dtype)


def _tap_mean_kernel(x_ref, o_ref, acc_ref, *, inv_k):
    """Running (scaled) sum over the window-tap grid axis, f32 accumulator."""
    t = pl.program_id(1)

    @pl.when(t == 0)
    def _():
        acc_ref[...] = jnp.zeros_like(acc_ref)

    acc_ref[...] += x_ref[0].astype(jnp.float32) * inv_k

    @pl.when(t == pl.num_programs(1) - 1)
    def _():
        o_ref[...] = acc_ref[...].astype(o_ref.dtype)


def _gap_bn_relu_kernel(x_ref, sc_ref, sh_ref, o_ref):
    """Fused post-BN + ReLU + global average pool.  H*W sits on the sublane axis."""
    x = x_ref[...].astype(jnp.float32)                       # (N, HW, C)
    y = jnp.maximum(x * sc_ref[...] + sh_ref[...], 0.0)
    o_ref[...] = jnp.mean(y, axis=1).astype(o_ref.dtype)     # (N, C)


# ----------------------------- kernel wrappers --------------------------------

def fused_matmul(x, w, b, in_scale=None, in_shift=None,
                 out_scale=None, out_shift=None, out_dtype=jnp.bfloat16,
                 tm_max=256, tn_max=256, tk_max=512):
    """Tiled [M,K]@[K,N]+b with optional fused BN/ReLU prologue / epilogue.

    Inputs are cast to bf16 (halves HBM traffic, MXU-friendly), accumulation is
    f32.  Operands are padded to lane-dense (128-multiple) tiles; padding is
    sliced off afterwards.  Tile sizes are capped so double-buffered working
    sets stay far below the 64 MiB v7x VMEM.
    """
    m, k = x.shape
    k2, n = w.shape
    assert k == k2
    pre_act = in_scale is not None
    post_act = out_scale is not None

    tm = min(tm_max, _round_up(m, 16))     # bf16 sublane packing: multiples of 16
    tn = min(tn_max, _round_up(n, 128))    # lane-dense output stores
    tk = min(tk_max, _round_up(k, 128))
    mp, np_, kp = _round_up(m, tm), _round_up(n, tn), _round_up(k, tk)

    xp = jnp.pad(x.astype(jnp.bfloat16), ((0, mp - m), (0, kp - k)))
    wp = jnp.pad(w.astype(jnp.bfloat16), ((0, kp - k), (0, np_ - n)))
    bp = jnp.pad(b.reshape(1, n).astype(jnp.float32), ((0, 0), (0, np_ - n)))

    def _vec(v, size, pad_to):
        if v is None:
            return jnp.zeros((1, pad_to), jnp.float32)
        return jnp.pad(v.reshape(1, size).astype(jnp.float32),
                       ((0, 0), (0, pad_to - size)))

    iscp = _vec(in_scale, k, kp)
    ishp = _vec(in_shift, k, kp)
    oscp = _vec(out_scale, n, np_)
    oshp = _vec(out_shift, n, np_)

    grid = (mp // tm, np_ // tn, kp // tk)
    kernel = functools.partial(_fused_matmul_kernel,
                               pre_act=pre_act, post_act=post_act)
    cost = pl.CostEstimate(
        flops=int(2 * mp * np_ * kp),
        transcendentals=0,
        bytes_accessed=int(mp * kp * 2 + kp * np_ * 2
                           + mp * np_ * jnp.dtype(out_dtype).itemsize))

    out = pl.pallas_call(
        kernel,
        out_shape=jax.ShapeDtypeStruct((mp, np_), out_dtype),
        grid_spec=pltpu.PrefetchScalarGridSpec(
            num_scalar_prefetch=0,
            grid=grid,
            in_specs=[
                pl.BlockSpec((tm, tk), lambda i, j, kk: (i, kk)),
                pl.BlockSpec((tk, tn), lambda i, j, kk: (kk, j)),
                pl.BlockSpec((1, tn), lambda i, j, kk: (0, j)),
                pl.BlockSpec((1, tk), lambda i, j, kk: (0, kk)),
                pl.BlockSpec((1, tk), lambda i, j, kk: (0, kk)),
                pl.BlockSpec((1, tn), lambda i, j, kk: (0, j)),
                pl.BlockSpec((1, tn), lambda i, j, kk: (0, j)),
            ],
            out_specs=pl.BlockSpec((tm, tn), lambda i, j, kk: (i, j)),
            scratch_shapes=[pltpu.VMEM((tm, tn), jnp.float32)],
        ),
        compiler_params=pltpu.CompilerParams(
            dimension_semantics=("parallel", "parallel", "arbitrary"),
            vmem_limit_bytes=_VMEM_LIMIT),
        cost_estimate=cost,
    )(xp, wp, bp, iscp, ishp, oscp, oshp)
    return out[:m, :n]


def _im2col(x, kh, kw, stride, pad):
    """im2col patches [N*Ho*Wo, kh*kw*C], column order (dh, dw, c).

    TODO(synk): folding the kh*kw taps directly into the matmul K grid axis
    (avoiding this HBM materialization) needs element-offset index maps /
    manual DMA; kept at the XLA level here.
    """
    n, h, w, c = x.shape
    if pad:
        x = jnp.pad(x, ((0, 0), (pad, pad), (pad, pad), (0, 0)))
    hp, wp = h + 2 * pad, w + 2 * pad
    ho = (hp - kh) // stride + 1
    wo = (wp - kw) // stride + 1
    cols = []
    for dh in range(kh):
        for dw in range(kw):
            sl = jax.lax.slice(
                x,
                (0, dh, dw, 0),
                (n, dh + (ho - 1) * stride + 1, dw + (wo - 1) * stride + 1, c),
                (1, stride, stride, 1),
            )
            cols.append(sl)
    patches = jnp.concatenate(cols, axis=-1)      # [N, Ho, Wo, kh*kw*C]
    return patches.reshape(n * ho * wo, kh * kw * c), (n, ho, wo)


def conv2d(x, w_hwio, b, stride=1, pad=0, pre_bn=None, post_bn=None,
           out_dtype=jnp.bfloat16):
    """Conv as im2col + fused matmul.  pre_bn = BN+ReLU applied to the input
    (only valid for pad=0 convs); post_bn = BN+ReLU applied to the output."""
    kh, kw, cin, cout = w_hwio.shape
    patches, (n, ho, wo) = _im2col(x, kh, kw, stride, pad)

    in_scale = in_shift = None
    if pre_bn is not None:
        assert pad == 0, "fused input BN/ReLU requires an unpadded conv"
        s, sh = _fold_bn(pre_bn)
        in_scale = jnp.tile(s, kh * kw)     # per patch column (c fastest) scale
        in_shift = jnp.tile(sh, kh * kw)

    out_scale = out_shift = None
    if post_bn is not None:
        out_scale, out_shift = _fold_bn(post_bn)

    y = fused_matmul(patches, w_hwio.reshape(kh * kw * cin, cout), b,
                     in_scale, in_shift, out_scale, out_shift, out_dtype)
    return y.reshape(n, ho, wo, cout)


def _window_taps(x, k, stride, pad, pad_value):
    """Extract the k*k strided window taps -> ([k*k, N*Ho*Wo, C], dims).

    TODO(synk): the k*k-way stacking still materializes in HBM at the XLA
    level; the Pallas reduction below only keeps one tap tile resident.
    """
    n, h, w, c = x.shape
    if pad:
        x = jnp.pad(x, ((0, 0), (pad, pad), (pad, pad), (0, 0)),
                    constant_values=pad_value)
    hp, wp = h + 2 * pad, w + 2 * pad
    ho = (hp - k) // stride + 1
    wo = (wp - k) // stride + 1
    taps = []
    for dh in range(k):
        for dw in range(k):
            sl = jax.lax.slice(
                x,
                (0, dh, dw, 0),
                (n, dh + (ho - 1) * stride + 1, dw + (wo - 1) * stride + 1, c),
                (1, stride, stride, 1),
            )
            taps.append(sl.reshape(n * ho * wo, c))
    return jnp.stack(taps, axis=0), (n, ho, wo, c)


def _tap_reduce(taps, op, out_dtype):
    """Tiled running reduction over the tap axis (grid: M 'parallel', tap 'arbitrary')."""
    kk, m, c = taps.shape
    tm = min(1024, _round_up(m, 16))
    mp = _round_up(m, tm)
    if mp != m:
        pad_val = -jnp.inf if op == "max" else 0.0
        taps = jnp.pad(taps, ((0, 0), (0, mp - m), (0, 0)),
                       constant_values=pad_val)

    if op == "max":
        kernel = _tap_max_kernel
        scratch = []
    else:
        kernel = functools.partial(_tap_mean_kernel, inv_k=1.0 / kk)
        scratch = [pltpu.VMEM((tm, c), jnp.float32)]

    y = pl.pallas_call(
        kernel,
        out_shape=jax.ShapeDtypeStruct((mp, c), out_dtype),
        grid_spec=pltpu.PrefetchScalarGridSpec(
            num_scalar_prefetch=0,
            grid=(mp // tm, kk),
            in_specs=[pl.BlockSpec((1, tm, c), lambda i, t: (t, i, 0))],
            out_specs=pl.BlockSpec((tm, c), lambda i, t: (i, 0)),
            scratch_shapes=scratch,
        ),
        compiler_params=pltpu.CompilerParams(
            dimension_semantics=("parallel", "arbitrary"),
            vmem_limit_bytes=_VMEM_LIMIT),
    )(taps)
    return y[:m]


def max_pool(x, k=3, stride=2, pad=1):
    taps, (n, ho, wo, c) = _window_taps(x, k, stride, pad, -jnp.inf)
    y = _tap_reduce(taps, "max", x.dtype)
    return y.reshape(n, ho, wo, c)


def avg_pool2(x):
    taps, (n, ho, wo, c) = _window_taps(x, 2, 2, 0, 0.0)
    y = _tap_reduce(taps, "mean", x.dtype)
    return y.reshape(n, ho, wo, c)


def global_avg_pool_bn_relu(x, bn):
    """relu(bn(x)) followed by adaptive_avg_pool2d((1,1)).view(N, C), fused."""
    n, h, w, c = x.shape
    scale, shift = _fold_bn(bn)
    return pl.pallas_call(
        _gap_bn_relu_kernel,
        out_shape=jax.ShapeDtypeStruct((n, c), jnp.float32),
        in_specs=[_VMEM, _VMEM, _VMEM],
        out_specs=_VMEM,
        compiler_params=pltpu.CompilerParams(vmem_limit_bytes=_VMEM_LIMIT),
    )(x.reshape(n, h * w, c), scale.reshape(1, 1, c), shift.reshape(1, 1, c))


# ----------------------------- parameters ------------------------------------

def _conv_init(key, kh, kw, cin, cout):
    kw_, kb_ = jax.random.split(key)
    fan_in = kh * kw * cin
    w = jax.random.normal(kw_, (kh, kw, cin, cout), jnp.float32) / jnp.sqrt(fan_in)
    b = 0.01 * jax.random.normal(kb_, (cout,), jnp.float32)
    return {"w": w, "b": b}


def _bn_init(key, c):
    k1, k2, k3 = jax.random.split(key, 3)
    gamma = 1.0 + 0.1 * jax.random.normal(k1, (c,), jnp.float32)
    beta = 0.1 * jax.random.normal(k2, (c,), jnp.float32)
    mean = 0.1 * jax.random.normal(k3, (c,), jnp.float32)
    var = jnp.ones((c,), jnp.float32)
    return (gamma, beta, mean, var)


def init_densenet_params(key, in_features, growth, num_classes,
                         block_config, bn_size):
    keys = iter(jax.random.split(key, 256))
    nk = lambda: next(keys)
    params = {}

    stem_out = 2 * growth
    params["stem_conv"] = _conv_init(nk(), 7, 7, in_features, stem_out)
    params["stem_bn"] = _bn_init(nk(), stem_out)

    blocks = []
    for index, depth in enumerate(block_config):
        in_f = stem_out + sum(block_config[:index]) * growth
        layers = []
        for l in range(depth):
            layer_in = in_f + l * growth
            inter = growth * bn_size          # bottleneck width
            layers.append({
                "bn1": _bn_init(nk(), layer_in),
                "conv1": _conv_init(nk(), 1, 1, layer_in, inter),
                "bn2": _bn_init(nk(), inter),
                "conv2": _conv_init(nk(), 3, 3, inter, growth),
            })
        block = {"layers": layers}
        out_f = in_f + depth * growth
        if index != len(block_config) - 1:
            # spec's transition: Conv1x1(out_f -> out_f) then AvgPool2d(2)
            block["transition_conv"] = _conv_init(nk(), 1, 1, out_f, out_f)
        blocks.append(block)
    params["blocks"] = blocks

    final_c = stem_out + sum(block_config) * growth
    params["post_bn"] = _bn_init(nk(), final_c)
    kw_, kb_ = jax.random.split(nk())
    params["fc_w"] = jax.random.normal(kw_, (final_c, num_classes),
                                       jnp.float32) / jnp.sqrt(final_c)
    params["fc_b"] = 0.01 * jax.random.normal(kb_, (num_classes,), jnp.float32)
    return params


# ----------------------------- forward ---------------------------------------

def densenet_forward(params, x_nchw):
    # PyTorch NCHW -> NHWC; activations kept in bf16 (f32 accumulate in-kernel).
    x = jnp.transpose(x_nchw, (0, 2, 3, 1)).astype(jnp.bfloat16)

    # pre_dense_blocks: Conv7x7/s2/p3 -> BN -> ReLU (fused epilogue) -> MaxPool3x3/s2/p1
    x = conv2d(x, params["stem_conv"]["w"], params["stem_conv"]["b"],
               stride=2, pad=3, post_bn=params["stem_bn"])
    x = max_pool(x, 3, 2, 1)

    # dense blocks (+ transition layers between blocks)
    for block in params["blocks"]:
        layers = block["layers"]
        n_, h_, w_, c_in = x.shape
        growth = layers[0]["conv2"]["w"].shape[-1]
        c_total = c_in + len(layers) * growth

        # pre-allocated full-width feature buffer (replaces rolling concat)
        buf = jnp.zeros((n_, h_, w_, c_total), jnp.bfloat16)
        buf = buf.at[..., :c_in].set(x)
        cur = c_in
        for layer in layers:
            feat = jax.lax.slice(buf, (0, 0, 0, 0), (n_, h_, w_, cur))
            # 1x1 bottleneck: BN1+ReLU fused as input prologue,
            #                 BN2+ReLU fused as output epilogue.
            t = conv2d(feat, layer["conv1"]["w"], layer["conv1"]["b"],
                       stride=1, pad=0, pre_bn=layer["bn1"], post_bn=layer["bn2"])
            # 3x3 conv, pad=1 (input already activated -> zero padding is exact).
            t = conv2d(t, layer["conv2"]["w"], layer["conv2"]["b"],
                       stride=1, pad=1)
            # TODO(synk): F.dropout(p=drop_rate) is stochastic in training;
            # inference semantics (identity) are used here.
            buf = buf.at[..., cur:cur + growth].set(t)
            cur += growth
        x = buf
        if "transition_conv" in block:
            x = conv2d(x, block["transition_conv"]["w"],
                       block["transition_conv"]["b"], stride=1, pad=0)
            x = avg_pool2(x)

    # post_dense_blocks: BatchNorm, then F.relu, then global avg pool (fused)
    y = global_avg_pool_bn_relu(x, params["post_bn"])          # [N, C] f32
    y = fused_matmul(y, params["fc_w"], params["fc_b"], out_dtype=jnp.float32)
    return y                                                    # [N, num_classes]


# ----------------------------- main -------------------------------------------

if __name__ == "__main__":
    key = jax.random.PRNGKey(0)
    pkey, xkey = jax.random.split(key)

    in_features, growth, num_classes = 3, 4, 10
    block_config, bn_size = (2, 2), 4

    params = init_densenet_params(pkey, in_features, growth, num_classes,
                                  block_config, bn_size)

    # PyTorch-style NCHW input.
    x = jax.random.normal(xkey, (2, in_features, 32, 32), jnp.float32)

    fwd = jax.jit(functools.partial(densenet_forward, params))
    out = fwd(x)
    out = jax.block_until_ready(out)
    assert out.shape == (2, num_classes), out.shape
    assert bool(jnp.all(jnp.isfinite(out)))
    print("KERNEL_OK")
</pallas_src>

<mosaic_0001>
module attributes {stable_mosaic.version = 11 : i64} {
  func.func @_fused_matmul_kernel(%arg0: i32, %arg1: i32, %arg2: i32, %arg3: memref<256x256xbf16, #tpu.memory_space<vmem>>, %arg4: memref<256x128xbf16, #tpu.memory_space<vmem>>, %arg5: memref<1x128xf32, #tpu.memory_space<vmem>>, %arg6: memref<1x256xf32, #tpu.memory_space<vmem>>, %arg7: memref<1x256xf32, #tpu.memory_space<vmem>>, %arg8: memref<1x128xf32, #tpu.memory_space<vmem>>, %arg9: memref<1x128xf32, #tpu.memory_space<vmem>>, %arg10: memref<256x128xbf16, #tpu.memory_space<vmem>>, %arg11: memref<256x128xf32, #tpu.memory_space<vmem>>) attributes {dimension_semantics = [#tpu.dimension_semantics<parallel>, #tpu.dimension_semantics<parallel>, #tpu.dimension_semantics<arbitrary>], iteration_bounds = array<i64: 2, 1, 1>, scalar_prefetch = 0 : i64, scratch_operands = 1 : i64, tpu.core_type = #tpu.core_type<tc>, window_params = [{transform_indices = @transform_0, window_bounds = array<i64: 256, 256>}, {transform_indices = @transform_1, window_bounds = array<i64: 256, 128>}, {transform_indices = @transform_2, window_bounds = array<i64: 1, 128>}, {transform_indices = @transform_3, window_bounds = array<i64: 1, 256>}, {transform_indices = @transform_4, window_bounds = array<i64: 1, 256>}, {transform_indices = @transform_5, window_bounds = array<i64: 1, 128>}, {transform_indices = @transform_6, window_bounds = array<i64: 1, 128>}, {transform_indices = @transform_7, window_bounds = array<i64: 256, 128>}]} {
    %c0_i32 = arith.constant 0 : i32
    %0 = arith.cmpi eq, %arg2, %c0_i32 : i32
    %1 = arith.extui %0 : i1 to i32
    %c0_i32_0 = arith.constant 0 : i32
    %2 = arith.cmpi ne, %1, %c0_i32_0 : i32
    scf.if %2 {
      %cst_10 = arith.constant 0.000000e+00 : f32
      %12 = vector.broadcast %cst_10 : f32 to vector<256x128xf32>
      %c0_11 = arith.constant 0 : index
      %c0_12 = arith.constant 0 : index
      %13 = vector.load %arg11[%c0_11, %c0_12] : memref<256x128xf32, #tpu.memory_space<vmem>>, vector<256x128xf32>
      tpu.vector_store %arg11[%c0_11, %c0_12], %12 {strides = array<i32>} : memref<256x128xf32, #tpu.memory_space<vmem>>, vector<256x128xf32>,
    } else {
    }
    %c0 = arith.constant 0 : index
    %c0_1 = arith.constant 0 : index
    %3 = vector.load %arg3[%c0, %c0_1] : memref<256x256xbf16, #tpu.memory_space<vmem>>, vector<256x256xbf16>
    %c0_2 = arith.constant 0 : index
    %c0_3 = arith.constant 0 : index
    %4 = vector.load %arg11[%c0_2, %c0_3] : memref<256x128xf32, #tpu.memory_space<vmem>>, vector<256x128xf32>
    %c0_4 = arith.constant 0 : index
    %c0_5 = arith.constant 0 : index
    %5 = vector.load %arg4[%c0_4, %c0_5] : memref<256x128xbf16, #tpu.memory_space<vmem>>, vector<256x128xbf16>
    %cst = arith.constant dense<0.000000e+00> : vector<256x128xf32>
    %6 = tpu.matmul %3, %5, %cst {dimension_numbers = #tpu.dot_dimension_numbers<[1], [0], [0], [1], [0, 0, 1, 1], [], []>} : vector<256x256xbf16>, vector<256x128xbf16>, vector<256x128xf32> -> vector<256x128xf32>
    %7 = arith.addf %4, %6 : vector<256x128xf32>
    %c0_6 = arith.constant 0 : index
    %c0_7 = arith.constant 0 : index
    %8 = vector.load %arg11[%c0_6, %c0_7] : memref<256x128xf32, #tpu.memory_space<vmem>>, vector<256x128xf32>
    tpu.vector_store %arg11[%c0_6, %c0_7], %7 {strides = array<i32>} : memref<256x128xf32, #tpu.memory_space<vmem>>, vector<256x128xf32>,
    %c0_i32_8 = arith.constant 0 : i32
    %9 = arith.cmpi eq, %arg2, %c0_i32_8 : i32
    %10 = arith.extui %9 : i1 to i32
    %c0_i32_9 = arith.constant 0 : i32
    %11 = arith.cmpi ne, %10, %c0_i32_9 : i32
    scf.if %11 {
      %c0_10 = arith.constant 0 : index
      %c0_11 = arith.constant 0 : index
      %12 = vector.load %arg11[%c0_10, %c0_11] : memref<256x128xf32, #tpu.memory_space<vmem>>, vector<256x128xf32>
      %c0_12 = arith.constant 0 : index
      %c0_13 = arith.constant 0 : index
      %13 = vector.load %arg5[%c0_12, %c0_13] : memref<1x128xf32, #tpu.memory_space<vmem>>, vector<1x128xf32>
      %14 = vector.broadcast %13 : vector<1x128xf32> to vector<256x128xf32>
      %15 = arith.addf %12, %14 : vector<256x128xf32>
      %c0_14 = arith.constant 0 : index
      %c0_15 = arith.constant 0 : index
      %16 = vector.load %arg8[%c0_14, %c0_15] : memref<1x128xf32, #tpu.memory_space<vmem>>, vector<1x128xf32>
      %17 = vector.broadcast %16 : vector<1x128xf32> to vector<256x128xf32>
      %18 = arith.mulf %15, %17 : vector<256x128xf32>
      %c0_16 = arith.constant 0 : index
      %c0_17 = arith.constant 0 : index
      %19 = vector.load %arg9[%c0_16, %c0_17] : memref<1x128xf32, #tpu.memory_space<vmem>>, vector<1x128xf32>
      %20 = vector.broadcast %19 : vector<1x128xf32> to vector<256x128xf32>
      %21 = arith.addf %18, %20 : vector<256x128xf32>
      %cst_18 = arith.constant 0.000000e+00 : f32
      %22 = vector.broadcast %cst_18 : f32 to vector<256x128xf32>
      %23 = arith.maximumf %21, %22 : vector<256x128xf32>
      %24 = arith.truncf %23 : vector<256x128xf32> to vector<256x128xbf16>
      %c0_19 = arith.constant 0 : index
      %c0_20 = arith.constant 0 : index
      %25 = vector.load %arg10[%c0_19, %c0_20] : memref<256x128xbf16, #tpu.memory_space<vmem>>, vector<256x128xbf16>
      tpu.vector_store %arg10[%c0_19, %c0_20], %24 {strides = array<i32>} : memref<256x128xbf16, #tpu.memory_space<vmem>>, vector<256x128xbf16>,
    } else {
    }
    return
  }
  func.func @transform_0(%arg0: i32, %arg1: i32, %arg2: i32) -> (i32, i32) {
    %c0_i32 = arith.constant 0 : i32
    return %arg0, %arg2 : i32, i32
  }
  func.func @transform_1(%arg0: i32, %arg1: i32, %arg2: i32) -> (i32, i32) {
    %c0_i32 = arith.constant 0 : i32
    return %arg2, %arg1 : i32, i32
  }
  func.func @transform_2(%arg0: i32, %arg1: i32, %arg2: i32) -> (i32, i32) {
    %c0_i32 = arith.constant 0 : i32
    %c0_i32_0 = arith.constant 0 : i32
    return %c0_i32, %arg1 : i32, i32
  }
  func.func @transform_3(%arg0: i32, %arg1: i32, %arg2: i32) -> (i32, i32) {
    %c0_i32 = arith.constant 0 : i32
    %c0_i32_0 = arith.constant 0 : i32
    return %c0_i32, %arg2 : i32, i32
  }
  func.func @transform_4(%arg0: i32, %arg1: i32, %arg2: i32) -> (i32, i32) {
    %c0_i32 = arith.constant 0 : i32
    %c0_i32_0 = arith.constant 0 : i32
    return %c0_i32, %arg2 : i32, i32
  }
  func.func @transform_5(%arg0: i32, %arg1: i32, %arg2: i32) -> (i32, i32) {
    %c0_i32 = arith.constant 0 : i32
    %c0_i32_0 = arith.constant 0 : i32
    return %c0_i32, %arg1 : i32, i32
  }
  func.func @transform_6(%arg0: i32, %arg1: i32, %arg2: i32) -> (i32, i32) {
    %c0_i32 = arith.constant 0 : i32
    %c0_i32_0 = arith.constant 0 : i32
    return %c0_i32, %arg1 : i32, i32
  }
  func.func @transform_7(%arg0: i32, %arg1: i32, %arg2: i32) -> (i32, i32) {
    %c0_i32 = arith.constant 0 : i32
    return %arg0, %arg1 : i32, i32
  }
}

module attributes {stable_mosaic.version = 11 : i64} {
  func.func @_tap_max_kernel(%arg0: i32, %arg1: i32, %arg2: memref<1x128x8xbf16, #tpu.memory_space<vmem>>, %arg3: memref<128x8xbf16, #tpu.memory_space<vmem>>) attributes {dimension_semantics = [#tpu.dimension_semantics<parallel>, #tpu.dimension_semantics<arbitrary>], iteration_bounds = array<i64: 1, 9>, scalar_prefetch = 0 : i64, scratch_operands = 0 : i64, tpu.core_type = #tpu.core_type<tc>, window_params = [{transform_indices = @transform_0, window_bounds = array<i64: 1, 128, 8>}, {transform_indices = @transform_1, window_bounds = array<i64: 128, 8>}]} {
    %c0 = arith.constant 0 : index
    %c0_0 = arith.constant 0 : index
    %c0_1 = arith.constant 0 : index
    %0 = vector.load %arg2[%c0, %c0_0, %c0_1] : memref<1x128x8xbf16, #tpu.memory_space<vmem>>, vector<1x128x8xbf16>
    %1 = vector.shape_cast %0 : vector<1x128x8xbf16> to vector<128x8xbf16>
    %2 = arith.extf %1 : vector<128x8xbf16> to vector<128x8xf32>
    %c0_i32 = arith.constant 0 : i32
    %3 = arith.cmpi eq, %arg1, %c0_i32 : i32
    %4 = arith.extui %3 : i1 to i32
    %c0_i32_2 = arith.constant 0 : i32
    %5 = arith.cmpi ne, %4, %c0_i32_2 : i32
    scf.if %5 {
      %9 = arith.truncf %2 : vector<128x8xf32> to vector<128x8xbf16>
      %c0_5 = arith.constant 0 : index
      %c0_6 = arith.constant 0 : index
      %10 = vector.load %arg3[%c0_5, %c0_6] : memref<128x8xbf16, #tpu.memory_space<vmem>>, vector<128x8xbf16>
      tpu.vector_store %arg3[%c0_5, %c0_6], %9 {strides = array<i32>} : memref<128x8xbf16, #tpu.memory_space<vmem>>, vector<128x8xbf16>,
    } else {
    }
    %c0_i32_3 = arith.constant 0 : i32
    %6 = arith.cmpi ne, %arg1, %c0_i32_3 : i32
    %7 = arith.extui %6 : i1 to i32
    %c0_i32_4 = arith.constant 0 : i32
    %8 = arith.cmpi ne, %7, %c0_i32_4 : i32
    scf.if %8 {
      %c0_5 = arith.constant 0 : index
      %c0_6 = arith.constant 0 : index
      %9 = vector.load %arg3[%c0_5, %c0_6] : memref<128x8xbf16, #tpu.memory_space<vmem>>, vector<128x8xbf16>
      %10 = arith.extf %9 : vector<128x8xbf16> to vector<128x8xf32>
      %11 = arith.maximumf %10, %2 : vector<128x8xf32>
      %12 = arith.truncf %11 : vector<128x8xf32> to vector<128x8xbf16>
      %c0_7 = arith.constant 0 : index
      %c0_8 = arith.constant 0 : index
      %13 = vector.load %arg3[%c0_7, %c0_8] : memref<128x8xbf16, #tpu.memory_space<vmem>>, vector<128x8xbf16>
      tpu.vector_store %arg3[%c0_7, %c0_8], %12 {strides = array<i32>} : memref<128x8xbf16, #tpu.memory_space<vmem>>, vector<128x8xbf16>,
    } else {
    }
    return
  }
  func.func @transform_0(%arg0: i32, %arg1: i32) -> (i32, i32, i32) {
    %c0_i32 = arith.constant 0 : i32
    %c0_i32_0 = arith.constant 0 : i32
    return %arg1, %arg0, %c0_i32 : i32, i32, i32
  }
  func.func @transform_1(%arg0: i32, %arg1: i32) -> (i32, i32) {
    %c0_i32 = arith.constant 0 : i32
    %c0_i32_0 = arith.constant 0 : i32
    return %arg0, %c0_i32 : i32, i32
  }
}

module attributes {stable_mosaic.version = 11 : i64} {
  func.func @_fused_matmul_kernel(%arg0: i32, %arg1: i32, %arg2: i32, %arg3: memref<128x128xbf16, #tpu.memory_space<vmem>>, %arg4: memref<128x128xbf16, #tpu.memory_space<vmem>>, %arg5: memref<1x128xf32, #tpu.memory_space<vmem>>, %arg6: memref<1x128xf32, #tpu.memory_space<vmem>>, %arg7: memref<1x128xf32, #tpu.memory_space<vmem>>, %arg8: memref<1x128xf32, #tpu.memory_space<vmem>>, %arg9: memref<1x128xf32, #tpu.memory_space<vmem>>, %arg10: memref<128x128xbf16, #tpu.memory_space<vmem>>, %arg11: memref<128x128xf32, #tpu.memory_space<vmem>>) attributes {dimension_semantics = [#tpu.dimension_semantics<parallel>, #tpu.dimension_semantics<parallel>, #tpu.dimension_semantics<arbitrary>], iteration_bounds = array<i64: 1, 1, 1>, scalar_prefetch = 0 : i64, scratch_operands = 1 : i64, tpu.core_type = #tpu.core_type<tc>, window_params = [{transform_indices = @transform_0, window_bounds = array<i64: 128, 128>}, {transform_indices = @transform_1, window_bounds = array<i64: 128, 128>}, {transform_indices = @transform_2, window_bounds = array<i64: 1, 128>}, {transform_indices = @transform_3, window_bounds = array<i64: 1, 128>}, {transform_indices = @transform_4, window_bounds = array<i64: 1, 128>}, {transform_indices = @transform_5, window_bounds = array<i64: 1, 128>}, {transform_indices = @transform_6, window_bounds = array<i64: 1, 128>}, {transform_indices = @transform_7, window_bounds = array<i64: 128, 128>}]} {
    %c0_i32 = arith.constant 0 : i32
    %0 = arith.cmpi eq, %arg2, %c0_i32 : i32
    %1 = arith.extui %0 : i1 to i32
    %c0_i32_0 = arith.constant 0 : i32
    %2 = arith.cmpi ne, %1, %c0_i32_0 : i32
    scf.if %2 {
      %cst_15 = arith.constant 0.000000e+00 : f32
      %22 = vector.broadcast %cst_15 : f32 to vector<128x128xf32>
      %c0_16 = arith.constant 0 : index
      %c0_17 = arith.constant 0 : index
      %23 = vector.load %arg11[%c0_16, %c0_17] : memref<128x128xf32, #tpu.memory_space<vmem>>, vector<128x128xf32>
      tpu.vector_store %arg11[%c0_16, %c0_17], %22 {strides = array<i32>} : memref<128x128xf32, #tpu.memory_space<vmem>>, vector<128x128xf32>,
    } else {
    }
    %c0 = arith.constant 0 : index
    %c0_1 = arith.constant 0 : index
    %3 = vector.load %arg3[%c0, %c0_1] : memref<128x128xbf16, #tpu.memory_space<vmem>>, vector<128x128xbf16>
    %4 = arith.extf %3 : vector<128x128xbf16> to vector<128x128xf32>
    %c0_2 = arith.constant 0 : index
    %c0_3 = arith.constant 0 : index
    %5 = vector.load %arg6[%c0_2, %c0_3] : memref<1x128xf32, #tpu.memory_space<vmem>>, vector<1x128xf32>
    %6 = vector.broadcast %5 : vector<1x128xf32> to vector<128x128xf32>
    %7 = arith.mulf %4, %6 : vector<128x128xf32>
    %c0_4 = arith.constant 0 : index
    %c0_5 = arith.constant 0 : index
    %8 = vector.load %arg7[%c0_4, %c0_5] : memref<1x128xf32, #tpu.memory_space<vmem>>, vector<1x128xf32>
    %9 = vector.broadcast %8 : vector<1x128xf32> to vector<128x128xf32>
    %10 = arith.addf %7, %9 : vector<128x128xf32>
    %cst = arith.constant 0.000000e+00 : f32
    %11 = vector.broadcast %cst : f32 to vector<128x128xf32>
    %12 = arith.maximumf %10, %11 : vector<128x128xf32>
    %13 = arith.truncf %12 : vector<128x128xf32> to vector<128x128xbf16>
    %c0_6 = arith.constant 0 : index
    %c0_7 = arith.constant 0 : index
    %14 = vector.load %arg11[%c0_6, %c0_7] : memref<128x128xf32, #tpu.memory_space<vmem>>, vector<128x128xf32>
    %c0_8 = arith.constant 0 : index
    %c0_9 = arith.constant 0 : index
    %15 = vector.load %arg4[%c0_8, %c0_9] : memref<128x128xbf16, #tpu.memory_space<vmem>>, vector<128x128xbf16>
    %cst_10 = arith.constant dense<0.000000e+00> : vector<128x128xf32>
    %16 = tpu.matmul %13, %15, %cst_10 {dimension_numbers = #tpu.dot_dimension_numbers<[1], [0], [0], [1], [0, 0, 1, 1], [], []>} : vector<128x128xbf16>, vector<128x128xbf16>, vector<128x128xf32> -> vector<128x128xf32>
    %17 = arith.addf %14, %16 : vector<128x128xf32>
    %c0_11 = arith.constant 0 : index
    %c0_12 = arith.constant 0 : index
    %18 = vector.load %arg11[%c0_11, %c0_12] : memref<128x128xf32, #tpu.memory_space<vmem>>, vector<128x128xf32>
    tpu.vector_store %arg11[%c0_11, %c0_12], %17 {strides = array<i32>} : memref<128x128xf32, #tpu.memory_space<vmem>>, vector<128x128xf32>,
    %c0_i32_13 = arith.constant 0 : i32
    %19 = arith.cmpi eq, %arg2, %c0_i32_13 : i32
    %20 = arith.extui %19 : i1 to i32
    %c0_i32_14 = arith.constant 0 : i32
    %21 = arith.cmpi ne, %20, %c0_i32_14 : i32
    scf.if %21 {
      %c0_15 = arith.constant 0 : index
      %c0_16 = arith.constant 0 : index
      %22 = vector.load %arg11[%c0_15, %c0_16] : memref<128x128xf32, #tpu.memory_space<vmem>>, vector<128x128xf32>
      %c0_17 = arith.constant 0 : index
      %c0_18 = arith.constant 0 : index
      %23 = vector.load %arg5[%c0_17, %c0_18] : memref<1x128xf32, #tpu.memory_space<vmem>>, vector<1x128xf32>
      %24 = vector.broadcast %23 : vector<1x128xf32> to vector<128x128xf32>
      %25 = arith.addf %22, %24 : vector<128x128xf32>
      %c0_19 = arith.constant 0 : index
      %c0_20 = arith.constant 0 : index
      %26 = vector.load %arg8[%c0_19, %c0_20] : memref<1x128xf32, #tpu.memory_space<vmem>>, vector<1x128xf32>
      %27 = vector.broadcast %26 : vector<1x128xf32> to vector<128x128xf32>
      %28 = arith.mulf %25, %27 : vector<128x128xf32>
      %c0_21 = arith.constant 0 : index
      %c0_22 = arith.constant 0 : index
      %29 = vector.load %arg9[%c0_21, %c0_22] : memref<1x128xf32, #tpu.memory_space<vmem>>, vector<1x128xf32>
      %30 = vector.broadcast %29 : vector<1x128xf32> to vector<128x128xf32>
      %31 = arith.addf %28, %30 : vector<128x128xf32>
      %cst_23 = arith.constant 0.000000e+00 : f32
      %32 = vector.broadcast %cst_23 : f32 to vector<128x128xf32>
      %33 = arith.maximumf %31, %32 : vector<128x128xf32>
      %34 = arith.truncf %33 : vector<128x128xf32> to vector<128x128xbf16>
      %c0_24 = arith.constant 0 : index
      %c0_25 = arith.constant 0 : index
      %35 = vector.load %arg10[%c0_24, %c0_25] : memref<128x128xbf16, #tpu.memory_space<vmem>>, vector<128x128xbf16>
      tpu.vector_store %arg10[%c0_24, %c0_25], %34 {strides = array<i32>} : memref<128x128xbf16, #tpu.memory_space<vmem>>, vector<128x128xbf16>,
    } else {
    }
    return
  }
  func.func @transform_0(%arg0: i32, %arg1: i32, %arg2: i32) -> (i32, i32) {
    %c0_i32 = arith.constant 0 : i32
    return %arg0, %arg2 : i32, i32
  }
  func.func @transform_1(%arg0: i32, %arg1: i32, %arg2: i32) -> (i32, i32) {
    %c0_i32 = arith.constant 0 : i32
    return %arg2, %arg1 : i32, i32
  }
  func.func @transform_2(%arg0: i32, %arg1: i32, %arg2: i32) -> (i32, i32) {
    %c0_i32 = arith.constant 0 : i32
    %c0_i32_0 = arith.constant 0 : i32
    return %c0_i32, %arg1 : i32, i32
  }
  func.func @transform_3(%arg0: i32, %arg1: i32, %arg2: i32) -> (i32, i32) {
    %c0_i32 = arith.constant 0 : i32
    %c0_i32_0 = arith.constant 0 : i32
    return %c0_i32, %arg2 : i32, i32
  }
  func.func @transform_4(%arg0: i32, %arg1: i32, %arg2: i32) -> (i32, i32) {
    %c0_i32 = arith.constant 0 : i32
    %c0_i32_0 = arith.constant 0 : i32
    return %c0_i32, %arg2 : i32, i32
  }
  func.func @transform_5(%arg0: i32, %arg1: i32, %arg2: i32) -> (i32, i32) {
    %c0_i32 = arith.constant 0 : i32
    %c0_i32_0 = arith.constant 0 : i32
    return %c0_i32, %arg1 : i32, i32
  }
  func.func @transform_6(%arg0: i32, %arg1: i32, %arg2: i32) -> (i32, i32) {
    %c0_i32 = arith.constant 0 : i32
    %c0_i32_0 = arith.constant 0 : i32
    return %c0_i32, %arg1 : i32, i32
  }
  func.func @transform_7(%arg0: i32, %arg1: i32, %arg2: i32) -> (i32, i32) {
    %c0_i32 = arith.constant 0 : i32
    return %arg0, %arg1 : i32, i32
  }
}

module attributes {stable_mosaic.version = 11 : i64} {
  func.func @_fused_matmul_kernel(%arg0: i32, %arg1: i32, %arg2: i32, %arg3: memref<128x256xbf16, #tpu.memory_space<vmem>>, %arg4: memref<256x128xbf16, #tpu.memory_space<vmem>>, %arg5: memref<1x128xf32, #tpu.memory_space<vmem>>, %arg6: memref<1x256xf32, #tpu.memory_space<vmem>>, %arg7: memref<1x256xf32, #tpu.memory_space<vmem>>, %arg8: memref<1x128xf32, #tpu.memory_space<vmem>>, %arg9: memref<1x128xf32, #tpu.memory_space<vmem>>, %arg10: memref<128x128xbf16, #tpu.memory_space<vmem>>, %arg11: memref<128x128xf32, #tpu.memory_space<vmem>>) attributes {dimension_semantics = [#tpu.dimension_semantics<parallel>, #tpu.dimension_semantics<parallel>, #tpu.dimension_semantics<arbitrary>], iteration_bounds = array<i64: 1, 1, 1>, scalar_prefetch = 0 : i64, scratch_operands = 1 : i64, tpu.core_type = #tpu.core_type<tc>, window_params = [{transform_indices = @transform_0, window_bounds = array<i64: 128, 256>}, {transform_indices = @transform_1, window_bounds = array<i64: 256, 128>}, {transform_indices = @transform_2, window_bounds = array<i64: 1, 128>}, {transform_indices = @transform_3, window_bounds = array<i64: 1, 256>}, {transform_indices = @transform_4, window_bounds = array<i64: 1, 256>}, {transform_indices = @transform_5, window_bounds = array<i64: 1, 128>}, {transform_indices = @transform_6, window_bounds = array<i64: 1, 128>}, {transform_indices = @transform_7, window_bounds = array<i64: 128, 128>}]} {
    %c0_i32 = arith.constant 0 : i32
    %0 = arith.cmpi eq, %arg2, %c0_i32 : i32
    %1 = arith.extui %0 : i1 to i32
    %c0_i32_0 = arith.constant 0 : i32
    %2 = arith.cmpi ne, %1, %c0_i32_0 : i32
    scf.if %2 {
      %cst_10 = arith.constant 0.000000e+00 : f32
      %12 = vector.broadcast %cst_10 : f32 to vector<128x128xf32>
      %c0_11 = arith.constant 0 : index
      %c0_12 = arith.constant 0 : index
      %13 = vector.load %arg11[%c0_11, %c0_12] : memref<128x128xf32, #tpu.memory_space<vmem>>, vector<128x128xf32>
      tpu.vector_store %arg11[%c0_11, %c0_12], %12 {strides = array<i32>} : memref<128x128xf32, #tpu.memory_space<vmem>>, vector<128x128xf32>,
    } else {
    }
    %c0 = arith.constant 0 : index
    %c0_1 = arith.constant 0 : index
    %3 = vector.load %arg3[%c0, %c0_1] : memref<128x256xbf16, #tpu.memory_space<vmem>>, vector<128x256xbf16>
    %c0_2 = arith.constant 0 : index
    %c0_3 = arith.constant 0 : index
    %4 = vector.load %arg11[%c0_2, %c0_3] : memref<128x128xf32, #tpu.memory_space<vmem>>, vector<128x128xf32>
    %c0_4 = arith.constant 0 : index
    %c0_5 = arith.constant 0 : index
    %5 = vector.load %arg4[%c0_4, %c0_5] : memref<256x128xbf16, #tpu.memory_space<vmem>>, vector<256x128xbf16>
    %cst = arith.constant dense<0.000000e+00> : vector<128x128xf32>
    %6 = tpu.matmul %3, %5, %cst {dimension_numbers = #tpu.dot_dimension_numbers<[1], [0], [0], [1], [0, 0, 1, 1], [], []>} : vector<128x256xbf16>, vector<256x128xbf16>, vector<128x128xf32> -> vector<128x128xf32>
    %7 = arith.addf %4, %6 : vector<128x128xf32>
    %c0_6 = arith.constant 0 : index
    %c0_7 = arith.constant 0 : index
    %8 = vector.load %arg11[%c0_6, %c0_7] : memref<128x128xf32, #tpu.memory_space<vmem>>, vector<128x128xf32>
    tpu.vector_store %arg11[%c0_6, %c0_7], %7 {strides = array<i32>} : memref<128x128xf32, #tpu.memory_space<vmem>>, vector<128x128xf32>,
    %c0_i32_8 = arith.constant 0 : i32
    %9 = arith.cmpi eq, %arg2, %c0_i32_8 : i32
    %10 = arith.extui %9 : i1 to i32
    %c0_i32_9 = arith.constant 0 : i32
    %11 = arith.cmpi ne, %10, %c0_i32_9 : i32
    scf.if %11 {
      %c0_10 = arith.constant 0 : index
      %c0_11 = arith.constant 0 : index
      %12 = vector.load %arg11[%c0_10, %c0_11] : memref<128x128xf32, #tpu.memory_space<vmem>>, vector<128x128xf32>
      %c0_12 = arith.constant 0 : index
      %c0_13 = arith.constant 0 : index
      %13 = vector.load %arg5[%c0_12, %c0_13] : memref<1x128xf32, #tpu.memory_space<vmem>>, vector<1x128xf32>
      %14 = vector.broadcast %13 : vector<1x128xf32> to vector<128x128xf32>
      %15 = arith.addf %12, %14 : vector<128x128xf32>
      %16 = arith.truncf %15 : vector<128x128xf32> to vector<128x128xbf16>
      %c0_14 = arith.constant 0 : index
      %c0_15 = arith.constant 0 : index
      %17 = vector.load %arg10[%c0_14, %c0_15] : memref<128x128xbf16, #tpu.memory_space<vmem>>, vector<128x128xbf16>
      tpu.vector_store %arg10[%c0_14, %c0_15], %16 {strides = array<i32>} : memref<128x128xbf16, #tpu.memory_space<vmem>>, vector<128x128xbf16>,
    } else {
    }
    return
  }
  func.func @transform_0(%arg0: i32, %arg1: i32, %arg2: i32) -> (i32, i32) {
    %c0_i32 = arith.constant 0 : i32
    return %arg0, %arg2 : i32, i32
  }
  func.func @transform_1(%arg0: i32, %arg1: i32, %arg2: i32) -> (i32, i32) {
    %c0_i32 = arith.constant 0 : i32
    return %arg2, %arg1 : i32, i32
  }
  func.func @transform_2(%arg0: i32, %arg1: i32, %arg2: i32) -> (i32, i32) {
    %c0_i32 = arith.constant 0 : i32
    %c0_i32_0 = arith.constant 0 : i32
    return %c0_i32, %arg1 : i32, i32
  }
  func.func @transform_3(%arg0: i32, %arg1: i32, %arg2: i32) -> (i32, i32) {
    %c0_i32 = arith.constant 0 : i32
    %c0_i32_0 = arith.constant 0 : i32
    return %c0_i32, %arg2 : i32, i32
  }
  func.func @transform_4(%arg0: i32, %arg1: i32, %arg2: i32) -> (i32, i32) {
    %c0_i32 = arith.constant 0 : i32
    %c0_i32_0 = arith.constant 0 : i32
    return %c0_i32, %arg2 : i32, i32
  }
  func.func @transform_5(%arg0: i32, %arg1: i32, %arg2: i32) -> (i32, i32) {
    %c0_i32 = arith.constant 0 : i32
    %c0_i32_0 = arith.constant 0 : i32
    return %c0_i32, %arg1 : i32, i32
  }
  func.func @transform_6(%arg0: i32, %arg1: i32, %arg2: i32) -> (i32, i32) {
    %c0_i32 = arith.constant 0 : i32
    %c0_i32_0 = arith.constant 0 : i32
    return %c0_i32, %arg1 : i32, i32
  }
  func.func @transform_7(%arg0: i32, %arg1: i32, %arg2: i32) -> (i32, i32) {
    %c0_i32 = arith.constant 0 : i32
    return %arg0, %arg1 : i32, i32
  }
}

module attributes {stable_mosaic.version = 11 : i64} {
  func.func @_fused_matmul_kernel(%arg0: i32, %arg1: i32, %arg2: i32, %arg3: memref<128x128xbf16, #tpu.memory_space<vmem>>, %arg4: memref<128x128xbf16, #tpu.memory_space<vmem>>, %arg5: memref<1x128xf32, #tpu.memory_space<vmem>>, %arg6: memref<1x128xf32, #tpu.memory_space<vmem>>, %arg7: memref<1x128xf32, #tpu.memory_space<vmem>>, %arg8: memref<1x128xf32, #tpu.memory_space<vmem>>, %arg9: memref<1x128xf32, #tpu.memory_space<vmem>>, %arg10: memref<128x128xbf16, #tpu.memory_space<vmem>>, %arg11: memref<128x128xf32, #tpu.memory_space<vmem>>) attributes {dimension_semantics = [#tpu.dimension_semantics<parallel>, #tpu.dimension_semantics<parallel>, #tpu.dimension_semantics<arbitrary>], iteration_bounds = array<i64: 1, 1, 1>, scalar_prefetch = 0 : i64, scratch_operands = 1 : i64, tpu.core_type = #tpu.core_type<tc>, window_params = [{transform_indices = @transform_0, window_bounds = array<i64: 128, 128>}, {transform_indices = @transform_1, window_bounds = array<i64: 128, 128>}, {transform_indices = @transform_2, window_bounds = array<i64: 1, 128>}, {transform_indices = @transform_3, window_bounds = array<i64: 1, 128>}, {transform_indices = @transform_4, window_bounds = array<i64: 1, 128>}, {transform_indices = @transform_5, window_bounds = array<i64: 1, 128>}, {transform_indices = @transform_6, window_bounds = array<i64: 1, 128>}, {transform_indices = @transform_7, window_bounds = array<i64: 128, 128>}]} {
    %c0_i32 = arith.constant 0 : i32
    %0 = arith.cmpi eq, %arg2, %c0_i32 : i32
    %1 = arith.extui %0 : i1 to i32
    %c0_i32_0 = arith.constant 0 : i32
    %2 = arith.cmpi ne, %1, %c0_i32_0 : i32
    scf.if %2 {
      %cst_10 = arith.constant 0.000000e+00 : f32
      %12 = vector.broadcast %cst_10 : f32 to vector<128x128xf32>
      %c0_11 = arith.constant 0 : index
      %c0_12 = arith.constant 0 : index
      %13 = vector.load %arg11[%c0_11, %c0_12] : memref<128x128xf32, #tpu.memory_space<vmem>>, vector<128x128xf32>
      tpu.vector_store %arg11[%c0_11, %c0_12], %12 {strides = array<i32>} : memref<128x128xf32, #tpu.memory_space<vmem>>, vector<128x128xf32>,
    } else {
    }
    %c0 = arith.constant 0 : index
    %c0_1 = arith.constant 0 : index
    %3 = vector.load %arg3[%c0, %c0_1] : memref<128x128xbf16, #tpu.memory_space<vmem>>, vector<128x128xbf16>
    %c0_2 = arith.constant 0 : index
    %c0_3 = arith.constant 0 : index
    %4 = vector.load %arg11[%c0_2, %c0_3] : memref<128x128xf32, #tpu.memory_space<vmem>>, vector<128x128xf32>
    %c0_4 = arith.constant 0 : index
    %c0_5 = arith.constant 0 : index
    %5 = vector.load %arg4[%c0_4, %c0_5] : memref<128x128xbf16, #tpu.memory_space<vmem>>, vector<128x128xbf16>
    %cst = arith.constant dense<0.000000e+00> : vector<128x128xf32>
    %6 = tpu.matmul %3, %5, %cst {dimension_numbers = #tpu.dot_dimension_numbers<[1], [0], [0], [1], [0, 0, 1, 1], [], []>} : vector<128x128xbf16>, vector<128x128xbf16>, vector<128x128xf32> -> vector<128x128xf32>
    %7 = arith.addf %4, %6 : vector<128x128xf32>
    %c0_6 = arith.constant 0 : index
    %c0_7 = arith.constant 0 : index
    %8 = vector.load %arg11[%c0_6, %c0_7] : memref<128x128xf32, #tpu.memory_space<vmem>>, vector<128x128xf32>
    tpu.vector_store %arg11[%c0_6, %c0_7], %7 {strides = array<i32>} : memref<128x128xf32, #tpu.memory_space<vmem>>, vector<128x128xf32>,
    %c0_i32_8 = arith.constant 0 : i32
    %9 = arith.cmpi eq, %arg2, %c0_i32_8 : i32
    %10 = arith.extui %9 : i1 to i32
    %c0_i32_9 = arith.constant 0 : i32
    %11 = arith.cmpi ne, %10, %c0_i32_9 : i32
    scf.if %11 {
      %c0_10 = arith.constant 0 : index
      %c0_11 = arith.constant 0 : index
      %12 = vector.load %arg11[%c0_10, %c0_11] : memref<128x128xf32, #tpu.memory_space<vmem>>, vector<128x128xf32>
      %c0_12 = arith.constant 0 : index
      %c0_13 = arith.constant 0 : index
      %13 = vector.load %arg5[%c0_12, %c0_13] : memref<1x128xf32, #tpu.memory_space<vmem>>, vector<1x128xf32>
      %14 = vector.broadcast %13 : vector<1x128xf32> to vector<128x128xf32>
      %15 = arith.addf %12, %14 : vector<128x128xf32>
      %16 = arith.truncf %15 : vector<128x128xf32> to vector<128x128xbf16>
      %c0_14 = arith.constant 0 : index
      %c0_15 = arith.constant 0 : index
      %17 = vector.load %arg10[%c0_14, %c0_15] : memref<128x128xbf16, #tpu.memory_space<vmem>>, vector<128x128xbf16>
      tpu.vector_store %arg10[%c0_14, %c0_15], %16 {strides = array<i32>} : memref<128x128xbf16, #tpu.memory_space<vmem>>, vector<128x128xbf16>,
    } else {
    }
    return
  }
  func.func @transform_0(%arg0: i32, %arg1: i32, %arg2: i32) -> (i32, i32) {
    %c0_i32 = arith.constant 0 : i32
    return %arg0, %arg2 : i32, i32
  }
  func.func @transform_1(%arg0: i32, %arg1: i32, %arg2: i32) -> (i32, i32) {
    %c0_i32 = arith.constant 0 : i32
    return %arg2, %arg1 : i32, i32
  }
  func.func @transform_2(%arg0: i32, %arg1: i32, %arg2: i32) -> (i32, i32) {
    %c0_i32 = arith.constant 0 : i32
    %c0_i32_0 = arith.constant 0 : i32
    return %c0_i32, %arg1 : i32, i32
  }
  func.func @transform_3(%arg0: i32, %arg1: i32, %arg2: i32) -> (i32, i32) {
    %c0_i32 = arith.constant 0 : i32
    %c0_i32_0 = arith.constant 0 : i32
    return %c0_i32, %arg2 : i32, i32
  }
  func.func @transform_4(%arg0: i32, %arg1: i32, %arg2: i32) -> (i32, i32) {
    %c0_i32 = arith.constant 0 : i32
    %c0_i32_0 = arith.constant 0 : i32
    return %c0_i32, %arg2 : i32, i32
  }
  func.func @transform_5(%arg0: i32, %arg1: i32, %arg2: i32) -> (i32, i32) {
    %c0_i32 = arith.constant 0 : i32
    %c0_i32_0 = arith.constant 0 : i32
    return %c0_i32, %arg1 : i32, i32
  }
  func.func @transform_6(%arg0: i32, %arg1: i32, %arg2: i32) -> (i32, i32) {
    %c0_i32 = arith.constant 0 : i32
    %c0_i32_0 = arith.constant 0 : i32
    return %c0_i32, %arg1 : i32, i32
  }
  func.func @transform_7(%arg0: i32, %arg1: i32, %arg2: i32) -> (i32, i32) {
    %c0_i32 = arith.constant 0 : i32
    return %arg0, %arg1 : i32, i32
  }
}

module attributes {stable_mosaic.version = 11 : i64} {
  func.func @_tap_mean_kernel(%arg0: i32, %arg1: i32, %arg2: memref<1x32x16xbf16, #tpu.memory_space<vmem>>, %arg3: memref<32x16xbf16, #tpu.memory_space<vmem>>, %arg4: memref<32x16xf32, #tpu.memory_space<vmem>>) attributes {dimension_semantics = [#tpu.dimension_semantics<parallel>, #tpu.dimension_semantics<arbitrary>], iteration_bounds = array<i64: 1, 4>, scalar_prefetch = 0 : i64, scratch_operands = 1 : i64, tpu.core_type = #tpu.core_type<tc>, window_params = [{transform_indices = @transform_0, window_bounds = array<i64: 1, 32, 16>}, {transform_indices = @transform_1, window_bounds = array<i64: 32, 16>}]} {
    %c0_i32 = arith.constant 0 : i32
    %0 = arith.cmpi eq, %arg1, %c0_i32 : i32
    %1 = arith.extui %0 : i1 to i32
    %c0_i32_0 = arith.constant 0 : i32
    %2 = arith.cmpi ne, %1, %c0_i32_0 : i32
    scf.if %2 {
      %cst_8 = arith.constant 0.000000e+00 : f32
      %14 = vector.broadcast %cst_8 : f32 to vector<32x16xf32>
      %c0_9 = arith.constant 0 : index
      %c0_10 = arith.constant 0 : index
      %15 = vector.load %arg4[%c0_9, %c0_10] : memref<32x16xf32, #tpu.memory_space<vmem>>, vector<32x16xf32>
      tpu.vector_store %arg4[%c0_9, %c0_10], %14 {strides = array<i32>} : memref<32x16xf32, #tpu.memory_space<vmem>>, vector<32x16xf32>,
    } else {
    }
    %c0 = arith.constant 0 : index
    %c0_1 = arith.constant 0 : index
    %3 = vector.load %arg4[%c0, %c0_1] : memref<32x16xf32, #tpu.memory_space<vmem>>, vector<32x16xf32>
    %c0_2 = arith.constant 0 : index
    %c0_3 = arith.constant 0 : index
    %c0_4 = arith.constant 0 : index
    %4 = vector.load %arg2[%c0_2, %c0_3, %c0_4] : memref<1x32x16xbf16, #tpu.memory_space<vmem>>, vector<1x32x16xbf16>
    %5 = vector.shape_cast %4 : vector<1x32x16xbf16> to vector<32x16xbf16>
    %6 = arith.extf %5 : vector<32x16xbf16> to vector<32x16xf32>
    %cst = arith.constant 2.500000e-01 : f32
    %7 = vector.broadcast %cst : f32 to vector<32x16xf32>
    %8 = arith.mulf %6, %7 : vector<32x16xf32>
    %9 = arith.addf %3, %8 : vector<32x16xf32>
    %c0_5 = arith.constant 0 : index
    %c0_6 = arith.constant 0 : index
    %10 = vector.load %arg4[%c0_5, %c0_6] : memref<32x16xf32, #tpu.memory_space<vmem>>, vector<32x16xf32>
    tpu.vector_store %arg4[%c0_5, %c0_6], %9 {strides = array<i32>} : memref<32x16xf32, #tpu.memory_space<vmem>>, vector<32x16xf32>,
    %c3_i32 = arith.constant 3 : i32
    %11 = arith.cmpi eq, %arg1, %c3_i32 : i32
    %12 = arith.extui %11 : i1 to i32
    %c0_i32_7 = arith.constant 0 : i32
    %13 = arith.cmpi ne, %12, %c0_i32_7 : i32
    scf.if %13 {
      %c0_8 = arith.constant 0 : index
      %c0_9 = arith.constant 0 : index
      %14 = vector.load %arg4[%c0_8, %c0_9] : memref<32x16xf32, #tpu.memory_space<vmem>>, vector<32x16xf32>
      %15 = arith.truncf %14 : vector<32x16xf32> to vector<32x16xbf16>
      %c0_10 = arith.constant 0 : index
      %c0_11 = arith.constant 0 : index
      %16 = vector.load %arg3[%c0_10, %c0_11] : memref<32x16xbf16, #tpu.memory_space<vmem>>, vector<32x16xbf16>
      tpu.vector_store %arg3[%c0_10, %c0_11], %15 {strides = array<i32>} : memref<32x16xbf16, #tpu.memory_space<vmem>>, vector<32x16xbf16>,
    } else {
    }
    return
  }
  func.func @transform_0(%arg0: i32, %arg1: i32) -> (i32, i32, i32) {
    %c0_i32 = arith.constant 0 : i32
    %c0_i32_0 = arith.constant 0 : i32
    return %arg1, %arg0, %c0_i32 : i32, i32, i32
  }
  func.func @transform_1(%arg0: i32, %arg1: i32) -> (i32, i32) {
    %c0_i32 = arith.constant 0 : i32
    %c0_i32_0 = arith.constant 0 : i32
    return %arg0, %c0_i32 : i32, i32
  }
}

module attributes {stable_mosaic.version = 11 : i64} {
  func.func @_fused_matmul_kernel(%arg0: i32, %arg1: i32, %arg2: i32, %arg3: memref<32x128xbf16, #tpu.memory_space<vmem>>, %arg4: memref<128x128xbf16, #tpu.memory_space<vmem>>, %arg5: memref<1x128xf32, #tpu.memory_space<vmem>>, %arg6: memref<1x128xf32, #tpu.memory_space<vmem>>, %arg7: memref<1x128xf32, #tpu.memory_space<vmem>>, %arg8: memref<1x128xf32, #tpu.memory_space<vmem>>, %arg9: memref<1x128xf32, #tpu.memory_space<vmem>>, %arg10: memref<32x128xbf16, #tpu.memory_space<vmem>>, %arg11: memref<32x128xf32, #tpu.memory_space<vmem>>) attributes {dimension_semantics = [#tpu.dimension_semantics<parallel>, #tpu.dimension_semantics<parallel>, #tpu.dimension_semantics<arbitrary>], iteration_bounds = array<i64: 1, 1, 1>, scalar_prefetch = 0 : i64, scratch_operands = 1 : i64, tpu.core_type = #tpu.core_type<tc>, window_params = [{transform_indices = @transform_0, window_bounds = array<i64: 32, 128>}, {transform_indices = @transform_1, window_bounds = array<i64: 128, 128>}, {transform_indices = @transform_2, window_bounds = array<i64: 1, 128>}, {transform_indices = @transform_3, window_bounds = array<i64: 1, 128>}, {transform_indices = @transform_4, window_bounds = array<i64: 1, 128>}, {transform_indices = @transform_5, window_bounds = array<i64: 1, 128>}, {transform_indices = @transform_6, window_bounds = array<i64: 1, 128>}, {transform_indices = @transform_7, window_bounds = array<i64: 32, 128>}]} {
    %c0_i32 = arith.constant 0 : i32
    %0 = arith.cmpi eq, %arg2, %c0_i32 : i32
    %1 = arith.extui %0 : i1 to i32
    %c0_i32_0 = arith.constant 0 : i32
    %2 = arith.cmpi ne, %1, %c0_i32_0 : i32
    scf.if %2 {
      %cst_15 = arith.constant 0.000000e+00 : f32
      %22 = vector.broadcast %cst_15 : f32 to vector<32x128xf32>
      %c0_16 = arith.constant 0 : index
      %c0_17 = arith.constant 0 : index
      %23 = vector.load %arg11[%c0_16, %c0_17] : memref<32x128xf32, #tpu.memory_space<vmem>>, vector<32x128xf32>
      tpu.vector_store %arg11[%c0_16, %c0_17], %22 {strides = array<i32>} : memref<32x128xf32, #tpu.memory_space<vmem>>, vector<32x128xf32>,
    } else {
    }
    %c0 = arith.constant 0 : index
    %c0_1 = arith.constant 0 : index
    %3 = vector.load %arg3[%c0, %c0_1] : memref<32x128xbf16, #tpu.memory_space<vmem>>, vector<32x128xbf16>
    %4 = arith.extf %3 : vector<32x128xbf16> to vector<32x128xf32>
    %c0_2 = arith.constant 0 : index
    %c0_3 = arith.constant 0 : index
    %5 = vector.load %arg6[%c0_2, %c0_3] : memref<1x128xf32, #tpu.memory_space<vmem>>, vector<1x128xf32>
    %6 = vector.broadcast %5 : vector<1x128xf32> to vector<32x128xf32>
    %7 = arith.mulf %4, %6 : vector<32x128xf32>
    %c0_4 = arith.constant 0 : index
    %c0_5 = arith.constant 0 : index
    %8 = vector.load %arg7[%c0_4, %c0_5] : memref<1x128xf32, #tpu.memory_space<vmem>>, vector<1x128xf32>
    %9 = vector.broadcast %8 : vector<1x128xf32> to vector<32x128xf32>
    %10 = arith.addf %7, %9 : vector<32x128xf32>
    %cst = arith.constant 0.000000e+00 : f32
    %11 = vector.broadcast %cst : f32 to vector<32x128xf32>
    %12 = arith.maximumf %10, %11 : vector<32x128xf32>
    %13 = arith.truncf %12 : vector<32x128xf32> to vector<32x128xbf16>
    %c0_6 = arith.constant 0 : index
    %c0_7 = arith.constant 0 : index
    %14 = vector.load %arg11[%c0_6, %c0_7] : memref<32x128xf32, #tpu.memory_space<vmem>>, vector<32x128xf32>
    %c0_8 = arith.constant 0 : index
    %c0_9 = arith.constant 0 : index
    %15 = vector.load %arg4[%c0_8, %c0_9] : memref<128x128xbf16, #tpu.memory_space<vmem>>, vector<128x128xbf16>
    %cst_10 = arith.constant dense<0.000000e+00> : vector<32x128xf32>
    %16 = tpu.matmul %13, %15, %cst_10 {dimension_numbers = #tpu.dot_dimension_numbers<[1], [0], [0], [1], [0, 0, 1, 1], [], []>} : vector<32x128xbf16>, vector<128x128xbf16>, vector<32x128xf32> -> vector<32x128xf32>
    %17 = arith.addf %14, %16 : vector<32x128xf32>
    %c0_11 = arith.constant 0 : index
    %c0_12 = arith.constant 0 : index
    %18 = vector.load %arg11[%c0_11, %c0_12] : memref<32x128xf32, #tpu.memory_space<vmem>>, vector<32x128xf32>
    tpu.vector_store %arg11[%c0_11, %c0_12], %17 {strides = array<i32>} : memref<32x128xf32, #tpu.memory_space<vmem>>, vector<32x128xf32>,
    %c0_i32_13 = arith.constant 0 : i32
    %19 = arith.cmpi eq, %arg2, %c0_i32_13 : i32
    %20 = arith.extui %19 : i1 to i32
    %c0_i32_14 = arith.constant 0 : i32
    %21 = arith.cmpi ne, %20, %c0_i32_14 : i32
    scf.if %21 {
      %c0_15 = arith.constant 0 : index
      %c0_16 = arith.constant 0 : index
      %22 = vector.load %arg11[%c0_15, %c0_16] : memref<32x128xf32, #tpu.memory_space<vmem>>, vector<32x128xf32>
      %c0_17 = arith.constant 0 : index
      %c0_18 = arith.constant 0 : index
      %23 = vector.load %arg5[%c0_17, %c0_18] : memref<1x128xf32, #tpu.memory_space<vmem>>, vector<1x128xf32>
      %24 = vector.broadcast %23 : vector<1x128xf32> to vector<32x128xf32>
      %25 = arith.addf %22, %24 : vector<32x128xf32>
      %c0_19 = arith.constant 0 : index
      %c0_20 = arith.constant 0 : index
      %26 = vector.load %arg8[%c0_19, %c0_20] : memref<1x128xf32, #tpu.memory_space<vmem>>, vector<1x128xf32>
      %27 = vector.broadcast %26 : vector<1x128xf32> to vector<32x128xf32>
      %28 = arith.mulf %25, %27 : vector<32x128xf32>
      %c0_21 = arith.constant 0 : index
      %c0_22 = arith.constant 0 : index
      %29 = vector.load %arg9[%c0_21, %c0_22] : memref<1x128xf32, #tpu.memory_space<vmem>>, vector<1x128xf32>
      %30 = vector.broadcast %29 : vector<1x128xf32> to vector<32x128xf32>
      %31 = arith.addf %28, %30 : vector<32x128xf32>
      %cst_23 = arith.constant 0.000000e+00 : f32
      %32 = vector.broadcast %cst_23 : f32 to vector<32x128xf32>
      %33 = arith.maximumf %31, %32 : vector<32x128xf32>
      %34 = arith.truncf %33 : vector<32x128xf32> to vector<32x128xbf16>
      %c0_24 = arith.constant 0 : index
      %c0_25 = arith.constant 0 : index
      %35 = vector.load %arg10[%c0_24, %c0_25] : memref<32x128xbf16, #tpu.memory_space<vmem>>, vector<32x128xbf16>
      tpu.vector_store %arg10[%c0_24, %c0_25], %34 {strides = array<i32>} : memref<32x128xbf16, #tpu.memory_space<vmem>>, vector<32x128xbf16>,
    } else {
    }
    return
  }
  func.func @transform_0(%arg0: i32, %arg1: i32, %arg2: i32) -> (i32, i32) {
    %c0_i32 = arith.constant 0 : i32
    return %arg0, %arg2 : i32, i32
  }
  func.func @transform_1(%arg0: i32, %arg1: i32, %arg2: i32) -> (i32, i32) {
    %c0_i32 = arith.constant 0 : i32
    return %arg2, %arg1 : i32, i32
  }
  func.func @transform_2(%arg0: i32, %arg1: i32, %arg2: i32) -> (i32, i32) {
    %c0_i32 = arith.constant 0 : i32
    %c0_i32_0 = arith.constant 0 : i32
    return %c0_i32, %arg1 : i32, i32
  }
  func.func @transform_3(%arg0: i32, %arg1: i32, %arg2: i32) -> (i32, i32) {
    %c0_i32 = arith.constant 0 : i32
    %c0_i32_0 = arith.constant 0 : i32
    return %c0_i32, %arg2 : i32, i32
  }
  func.func @transform_4(%arg0: i32, %arg1: i32, %arg2: i32) -> (i32, i32) {
    %c0_i32 = arith.constant 0 : i32
    %c0_i32_0 = arith.constant 0 : i32
    return %c0_i32, %arg2 : i32, i32
  }
  func.func @transform_5(%arg0: i32, %arg1: i32, %arg2: i32) -> (i32, i32) {
    %c0_i32 = arith.constant 0 : i32
    %c0_i32_0 = arith.constant 0 : i32
    return %c0_i32, %arg1 : i32, i32
  }
  func.func @transform_6(%arg0: i32, %arg1: i32, %arg2: i32) -> (i32, i32) {
    %c0_i32 = arith.constant 0 : i32
    %c0_i32_0 = arith.constant 0 : i32
    return %c0_i32, %arg1 : i32, i32
  }
  func.func @transform_7(%arg0: i32, %arg1: i32, %arg2: i32) -> (i32, i32) {
    %c0_i32 = arith.constant 0 : i32
    return %arg0, %arg1 : i32, i32
  }
}

module attributes {stable_mosaic.version = 11 : i64} {
  func.func @_fused_matmul_kernel(%arg0: i32, %arg1: i32, %arg2: i32, %arg3: memref<32x256xbf16, #tpu.memory_space<vmem>>, %arg4: memref<256x128xbf16, #tpu.memory_space<vmem>>, %arg5: memref<1x128xf32, #tpu.memory_space<vmem>>, %arg6: memref<1x256xf32, #tpu.memory_space<vmem>>, %arg7: memref<1x256xf32, #tpu.memory_space<vmem>>, %arg8: memref<1x128xf32, #tpu.memory_space<vmem>>, %arg9: memref<1x128xf32, #tpu.memory_space<vmem>>, %arg10: memref<32x128xbf16, #tpu.memory_space<vmem>>, %arg11: memref<32x128xf32, #tpu.memory_space<vmem>>) attributes {dimension_semantics = [#tpu.dimension_semantics<parallel>, #tpu.dimension_semantics<parallel>, #tpu.dimension_semantics<arbitrary>], iteration_bounds = array<i64: 1, 1, 1>, scalar_prefetch = 0 : i64, scratch_operands = 1 : i64, tpu.core_type = #tpu.core_type<tc>, window_params = [{transform_indices = @transform_0, window_bounds = array<i64: 32, 256>}, {transform_indices = @transform_1, window_bounds = array<i64: 256, 128>}, {transform_indices = @transform_2, window_bounds = array<i64: 1, 128>}, {transform_indices = @transform_3, window_bounds = array<i64: 1, 256>}, {transform_indices = @transform_4, window_bounds = array<i64: 1, 256>}, {transform_indices = @transform_5, window_bounds = array<i64: 1, 128>}, {transform_indices = @transform_6, window_bounds = array<i64: 1, 128>}, {transform_indices = @transform_7, window_bounds = array<i64: 32, 128>}]} {
    %c0_i32 = arith.constant 0 : i32
    %0 = arith.cmpi eq, %arg2, %c0_i32 : i32
    %1 = arith.extui %0 : i1 to i32
    %c0_i32_0 = arith.constant 0 : i32
    %2 = arith.cmpi ne, %1, %c0_i32_0 : i32
    scf.if %2 {
      %cst_10 = arith.constant 0.000000e+00 : f32
      %12 = vector.broadcast %cst_10 : f32 to vector<32x128xf32>
      %c0_11 = arith.constant 0 : index
      %c0_12 = arith.constant 0 : index
      %13 = vector.load %arg11[%c0_11, %c0_12] : memref<32x128xf32, #tpu.memory_space<vmem>>, vector<32x128xf32>
      tpu.vector_store %arg11[%c0_11, %c0_12], %12 {strides = array<i32>} : memref<32x128xf32, #tpu.memory_space<vmem>>, vector<32x128xf32>,
    } else {
    }
    %c0 = arith.constant 0 : index
    %c0_1 = arith.constant 0 : index
    %3 = vector.load %arg3[%c0, %c0_1] : memref<32x256xbf16, #tpu.memory_space<vmem>>, vector<32x256xbf16>
    %c0_2 = arith.constant 0 : index
    %c0_3 = arith.constant 0 : index
    %4 = vector.load %arg11[%c0_2, %c0_3] : memref<32x128xf32, #tpu.memory_space<vmem>>, vector<32x128xf32>
    %c0_4 = arith.constant 0 : index
    %c0_5 = arith.constant 0 : index
    %5 = vector.load %arg4[%c0_4, %c0_5] : memref<256x128xbf16, #tpu.memory_space<vmem>>, vector<256x128xbf16>
    %cst = arith.constant dense<0.000000e+00> : vector<32x128xf32>
    %6 = tpu.matmul %3, %5, %cst {dimension_numbers = #tpu.dot_dimension_numbers<[1], [0], [0], [1], [0, 0, 1, 1], [], []>} : vector<32x256xbf16>, vector<256x128xbf16>, vector<32x128xf32> -> vector<32x128xf32>
    %7 = arith.addf %4, %6 : vector<32x128xf32>
    %c0_6 = arith.constant 0 : index
    %c0_7 = arith.constant 0 : index
    %8 = vector.load %arg11[%c0_6, %c0_7] : memref<32x128xf32, #tpu.memory_space<vmem>>, vector<32x128xf32>
    tpu.vector_store %arg11[%c0_6, %c0_7], %7 {strides = array<i32>} : memref<32x128xf32, #tpu.memory_space<vmem>>, vector<32x128xf32>,
    %c0_i32_8 = arith.constant 0 : i32
    %9 = arith.cmpi eq, %arg2, %c0_i32_8 : i32
    %10 = arith.extui %9 : i1 to i32
    %c0_i32_9 = arith.constant 0 : i32
    %11 = arith.cmpi ne, %10, %c0_i32_9 : i32
    scf.if %11 {
      %c0_10 = arith.constant 0 : index
      %c0_11 = arith.constant 0 : index
      %12 = vector.load %arg11[%c0_10, %c0_11] : memref<32x128xf32, #tpu.memory_space<vmem>>, vector<32x128xf32>
      %c0_12 = arith.constant 0 : index
      %c0_13 = arith.constant 0 : index
      %13 = vector.load %arg5[%c0_12, %c0_13] : memref<1x128xf32, #tpu.memory_space<vmem>>, vector<1x128xf32>
      %14 = vector.broadcast %13 : vector<1x128xf32> to vector<32x128xf32>
      %15 = arith.addf %12, %14 : vector<32x128xf32>
      %16 = arith.truncf %15 : vector<32x128xf32> to vector<32x128xbf16>
      %c0_14 = arith.constant 0 : index
      %c0_15 = arith.constant 0 : index
      %17 = vector.load %arg10[%c0_14, %c0_15] : memref<32x128xbf16, #tpu.memory_space<vmem>>, vector<32x128xbf16>
      tpu.vector_store %arg10[%c0_14, %c0_15], %16 {strides = array<i32>} : memref<32x128xbf16, #tpu.memory_space<vmem>>, vector<32x128xbf16>,
    } else {
    }
    return
  }
  func.func @transform_0(%arg0: i32, %arg1: i32, %arg2: i32) -> (i32, i32) {
    %c0_i32 = arith.constant 0 : i32
    return %arg0, %arg2 : i32, i32
  }
  func.func @transform_1(%arg0: i32, %arg1: i32, %arg2: i32) -> (i32, i32) {
    %c0_i32 = arith.constant 0 : i32
    return %arg2, %arg1 : i32, i32
  }
  func.func @transform_2(%arg0: i32, %arg1: i32, %arg2: i32) -> (i32, i32) {
    %c0_i32 = arith.constant 0 : i32
    %c0_i32_0 = arith.constant 0 : i32
    return %c0_i32, %arg1 : i32, i32
  }
  func.func @transform_3(%arg0: i32, %arg1: i32, %arg2: i32) -> (i32, i32) {
    %c0_i32 = arith.constant 0 : i32
    %c0_i32_0 = arith.constant 0 : i32
    return %c0_i32, %arg2 : i32, i32
  }
  func.func @transform_4(%arg0: i32, %arg1: i32, %arg2: i32) -> (i32, i32) {
    %c0_i32 = arith.constant 0 : i32
    %c0_i32_0 = arith.constant 0 : i32
    return %c0_i32, %arg2 : i32, i32
  }
  func.func @transform_5(%arg0: i32, %arg1: i32, %arg2: i32) -> (i32, i32) {
    %c0_i32 = arith.constant 0 : i32
    %c0_i32_0 = arith.constant 0 : i32
    return %c0_i32, %arg1 : i32, i32
  }
  func.func @transform_6(%arg0: i32, %arg1: i32, %arg2: i32) -> (i32, i32) {
    %c0_i32 = arith.constant 0 : i32
    %c0_i32_0 = arith.constant 0 : i32
    return %c0_i32, %arg1 : i32, i32
  }
  func.func @transform_7(%arg0: i32, %arg1: i32, %arg2: i32) -> (i32, i32) {
    %c0_i32 = arith.constant 0 : i32
    return %arg0, %arg1 : i32, i32
  }
}

module attributes {stable_mosaic.version = 11 : i64} {
  func.func @_gap_bn_relu_kernel(%arg0: memref<2x16x24xbf16, #tpu.memory_space<vmem>>, %arg1: memref<1x1x24xf32, #tpu.memory_space<vmem>>, %arg2: memref<1x1x24xf32, #tpu.memory_space<vmem>>, %arg3: memref<2x24xf32, #tpu.memory_space<vmem>>) attributes {dimension_semantics = [], scalar_prefetch = 0 : i64, scratch_operands = 0 : i64, tpu.core_type = #tpu.core_type<tc>} {
    %c0 = arith.constant 0 : index
    %c0_0 = arith.constant 0 : index
    %c0_1 = arith.constant 0 : index
    %0 = vector.load %arg0[%c0, %c0_0, %c0_1] : memref<2x16x24xbf16, #tpu.memory_space<vmem>>, vector<2x16x24xbf16>
    %1 = arith.extf %0 : vector<2x16x24xbf16> to vector<2x16x24xf32>
    %c0_2 = arith.constant 0 : index
    %c0_3 = arith.constant 0 : index
    %c0_4 = arith.constant 0 : index
    %2 = vector.load %arg1[%c0_2, %c0_3, %c0_4] : memref<1x1x24xf32, #tpu.memory_space<vmem>>, vector<1x1x24xf32>
    %3 = vector.broadcast %2 : vector<1x1x24xf32> to vector<2x16x24xf32>
    %4 = arith.mulf %1, %3 : vector<2x16x24xf32>
    %c0_5 = arith.constant 0 : index
    %c0_6 = arith.constant 0 : index
    %c0_7 = arith.constant 0 : index
    %5 = vector.load %arg2[%c0_5, %c0_6, %c0_7] : memref<1x1x24xf32, #tpu.memory_space<vmem>>, vector<1x1x24xf32>
    %6 = vector.broadcast %5 : vector<1x1x24xf32> to vector<2x16x24xf32>
    %7 = arith.addf %4, %6 : vector<2x16x24xf32>
    %cst = arith.constant 0.000000e+00 : f32
    %8 = vector.broadcast %cst : f32 to vector<2x16x24xf32>
    %9 = arith.maximumf %7, %8 : vector<2x16x24xf32>
    %cst_8 = arith.constant dense<0.000000e+00> : vector<2x24xf32>
    %10 = vector.multi_reduction <add>, %9, %cst_8 [1] : vector<2x16x24xf32> to vector<2x24xf32>
    %cst_9 = arith.constant 1.600000e+01 : f32
    %11 = vector.broadcast %cst_9 : f32 to vector<2x24xf32>
    %12 = arith.divf %10, %11 : vector<2x24xf32>
    %c0_10 = arith.constant 0 : index
    %c0_11 = arith.constant 0 : index
    %13 = vector.load %arg3[%c0_10, %c0_11] : memref<2x24xf32, #tpu.memory_space<vmem>>, vector<2x24xf32>
    tpu.vector_store %arg3[%c0_10, %c0_11], %12 {strides = array<i32>} : memref<2x24xf32, #tpu.memory_space<vmem>>, vector<2x24xf32>,
    return
  }
}

module attributes {stable_mosaic.version = 11 : i64} {
  func.func @_fused_matmul_kernel(%arg0: i32, %arg1: i32, %arg2: i32, %arg3: memref<16x128xbf16, #tpu.memory_space<vmem>>, %arg4: memref<128x128xbf16, #tpu.memory_space<vmem>>, %arg5: memref<1x128xf32, #tpu.memory_space<vmem>>, %arg6: memref<1x128xf32, #tpu.memory_space<vmem>>, %arg7: memref<1x128xf32, #tpu.memory_space<vmem>>, %arg8: memref<1x128xf32, #tpu.memory_space<vmem>>, %arg9: memref<1x128xf32, #tpu.memory_space<vmem>>, %arg10: memref<16x128xf32, #tpu.memory_space<vmem>>, %arg11: memref<16x128xf32, #tpu.memory_space<vmem>>) attributes {dimension_semantics = [#tpu.dimension_semantics<parallel>, #tpu.dimension_semantics<parallel>, #tpu.dimension_semantics<arbitrary>], iteration_bounds = array<i64: 1, 1, 1>, scalar_prefetch = 0 : i64, scratch_operands = 1 : i64, tpu.core_type = #tpu.core_type<tc>, window_params = [{transform_indices = @transform_0, window_bounds = array<i64: 16, 128>}, {transform_indices = @transform_1, window_bounds = array<i64: 128, 128>}, {transform_indices = @transform_2, window_bounds = array<i64: 1, 128>}, {transform_indices = @transform_3, window_bounds = array<i64: 1, 128>}, {transform_indices = @transform_4, window_bounds = array<i64: 1, 128>}, {transform_indices = @transform_5, window_bounds = array<i64: 1, 128>}, {transform_indices = @transform_6, window_bounds = array<i64: 1, 128>}, {transform_indices = @transform_7, window_bounds = array<i64: 16, 128>}]} {
    %c0_i32 = arith.constant 0 : i32
    %0 = arith.cmpi eq, %arg2, %c0_i32 : i32
    %1 = arith.extui %0 : i1 to i32
    %c0_i32_0 = arith.constant 0 : i32
    %2 = arith.cmpi ne, %1, %c0_i32_0 : i32
    scf.if %2 {
      %cst_10 = arith.constant 0.000000e+00 : f32
      %12 = vector.broadcast %cst_10 : f32 to vector<16x128xf32>
      %c0_11 = arith.constant 0 : index
      %c0_12 = arith.constant 0 : index
      %13 = vector.load %arg11[%c0_11, %c0_12] : memref<16x128xf32, #tpu.memory_space<vmem>>, vector<16x128xf32>
      tpu.vector_store %arg11[%c0_11, %c0_12], %12 {strides = array<i32>} : memref<16x128xf32, #tpu.memory_space<vmem>>, vector<16x128xf32>,
    } else {
    }
    %c0 = arith.constant 0 : index
    %c0_1 = arith.constant 0 : index
    %3 = vector.load %arg3[%c0, %c0_1] : memref<16x128xbf16, #tpu.memory_space<vmem>>, vector<16x128xbf16>
    %c0_2 = arith.constant 0 : index
    %c0_3 = arith.constant 0 : index
    %4 = vector.load %arg11[%c0_2, %c0_3] : memref<16x128xf32, #tpu.memory_space<vmem>>, vector<16x128xf32>
    %c0_4 = arith.constant 0 : index
    %c0_5 = arith.constant 0 : index
    %5 = vector.load %arg4[%c0_4, %c0_5] : memref<128x128xbf16, #tpu.memory_space<vmem>>, vector<128x128xbf16>
    %cst = arith.constant dense<0.000000e+00> : vector<16x128xf32>
    %6 = tpu.matmul %3, %5, %cst {dimension_numbers = #tpu.dot_dimension_numbers<[1], [0], [0], [1], [0, 0, 1, 1], [], []>} : vector<16x128xbf16>, vector<128x128xbf16>, vector<16x128xf32> -> vector<16x128xf32>
    %7 = arith.addf %4, %6 : vector<16x128xf32>
    %c0_6 = arith.constant 0 : index
    %c0_7 = arith.constant 0 : index
    %8 = vector.load %arg11[%c0_6, %c0_7] : memref<16x128xf32, #tpu.memory_space<vmem>>, vector<16x128xf32>
    tpu.vector_store %arg11[%c0_6, %c0_7], %7 {strides = array<i32>} : memref<16x128xf32, #tpu.memory_space<vmem>>, vector<16x128xf32>,
    %c0_i32_8 = arith.constant 0 : i32
    %9 = arith.cmpi eq, %arg2, %c0_i32_8 : i32
    %10 = arith.extui %9 : i1 to i32
    %c0_i32_9 = arith.constant 0 : i32
    %11 = arith.cmpi ne, %10, %c0_i32_9 : i32
    scf.if %11 {
      %c0_10 = arith.constant 0 : index
      %c0_11 = arith.constant 0 : index
      %12 = vector.load %arg11[%c0_10, %c0_11] : memref<16x128xf32, #tpu.memory_space<vmem>>, vector<16x128xf32>
      %c0_12 = arith.constant 0 : index
      %c0_13 = arith.constant 0 : index
      %13 = vector.load %arg5[%c0_12, %c0_13] : memref<1x128xf32, #tpu.memory_space<vmem>>, vector<1x128xf32>
      %14 = vector.broadcast %13 : vector<1x128xf32> to vector<16x128xf32>
      %15 = arith.addf %12, %14 : vector<16x128xf32>
      %c0_14 = arith.constant 0 : index
      %c0_15 = arith.constant 0 : index
      %16 = vector.load %arg10[%c0_14, %c0_15] : memref<16x128xf32, #tpu.memory_space<vmem>>, vector<16x128xf32>
      tpu.vector_store %arg10[%c0_14, %c0_15], %15 {strides = array<i32>} : memref<16x128xf32, #tpu.memory_space<vmem>>, vector<16x128xf32>,
    } else {
    }
    return
  }
  func.func @transform_0(%arg0: i32, %arg1: i32, %arg2: i32) -> (i32, i32) {
    %c0_i32 = arith.constant 0 : i32
    return %arg0, %arg2 : i32, i32
  }
  func.func @transform_1(%arg0: i32, %arg1: i32, %arg2: i32) -> (i32, i32) {
    %c0_i32 = arith.constant 0 : i32
    return %arg2, %arg1 : i32, i32
  }
  func.func @transform_2(%arg0: i32, %arg1: i32, %arg2: i32) -> (i32, i32) {
    %c0_i32 = arith.constant 0 : i32
    %c0_i32_0 = arith.constant 0 : i32
    return %c0_i32, %arg1 : i32, i32
  }
  func.func @transform_3(%arg0: i32, %arg1: i32, %arg2: i32) -> (i32, i32) {
    %c0_i32 = arith.constant 0 : i32
    %c0_i32_0 = arith.constant 0 : i32
    return %c0_i32, %arg2 : i32, i32
  }
  func.func @transform_4(%arg0: i32, %arg1: i32, %arg2: i32) -> (i32, i32) {
    %c0_i32 = arith.constant 0 : i32
    %c0_i32_0 = arith.constant 0 : i32
    return %c0_i32, %arg2 : i32, i32
  }
  func.func @transform_5(%arg0: i32, %arg1: i32, %arg2: i32) -> (i32, i32) {
    %c0_i32 = arith.constant 0 : i32
    %c0_i32_0 = arith.constant 0 : i32
    return %c0_i32, %arg1 : i32, i32
  }
  func.func @transform_6(%arg0: i32, %arg1: i32, %arg2: i32) -> (i32, i32) {
    %c0_i32 = arith.constant 0 : i32
    %c0_i32_0 = arith.constant 0 : i32
    return %c0_i32, %arg1 : i32, i32
  }
  func.func @transform_7(%arg0: i32, %arg1: i32, %arg2: i32) -> (i32, i32) {
    %c0_i32 = arith.constant 0 : i32
    return %arg0, %arg1 : i32, i32
  }
}

</mosaic_0001>

<bundles_post_ra>
// kernel: densenet_forward.15
= control target key start
LH: loop header
LB: loop body
LE: loop exit
PB: predicated region body
PF: predicated region fallthrough
CT: control target
= control target key end

     0   :  { %s542_s6 = smov 0   ;;  %s544_s7 = smov 0   ;;  %s810_s0 = inlined_call_operand.vmem [shape: bf16[9,128,8], index: 0, kind: input, shape index: {}]   ;;  %s811_s1 = inlined_call_operand.vmem [shape: bf16[128,8], index: 1, kind: output, shape index: {}]  }
   0x1   :  { %s546_s8 = smov 0  }
   0x2 LB: > { %s20_s9 = sadd.s32 1, %s526_s7  ;;  %p403_p0 = scmp.ge.s32.totalorder %s530_s8, 1  ;;  %s530_s8 = sphi %s546_s8, %s11_s8   ;;  %s526_s7 = sphi %s544_s7, %s813_s7   ;;  %s522_s6 = sphi %s542_s6, %s812_s6  }
   0x3   : > { %p21_p1 = scmp.ge.s32.totalorder %s20_s9, 9  ;;  %p106_p2 = scmp.lt.s32.totalorder %s530_s8, 10 }
   0x5   : > { %s815_s9 = smov (%p21_p1, %s20_s9), 0  ;;  %p107_p3 = pnand %p403_p0, %p106_p2 }
   0x6   : > { %p131_p4 = scmp.lt.s32.totalorder (!%p107_p3), %s522_s6, 8  ;;  %p406_p5 = scmp.ne.s32.totalorder (!%p107_p3), %s522_s6, 0 }
   0x7   : > { %110 = sbr.rel (%p107_p3) target bundleno = 51 (0x33), region = 24 }
   0xe   : > { %s132_s10 = scalar_select %p131_p4, %s522_s6, 8 }
   0xf   : > { %vm182_vm0 = vcmask (!%p406_p5), 60416  }
  0x10   : > { %s428_s11 = sshll.u32 %s132_s10, 6 }
  0x11   : > { %s138_s14 = scalar_lea.vmem %s810_s0, %s428_s11 }
  0x12   : > { %v567_v0 = vld [vmem:[%s138_s14] sm:$0xf]  ;;  %v569_v1 = vld [vmem:[%s138_s14 + $0x4] sm:$0xf]  ;;  %v571_v2 = vld [vmem:[%s138_s14 + $0x8] sm:$0xf] }
  0x13   : > { %v573_v3 = vld [vmem:[%s138_s14 + $0xc] sm:$0xf]  ;;  %v575_v4 = vld [vmem:[%s138_s14 + $0x10] sm:$0xf]  ;;  %v577_v5 = vld [vmem:[%s138_s14 + $0x14] sm:$0xf]  ;;  %v162_v6 = vunpack.c.l.bf16 %v567_v0  ;;  %v163_v7 = vunpack.c.l.bf16 %v569_v1  ;;  %v164_v8 = vunpack.c.l.bf16 %v571_v2 }
  0x14   : > { %v582_v9 = vld [vmem:[%s138_s14 + $0x18] sm:$0xf]  ;;  %v584_v10 = vld [vmem:[%s138_s14 + $0x1c] sm:$0xf]  ;;  %v586_v11 = vld [vmem:[%s138_s14 + $0x20] sm:$0xf]  ;;  %v165_v12 = vunpack.c.l.bf16 %v573_v3  ;;  %v166_v13 = vunpack.c.l.bf16 %v575_v4  ;;  %v167_v14 = vunpack.c.l.bf16 %v577_v5 }
  0x15   : > { %v591_v15 = vld [vmem:[%s138_s14 + $0x24] sm:$0xf]  ;;  %v593_v16 = vld [vmem:[%s138_s14 + $0x28] sm:$0xf]  ;;  %v595_v17 = vld [vmem:[%s138_s14 + $0x2c] sm:$0xf]  ;;  %v168_v18 = vunpack.c.l.bf16 %v582_v9  ;;  %v169_v19 = vunpack.c.l.bf16 %v584_v10  ;;  %v170_v20 = vunpack.c.l.bf16 %v586_v11 }
  0x16   : > { %v600_v21 = vld [vmem:[%s138_s14 + $0x30] sm:$0xf]  ;;  %v602_v22 = vld [vmem:[%s138_s14 + $0x34] sm:$0xf]  ;;  %v604_v23 = vld [vmem:[%s138_s14 + $0x38] sm:$0xf]  ;;  %v171_v24 = vunpack.c.l.bf16 %v591_v15  ;;  %v172_v25 = vunpack.c.l.bf16 %v593_v16  ;;  %v173_v26 = vunpack.c.l.bf16 %v595_v17 }
  0x17   : > { %v609_v27 = vld [vmem:[%s138_s14 + $0x3c] sm:$0xf]  ;;  %v174_v28 = vunpack.c.l.bf16 %v600_v21  ;;  %v175_v29 = vunpack.c.l.bf16 %v602_v22  ;;  %v176_v30 = vunpack.c.l.bf16 %v604_v23  ;;  %181 = sbr.rel (%p406_p5) target bundleno = 32 (0x20), region = 28  ;;  %183 = vst.msk [vmem:[%s811_s1] sm:$0xf] (!%p406_p5), %vm182_vm0, %v567_v0 }
  0x18   : > { %v177_v31 = vunpack.c.l.bf16 %v609_v27  ;;  %184 = vst.msk [vmem:[%s811_s1 + $0x4] sm:$0xf] (!%p406_p5), %vm182_vm0, %v569_v1  ;;  %185 = vst.msk [vmem:[%s811_s1 + $0x8] sm:$0xf] (!%p406_p5), %vm182_vm0, %v571_v2 }
  0x19   : > { %186 = vst.msk [vmem:[%s811_s1 + $0xc] sm:$0xf] (!%p406_p5), %vm182_vm0, %v573_v3  ;;  %187 = vst.msk [vmem:[%s811_s1 + $0x10] sm:$0xf] (!%p406_p5), %vm182_vm0, %v575_v4 }
  0x1a   : > { %188 = vst.msk [vmem:[%s811_s1 + $0x14] sm:$0xf] (!%p406_p5), %vm182_vm0, %v577_v5  ;;  %189 = vst.msk [vmem:[%s811_s1 + $0x18] sm:$0xf] (!%p406_p5), %vm182_vm0, %v582_v9 }
  0x1b   : > { %190 = vst.msk [vmem:[%s811_s1 + $0x1c] sm:$0xf] (!%p406_p5), %vm182_vm0, %v584_v10  ;;  %191 = vst.msk [vmem:[%s811_s1 + $0x20] sm:$0xf] (!%p406_p5), %vm182_vm0, %v586_v11 }
  0x1c   : > { %192 = vst.msk [vmem:[%s811_s1 + $0x24] sm:$0xf] (!%p406_p5), %vm182_vm0, %v591_v15  ;;  %193 = vst.msk [vmem:[%s811_s1 + $0x28] sm:$0xf] (!%p406_p5), %vm182_vm0, %v593_v16 }
  0x1d   : > { %194 = vst.msk [vmem:[%s811_s1 + $0x2c] sm:$0xf] (!%p406_p5), %vm182_vm0, %v595_v17  ;;  %195 = vst.msk [vmem:[%s811_s1 + $0x30] sm:$0xf] (!%p406_p5), %vm182_vm0, %v600_v21 }
  0x1e   : > { %196 = vst.msk [vmem:[%s811_s1 + $0x34] sm:$0xf] %vm182_vm0, %v602_v22  ;;  %197 = vst.msk [vmem:[%s811_s1 + $0x38] sm:$0xf] %vm182_vm0, %v604_v23 }
  0x1f   : > { %198 = vst.msk [vmem:[%s811_s1 + $0x3c] sm:$0xf] %vm182_vm0, %v609_v27 }
  0x20 PF: > { %p407_p6 = scmp.eq.s32.totalorder %s522_s6, 0 }
  0x21   : > { %v446_v32 = vld [vmem:[%s811_s1] sm:$0xff] (!%p407_p6)   ;;  %vm315_vm1 = vcmask (!%p407_p6), 60416  }
  0x22   : > { %202 = sbr.rel (%p407_p6) target bundleno = 51 (0x33), region = 32  ;;  %v477_v33 = vld [vmem:[%s811_s1 + $0x8] sm:$0xff] (!%p407_p6)   ;;  %v447_v35 = vunpack.c.l.bf16 (!%p407_p6), %v446_v32  ;;  %v448_v36 = vunpack.c.h.bf16 (!%p407_p6), %v446_v32 }
  0x23   : > { %v478_v34 = vld [vmem:[%s811_s1 + $0x10] sm:$0xff] (!%p407_p6)   ;;  %v451_v37 = vunpack.c.l.bf16 (!%p407_p6), %v477_v33  ;;  %v452_v38 = vunpack.c.h.bf16 (!%p407_p6), %v477_v33 }
  0x24   : > { %v479_v39 = vld [vmem:[%s811_s1 + $0x18] sm:$0xff] (!%p407_p6)   ;;  %v455_v40 = vunpack.c.l.bf16 (!%p407_p6), %v478_v34  ;;  %v456_v41 = vunpack.c.h.bf16 (!%p407_p6), %v478_v34  ;;  %v235_v44 = vmax.f32 (!%p407_p6), %v447_v35, %v162_v6  ;;  %v236_v45 = vmax.f32 (!%p407_p6), %v448_v36, %v163_v7 }
  0x25   : > { %v459_v42 = vunpack.c.l.bf16 (!%p407_p6), %v479_v39  ;;  %v460_v43 = vunpack.c.h.bf16 (!%p407_p6), %v479_v39  ;;  %v237_v46 = vmax.f32 (!%p407_p6), %v451_v37, %v164_v8  ;;  %v238_v47 = vmax.f32 (!%p407_p6), %v452_v38, %v165_v12  ;;  %v480_v52 = vld [vmem:[%s811_s1 + $0x20] sm:$0xff] (!%p407_p6)  }
  0x26   : > { %v239_v48 = vmax.f32 (!%p407_p6), %v455_v40, %v166_v13  ;;  %v240_v49 = vmax.f32 (!%p407_p6), %v456_v41, %v167_v14  ;;  %v481_v53 = vld [vmem:[%s811_s1 + $0x28] sm:$0xff] (!%p407_p6)   ;;  %v429_v54 = vpack.c.bf16 (!%p407_p6), %v235_v44, %v235_v44  ;;  %v430_v55 = vpack.c.bf16 (!%p407_p6), %v236_v45, %v236_v45  ;;  %v483_v59 = vld [vmem:[%s811_s1 + $0x38] sm:$0xff] (!%p407_p6)  }
  0x27   : > { %v241_v50 = vmax.f32 (!%p407_p6), %v459_v42, %v168_v18  ;;  %v242_v51 = vmax.f32 (!%p407_p6), %v460_v43, %v169_v19  ;;  %v431_v56 = vpack.c.bf16 (!%p407_p6), %v237_v46, %v237_v46  ;;  %v432_v57 = vpack.c.bf16 (!%p407_p6), %v238_v47, %v238_v47  ;;  %v482_v58 = vld [vmem:[%s811_s1 + $0x30] sm:$0xff] (!%p407_p6)  }
  0x28   : > { %v433_v60 = vpack.c.bf16 (!%p407_p6), %v239_v48, %v239_v48  ;;  %v434_v61 = vpack.c.bf16 (!%p407_p6), %v240_v49, %v240_v49  ;;  %316 = vst.msk [vmem:[%s811_s1] sm:$0xf] (!%p407_p6), %vm315_vm1, %v429_v54  ;;  %317 = vst.msk [vmem:[%s811_s1 + $0x4] sm:$0xf] (!%p407_p6), %vm315_vm1, %v430_v55  ;;  %v463_v0 = vunpack.c.l.bf16 (!%p407_p6), %v480_v52  ;;  %v464_v1 = vunpack.c.h.bf16 (!%p407_p6), %v480_v52 }
  0x29   : > { %v435_v62 = vpack.c.bf16 %v241_v50, %v241_v50  ;;  %v436_v63 = vpack.c.bf16 %v242_v51, %v242_v51  ;;  %318 = vst.msk [vmem:[%s811_s1 + $0x8] sm:$0xf] %vm315_vm1, %v431_v56  ;;  %319 = vst.msk [vmem:[%s811_s1 + $0xc] sm:$0xf] %vm315_vm1, %v432_v57  ;;  %v467_v2 = vunpack.c.l.bf16 %v481_v53  ;;  %v468_v3 = vunpack.c.h.bf16 %v481_v53 }
  0x2a   : > { %320 = vst.msk [vmem:[%s811_s1 + $0x10] sm:$0xf] %vm315_vm1, %v433_v60  ;;  %321 = vst.msk [vmem:[%s811_s1 + $0x14] sm:$0xf] %vm315_vm1, %v434_v61  ;;  %v471_v4 = vunpack.c.l.bf16 %v482_v58  ;;  %v472_v5 = vunpack.c.h.bf16 %v482_v58  ;;  %v475_v6 = vunpack.c.l.bf16 %v483_v59  ;;  %v476_v7 = vunpack.c.h.bf16 %v483_v59 }
  0x2b   : > { %322 = vst.msk [vmem:[%s811_s1 + $0x18] sm:$0xf] %vm315_vm1, %v435_v62  ;;  %323 = vst.msk [vmem:[%s811_s1 + $0x1c] sm:$0xf] %vm315_vm1, %v436_v63  ;;  %v243_v8 = vmax.f32 %v463_v0, %v170_v20  ;;  %v244_v9 = vmax.f32 %v464_v1, %v171_v24  ;;  %v245_v10 = vmax.f32 %v467_v2, %v172_v25 }
  0x2c   : > { %v246_v12 = vmax.f32 %v468_v3, %v173_v26  ;;  %v247_v13 = vmax.f32 %v471_v4, %v174_v28  ;;  %v248_v14 = vmax.f32 %v472_v5, %v175_v29  ;;  %v249_v18 = vmax.f32 %v475_v6, %v176_v30 }
  0x2d   : > { %v250_v11 = vmax.f32 %v476_v7, %v177_v31  ;;  %v437_v15 = vpack.c.bf16 %v243_v8, %v243_v8  ;;  %v438_v19 = vpack.c.bf16 %v244_v9, %v244_v9  ;;  %v439_v20 = vpack.c.bf16 %v245_v10, %v245_v10 }
  0x2e   : > { %v440_v16 = vpack.c.bf16 %v246_v12, %v246_v12  ;;  %v441_v24 = vpack.c.bf16 %v247_v13, %v247_v13  ;;  %v442_v25 = vpack.c.bf16 %v248_v14, %v248_v14  ;;  %v443_v17 = vpack.c.bf16 %v249_v18, %v249_v18 }
  0x2f   : > { %v444_v26 = vpack.c.bf16 %v250_v11, %v250_v11  ;;  %324 = vst.msk [vmem:[%s811_s1 + $0x20] sm:$0xf] %vm315_vm1, %v437_v15  ;;  %325 = vst.msk [vmem:[%s811_s1 + $0x24] sm:$0xf] %vm315_vm1, %v438_v19 }
  0x30   : > { %326 = vst.msk [vmem:[%s811_s1 + $0x28] sm:$0xf] %vm315_vm1, %v439_v20  ;;  %327 = vst.msk [vmem:[%s811_s1 + $0x2c] sm:$0xf] %vm315_vm1, %v440_v16 }
  0x31   : > { %328 = vst.msk [vmem:[%s811_s1 + $0x30] sm:$0xf] %vm315_vm1, %v441_v24  ;;  %329 = vst.msk [vmem:[%s811_s1 + $0x34] sm:$0xf] %vm315_vm1, %v442_v25 }
  0x32   : > { %330 = vst.msk [vmem:[%s811_s1 + $0x38] sm:$0xf] %vm315_vm1, %v443_v17  ;;  %331 = vst.msk [vmem:[%s811_s1 + $0x3c] sm:$0xf] %vm315_vm1, %v444_v26 }
  0x33 PF: > { %s11_s8 = sadd.s32 1, %s530_s8   ;;  %s812_s6 = smov %s526_s7 }
  0x34   : > { %p8_p7 = scmp.ge.s32.totalorder %s11_s8, 11   ;;  %s813_s7 = smov %s815_s9 }
  0x36   :  { %10 = sbr.rel (!%p8_p7) target bundleno = 2 (0x2), region = 62 }

// kernel: densenet_forward.14
= control target key start
LH: loop header
LB: loop body
LE: loop exit
PB: predicated region body
PF: predicated region fallthrough
CT: control target
= control target key end

     0   :  { %s2070_s24 = smov 0   ;;  %s2072_s25 = smov 0   ;;  %s2318_s0 = inlined_call_operand.vmem [shape: bf16[512,256], index: 0, kind: input, shape index: {}]   ;;  %s2319_s1 = inlined_call_operand.vmem [shape: bf16[256,128], index: 1, kind: input, shape index: {}]   ;;  %s2320_s2 = inlined_call_operand.vmem [shape: f32[1,128], index: 2, kind: input, shape index: {}]   ;;  %s2321_s3 = inlined_call_operand.vmem [shape: f32[1,256], index: 3, kind: input, shape index: {}, may-alias: {3,4}]   ;;  %s2322_s4 = inlined_call_operand.vmem [shape: f32[1,256], index: 4, kind: input, shape index: {}, may-alias: {3,4}]   ;;  %s2323_s5 = inlined_call_operand.vmem [shape: f32[1,128], index: 5, kind: input, shape index: {}]   ;;  %s2324_s6 = inlined_call_operand.vmem [shape: f32[1,128], index: 6, kind: input, shape index: {}]   ;;  %s2325_s7 = inlined_call_operand.vmem [shape: bf16[512,128], index: 7, kind: output, shape index: {}]  }
   0x1   :  { %s2074_s26 = smov 0  }
   0x2 LB: > { %s36_s3 = sadd.s32 1, %s2024_s25  ;;  %p1571_p0 = scmp.ge.s32.totalorder %s2028_s26, 1  ;;  %s2028_s26 = sphi %s2074_s26, %s17_s26   ;;  %s2024_s25 = sphi %s2072_s25, %s2327_s25   ;;  %s2020_s24 = sphi %s2070_s24, %s2326_s24  }
   0x3   : > { %p38_p1 = scmp.ge.s32.totalorder %s36_s3, 2  ;;  %p327_p2 = scmp.lt.s32.totalorder %s2028_s26, 3 }
   0x5   : > { %s2329_s3 = smov (%p38_p1, %s36_s3), 0  ;;  %p328_p3 = pnand %p1571_p0, %p327_p2 }
   0x6   : > { %v1942_v0 = vld [vmem:[%s2319_s1 + $0x40] sm:$0xff] (!%p328_p3)   ;;  %s1572_s28 = sshll.u32 (!%p328_p3), %s2020_s24, 5  ;;  %v1944_v2 = vld [vmem:[%s2319_s1 + $0x48] sm:$0xff] (!%p328_p3)   ;;  %v1946_v4 = vld [vmem:[%s2319_s1 + $0x50] sm:$0xff] (!%p328_p3)  }
   0x7   : > { %331 = sbr.rel (%p328_p3) target bundleno = 323 (0x143), region = 48  ;;  %v1943_v1 = vld [vmem:[%s2319_s1] sm:$0xff] (!%p328_p3)   ;;  %1790 = vmatprep.subr.bf16.mxu0 (!%p328_p3), %v1942_v0  ;;  %1902 = vmatprep.subr.bf16.mxu1 (!%p328_p3), %v1942_v0  ;;  %v1945_v3 = vld [vmem:[%s2319_s1 + $0x8] sm:$0xff] (!%p328_p3)   ;;  %p394_p4 = scmp.lt.s32.totalorder (!%p328_p3), %s1572_s28, 63  ;;  %v1947_v5 = vld [vmem:[%s2319_s1 + $0x10] sm:$0xff] (!%p328_p3)  }
   0x8   : > { %1791 = vmatpush3.bf16.msra.mxu0 (!%p328_p3), %v1943_v1  ;;  %1910 = vmatpush3.bf16.msra.mxu1 (!%p328_p3), %v1943_v1  ;;  %v1948_v6 = vld [vmem:[%s2319_s1 + $0x58] sm:$0xff] (!%p328_p3)   ;;  %v1950_v8 = vld [vmem:[%s2319_s1 + $0x60] sm:$0xff] (!%p328_p3)   ;;  %v1952_v10 = vld [vmem:[%s2319_s1 + $0x68] sm:$0xff] (!%p328_p3)  }
   0x9   : > { %1792 = vmatprep.subr.bf16.mxu0 (!%p328_p3), %v1944_v2  ;;  %1903 = vmatprep.subr.bf16.mxu1 (!%p328_p3), %v1944_v2  ;;  %v1949_v7 = vld [vmem:[%s2319_s1 + $0x18] sm:$0xff] (!%p328_p3)   ;;  %v1951_v9 = vld [vmem:[%s2319_s1 + $0x20] sm:$0xff] (!%p328_p3)   ;;  %v1953_v13 = vld [vmem:[%s2319_s1 + $0x28] sm:$0xff] (!%p328_p3)  }
   0xa   : > { %v1954_v14 = vld [vmem:[%s2319_s1 + $0x70] sm:$0xff] (!%p328_p3)   ;;  %v1956_v16 = vld [vmem:[%s2319_s1 + $0x78] sm:$0xff] (!%p328_p3)   ;;  %v2179_v51 = vld [vmem:[%s2320_s2] ss:$0 sm:$0xff] (!%p328_p3) }
   0xb   : > { %v1955_v15 = vld [vmem:[%s2319_s1 + $0x30] sm:$0xff] (!%p328_p3)   ;;  %v1957_v17 = vld [vmem:[%s2319_s1 + $0x38] sm:$0xff] (!%p328_p3)   ;;  %v2184_v57 = vld [vmem:[%s2323_s5] ss:$0 sm:$0xff] (!%p328_p3) }
   0xc   : > { %1793 = vmatpush3.bf16.msra.mxu0 (!%p328_p3), %v1945_v3  ;;  %1911 = vmatpush3.bf16.msra.mxu1 (!%p328_p3), %v1945_v3  ;;  %v2191_v0 = vld [vmem:[%s2324_s6] ss:$0 sm:$0xff] (!%p328_p3) }
   0xd   : > { %1794 = vmatprep.subr.bf16.mxu0 (!%p328_p3), %v1946_v4  ;;  %1904 = vmatprep.subr.bf16.mxu1 (!%p328_p3), %v1946_v4 }
   0xe   : > { %s2331_s28 = smov (!%p394_p4, %s1572_s28), 63 }
   0xf   : > { %s1662_s20 = sshll.u32 %s2331_s28, 3 }
  0x10   : > { %1795 = vmatpush3.bf16.msra.mxu0 %v1947_v5  ;;  %1912 = vmatpush3.bf16.msra.mxu1 %v1947_v5  ;;  %s2121_s4 = scalar_lea.vmem %s2318_s0, %s1662_s20 }
  0x11   : > { %1796 = vmatprep.subr.bf16.mxu0 %v1948_v6  ;;  %1905 = vmatprep.subr.bf16.mxu1 %v1948_v6  ;;  %v1960_v11 = vld [vmem:[%s2121_s4 + $0x4] ss:$8 sps:$4 sm:$0xff]   ;;  %v1958_v18 = vld [vmem:[%s2121_s4] ss:$8 sps:$4 sm:$0xff]   ;;  %v1964_v20 = vld [vmem:[%s2121_s4 + $0x14] ss:$8 sps:$4 sm:$0xff]  }
  0x12   : > { %v1963_v12 = vld [vmem:[%s2121_s4 + $0x84] ss:$8 sps:$4 sm:$0xff]   ;;  %862 = vmatprep.mubr.bf16.mxu0 %v1960_v11  ;;  %v1961_v19 = vld [vmem:[%s2121_s4 + $0x80] ss:$8 sps:$4 sm:$0xff]   ;;  %v1966_v21 = vld [vmem:[%s2121_s4 + $0x94] ss:$8 sps:$4 sm:$0xff]  }
  0x13   : > { %926 = vmatprep.mubr.bf16.mxu1 %v1963_v12  ;;  %v1968_v22 = vld [vmem:[%s2121_s4 + $0x10] ss:$8 sps:$4 sm:$0xff]   ;;  %v1970_v24 = vld [vmem:[%s2121_s4 + $0x24] ss:$8 sps:$4 sm:$0xff]   ;;  %v1974_v26 = vld [vmem:[%s2121_s4 + $0x20] ss:$8 sps:$4 sm:$0xff]  }
  0x14   : > { %1797 = vmatpush3.bf16.msra.mxu0 %v1949_v7  ;;  %1913 = vmatpush3.bf16.msra.mxu1 %v1949_v7  ;;  %v1969_v23 = vld [vmem:[%s2121_s4 + $0x90] ss:$8 sps:$4 sm:$0xff]   ;;  %v1972_v25 = vld [vmem:[%s2121_s4 + $0xa4] ss:$8 sps:$4 sm:$0xff]   ;;  %v1975_v27 = vld [vmem:[%s2121_s4 + $0xa0] ss:$8 sps:$4 sm:$0xff]  }
  0x15   : > { %1798 = vmatprep.subr.bf16.mxu0 %v1950_v8  ;;  %1906 = vmatprep.subr.bf16.mxu1 %v1950_v8  ;;  %v1976_v28 = vld [vmem:[%s2121_s4 + $0x34] ss:$8 sps:$4 sm:$0xff]   ;;  %v1980_v30 = vld [vmem:[%s2121_s4 + $0x30] ss:$8 sps:$4 sm:$0xff]   ;;  %v1982_v32 = vld [vmem:[%s2121_s4 + $0x44] ss:$8 sps:$4 sm:$0xff]  }
  0x16   : > { %v1978_v29 = vld [vmem:[%s2121_s4 + $0xb4] ss:$8 sps:$4 sm:$0xff]   ;;  %v1981_v31 = vld [vmem:[%s2121_s4 + $0xb0] ss:$8 sps:$4 sm:$0xff]   ;;  %v1984_v33 = vld [vmem:[%s2121_s4 + $0xc4] ss:$8 sps:$4 sm:$0xff]  }
  0x17   : > { %v1986_v34 = vld [vmem:[%s2121_s4 + $0x40] ss:$8 sps:$4 sm:$0xff]   ;;  %v1988_v36 = vld [vmem:[%s2121_s4 + $0x54] ss:$8 sps:$4 sm:$0xff]   ;;  %v1992_v38 = vld [vmem:[%s2121_s4 + $0x50] ss:$8 sps:$4 sm:$0xff]  }
  0x18   : > { %1799 = vmatpush3.bf16.msra.mxu0 %v1951_v9  ;;  %1914 = vmatpush3.bf16.msra.mxu1 %v1951_v9  ;;  %v1987_v35 = vld [vmem:[%s2121_s4 + $0xc0] ss:$8 sps:$4 sm:$0xff]   ;;  %v1990_v37 = vld [vmem:[%s2121_s4 + $0xd4] ss:$8 sps:$4 sm:$0xff]   ;;  %v1993_v39 = vld [vmem:[%s2121_s4 + $0xd0] ss:$8 sps:$4 sm:$0xff]  }
  0x19   : > { %1800 = vmatprep.subr.bf16.mxu0 %v1952_v10  ;;  %1907 = vmatprep.subr.bf16.mxu1 %v1952_v10  ;;  %v1994_v40 = vld [vmem:[%s2121_s4 + $0x64] ss:$8 sps:$4 sm:$0xff]   ;;  %v1998_v42 = vld [vmem:[%s2121_s4 + $0x60] ss:$8 sps:$4 sm:$0xff]   ;;  %v2000_v44 = vld [vmem:[%s2121_s4 + $0x74] ss:$8 sps:$4 sm:$0xff]  }
  0x1a   : > { %v1996_v41 = vld [vmem:[%s2121_s4 + $0xe4] ss:$8 sps:$4 sm:$0xff]   ;;  %v1999_v43 = vld [vmem:[%s2121_s4 + $0xe0] ss:$8 sps:$4 sm:$0xff]   ;;  %v2002_v45 = vld [vmem:[%s2121_s4 + $0xf4] ss:$8 sps:$4 sm:$0xff]  }
  0x1b   : > { %v2004_v46 = vld [vmem:[%s2121_s4 + $0x70] ss:$8 sps:$4 sm:$0xff]  }
  0x1c   : > { %1801 = vmatpush3.bf16.msra.mxu0 %v1953_v13  ;;  %1915 = vmatpush3.bf16.msra.mxu1 %v1953_v13  ;;  %v2005_v47 = vld [vmem:[%s2121_s4 + $0xf0] ss:$8 sps:$4 sm:$0xff]   ;;  %s1576_s4 = sshll.u32 %s2331_s28, 2 }
  0x1d   : > { %1802 = vmatprep.subr.bf16.mxu0 %v1954_v14  ;;  %1908 = vmatprep.subr.bf16.mxu1 %v1954_v14  ;;  %s2207_s28 = scalar_lea.vmem %s2325_s7, %s1576_s4 }
  0x20   : > { %1803 = vmatpush3.bf16.msra.mxu0 %v1955_v15  ;;  %1916 = vmatpush3.bf16.msra.mxu1 %v1955_v15 }
  0x21   : > { %1804 = vmatprep.subr.bf16.mxu0 %v1956_v16  ;;  %1909 = vmatprep.subr.bf16.mxu1 %v1956_v16 }
  0x24   : > { %1805 = vmatpush3.bf16.msra.mxu0 %v1957_v17  ;;  %1917 = vmatpush3.bf16.msra.mxu1 %v1957_v17 }
  0x27   : > { %863 = vmatmul.mubr.bf16.vlgmr.msra.gmra.mrb[0].mxu0 %v1958_v18  ;;  %927 = vmatmul.mubr.bf16.vlgmr.msra.gmra.mrb[0].mxu1 %v1961_v19 }
  0x28   : > { %870 = vmatprep.mubr.bf16.mxu0 %v1964_v20  ;;  %934 = vmatprep.mubr.bf16.mxu1 %v1966_v21 }
  0x2f   : > { %871 = vmatmul.mubr.bf16.gmra.mrb[4].mxu0 %v1968_v22  ;;  %935 = vmatmul.mubr.bf16.gmra.mrb[4].mxu1 %v1969_v23 }
  0x30   : > { %878 = vmatprep.mubr.bf16.mxu0 %v1970_v24  ;;  %942 = vmatprep.mubr.bf16.mxu1 %v1972_v25 }
  0x37   : > { %879 = vmatmul.mubr.bf16.gmra.mrb[8].mxu0 %v1974_v26  ;;  %943 = vmatmul.mubr.bf16.gmra.mrb[8].mxu1 %v1975_v27 }
  0x38   : > { %886 = vmatprep.mubr.bf16.mxu0 %v1976_v28  ;;  %950 = vmatprep.mubr.bf16.mxu1 %v1978_v29 }
  0x3f   : > { %887 = vmatmul.mubr.bf16.gmra.mrb[12].mxu0 %v1980_v30  ;;  %951 = vmatmul.mubr.bf16.gmra.mrb[12].mxu1 %v1981_v31 }
  0x40   : > { %894 = vmatprep.mubr.bf16.mxu0 %v1982_v32  ;;  %958 = vmatprep.mubr.bf16.mxu1 %v1984_v33 }
  0x47   : > { %895 = vmatmul.mubr.bf16.gmra.mrb[16].mxu0 %v1986_v34  ;;  %959 = vmatmul.mubr.bf16.gmra.mrb[16].mxu1 %v1987_v35 }
  0x48   : > { %902 = vmatprep.mubr.bf16.mxu0 %v1988_v36  ;;  %966 = vmatprep.mubr.bf16.mxu1 %v1990_v37 }
  0x4f   : > { %903 = vmatmul.mubr.bf16.gmra.mrb[20].mxu0 %v1992_v38  ;;  %967 = vmatmul.mubr.bf16.gmra.mrb[20].mxu1 %v1993_v39 }
  0x50   : > { %910 = vmatprep.mubr.bf16.mxu0 %v1994_v40  ;;  %974 = vmatprep.mubr.bf16.mxu1 %v1996_v41 }
  0x57   : > { %911 = vmatmul.mubr.bf16.gmra.mrb[24].mxu0 %v1998_v42  ;;  %975 = vmatmul.mubr.bf16.gmra.mrb[24].mxu1 %v1999_v43 }
  0x58   : > { %918 = vmatprep.mubr.bf16.mxu0 %v2000_v44  ;;  %982 = vmatprep.mubr.bf16.mxu1 %v2002_v45 }
  0x5f   : > { %919 = vmatmul.mubr.bf16.gmra.mrb[28].mxu0 %v2004_v46  ;;  %983 = vmatmul.mubr.bf16.gmra.mrb[28].mxu1 %v2005_v47 }
  0xfa   : > { %v1806_v48 = vpop.f32.mrb[0].mxu0  ;;  %v1854_v49 = vpop.f32.mrb[0].mxu1 }
  0xfb   : > { %v1807_v50 = vpop.f32.mrb[1].mxu0  ;;  %v1855_v52 = vpop.f32.mrb[1].mxu1 }
  0xfc   : > { %v1808_v53 = vadd.f32 %v1807_v50, %v1806_v48  ;;  %v1856_v54 = vadd.f32 %v1855_v52, %v1854_v49  ;;  %v1809_v55 = vpop.f32.mrb[2].mxu0  ;;  %v1857_v56 = vpop.f32.mrb[2].mxu1 }
  0xfd   : > { %v1810_v58 = vpop.f32.mrb[3].mxu0  ;;  %v1858_v59 = vpop.f32.mrb[3].mxu1 }
  0xfe   : > { %v1097_v60 = vadd.f32 %v1808_v53, %v2179_v51  ;;  %v1113_v61 = vadd.f32 %v1856_v54, %v2179_v51  ;;  %v1811_v62 = vadd.f32 %v1810_v58, %v1809_v55  ;;  %v1859_v63 = vadd.f32 %v1858_v59, %v1857_v56 }
 0x100   : > { %v1136_v1 = vmul.f32 %v2184_v57, %v1097_v60  ;;  %v1152_v2 = vmul.f32 %v2184_v57, %v1113_v61  ;;  %v1098_v3 = vadd.f32 %v1811_v62, %v2179_v51  ;;  %v1114_v4 = vadd.f32 %v1859_v63, %v2179_v51 }
 0x102   : > { %v1175_v5 = vadd.f32 %v2191_v0, %v1136_v1  ;;  %v1191_v6 = vadd.f32 %v2191_v0, %v1152_v2  ;;  %v1137_v7 = vmul.f32 %v2184_v57, %v1098_v3  ;;  %v1153_v8 = vmul.f32 %v2184_v57, %v1114_v4  ;;  %v1812_v9 = vpop.f32.mrb[4].mxu0  ;;  %v1860_v10 = vpop.f32.mrb[4].mxu1 }
 0x103   : > { %v1813_v11 = vpop.f32.mrb[5].mxu0  ;;  %v1861_v12 = vpop.f32.mrb[5].mxu1 }
 0x104   : > { %v1176_v13 = vadd.f32 %v2191_v0, %v1137_v7  ;;  %v1192_v14 = vadd.f32 %v2191_v0, %v1153_v8  ;;  %v1815_v15 = vpop.f32.mrb[6].mxu0  ;;  %v1863_v16 = vpop.f32.mrb[6].mxu1  ;;  %v1207_v17 = vmax.f32 %v1175_v5, 0.0  ;;  %v1223_v18 = vmax.f32 %v1191_v6, 0.0 }
 0x105   : > { %v1814_v19 = vadd.f32 %v1813_v11, %v1812_v9  ;;  %v1862_v20 = vadd.f32 %v1861_v12, %v1860_v10  ;;  %v1816_v21 = vpop.f32.mrb[7].mxu0  ;;  %v1864_v22 = vpop.f32.mrb[7].mxu1 }
 0x106   : > { %v1208_v23 = vmax.f32 %v1176_v13, 0.0  ;;  %v1224_v24 = vmax.f32 %v1192_v14, 0.0  ;;  %v1817_v25 = vadd.f32 %v1816_v21, %v1815_v15  ;;  %v1865_v26 = vadd.f32 %v1864_v22, %v1863_v16 }
 0x107   : > { %v1099_v27 = vadd.f32 %v1814_v19, %v2179_v51  ;;  %v1115_v28 = vadd.f32 %v1862_v20, %v2179_v51 }
 0x108   : > { %v1698_v29 = vpack.c.bf16 %v1208_v23, %v1207_v17  ;;  %v1738_v30 = vpack.c.bf16 %v1224_v24, %v1223_v18  ;;  %v1100_v31 = vadd.f32 %v1817_v25, %v2179_v51  ;;  %v1116_v32 = vadd.f32 %v1865_v26, %v2179_v51 }
 0x109   : > { %v1138_v33 = vmul.f32 %v2184_v57, %v1099_v27  ;;  %v1154_v34 = vmul.f32 %v2184_v57, %v1115_v28 }
 0x10a   : > { %1699 = vst [vmem:[%s2207_s28] sm:$0xff] %v1698_v29   ;;  %1782 = vst [vmem:[%s2207_s28 + $0x40] sm:$0xff] %v1738_v30   ;;  %v1139_v35 = vmul.f32 %v2184_v57, %v1100_v31  ;;  %v1155_v36 = vmul.f32 %v2184_v57, %v1116_v32  ;;  %v1818_v37 = vpop.f32.mrb[8].mxu0  ;;  %v1866_v38 = vpop.f32.mrb[8].mxu1 }
 0x10b   : > { %v1177_v39 = vadd.f32 %v2191_v0, %v1138_v33  ;;  %v1193_v40 = vadd.f32 %v2191_v0, %v1154_v34  ;;  %v1819_v41 = vpop.f32.mrb[9].mxu0  ;;  %v1867_v42 = vpop.f32.mrb[9].mxu1 }
 0x10c   : > { %v1178_v43 = vadd.f32 %v2191_v0, %v1139_v35  ;;  %v1194_v44 = vadd.f32 %v2191_v0, %v1155_v36  ;;  %v1820_v45 = vadd.f32 %v1819_v41, %v1818_v37  ;;  %v1868_v46 = vadd.f32 %v1867_v42, %v1866_v38  ;;  %v1821_v47 = vpop.f32.mrb[10].mxu0  ;;  %v1869_v48 = vpop.f32.mrb[10].mxu1 }
 0x10d   : > { %v1209_v49 = vmax.f32 %v1177_v39, 0.0  ;;  %v1225_v50 = vmax.f32 %v1193_v40, 0.0  ;;  %v1822_v52 = vpop.f32.mrb[11].mxu0  ;;  %v1870_v53 = vpop.f32.mrb[11].mxu1 }
 0x10e   : > { %v1210_v54 = vmax.f32 %v1178_v43, 0.0  ;;  %v1226_v55 = vmax.f32 %v1194_v44, 0.0  ;;  %v1101_v56 = vadd.f32 %v1820_v45, %v2179_v51  ;;  %v1117_v58 = vadd.f32 %v1868_v46, %v2179_v51 }
 0x10f   : > { %v1823_v59 = vadd.f32 %v1822_v52, %v1821_v47  ;;  %v1871_v60 = vadd.f32 %v1870_v53, %v1869_v48 }
 0x110   : > { %v1703_v61 = vpack.c.bf16 %v1210_v54, %v1209_v49  ;;  %v1743_v62 = vpack.c.bf16 %v1226_v55, %v1225_v50  ;;  %v1140_v63 = vmul.f32 %v2184_v57, %v1101_v56  ;;  %v1156_v1 = vmul.f32 %v2184_v57, %v1117_v58 }
 0x111   : > { %v1102_v2 = vadd.f32 %v1823_v59, %v2179_v51  ;;  %v1118_v3 = vadd.f32 %v1871_v60, %v2179_v51 }
 0x112   : > { %1775 = vst [vmem:[%s2207_s28 + $0x8] sm:$0xff] %v1703_v61   ;;  %1783 = vst [vmem:[%s2207_s28 + $0x48] sm:$0xff] %v1743_v62   ;;  %v1824_v4 = vpop.f32.mrb[12].mxu0  ;;  %v1872_v5 = vpop.f32.mrb[12].mxu1  ;;  %v1179_v6 = vadd.f32 %v2191_v0, %v1140_v63  ;;  %v1195_v7 = vadd.f32 %v2191_v0, %v1156_v1 }
 0x113   : > { %v1141_v8 = vmul.f32 %v2184_v57, %v1102_v2  ;;  %v1157_v9 = vmul.f32 %v2184_v57, %v1118_v3  ;;  %v1825_v10 = vpop.f32.mrb[13].mxu0  ;;  %v1873_v11 = vpop.f32.mrb[13].mxu1 }
 0x114   : > { %v1826_v12 = vadd.f32 %v1825_v10, %v1824_v4  ;;  %v1874_v13 = vadd.f32 %v1873_v11, %v1872_v5  ;;  %v1827_v14 = vpop.f32.mrb[14].mxu0  ;;  %v1875_v15 = vpop.f32.mrb[14].mxu1  ;;  %v1211_v24 = vmax.f32 %v1179_v6, 0.0  ;;  %v1227_v25 = vmax.f32 %v1195_v7, 0.0 }
 0x115   : > { %v1180_v16 = vadd.f32 %v2191_v0, %v1141_v8  ;;  %v1196_v17 = vadd.f32 %v2191_v0, %v1157_v9  ;;  %v1828_v18 = vpop.f32.mrb[15].mxu0  ;;  %v1876_v19 = vpop.f32.mrb[15].mxu1 }
 0x116   : > { %v1103_v20 = vadd.f32 %v1826_v12, %v2179_v51  ;;  %v1119_v21 = vadd.f32 %v1874_v13, %v2179_v51  ;;  %v1829_v22 = vadd.f32 %v1828_v18, %v1827_v14  ;;  %v1877_v23 = vadd.f32 %v1876_v19, %v1875_v15 }
 0x117   : > { %v1212_v26 = vmax.f32 %v1180_v16, 0.0  ;;  %v1228_v27 = vmax.f32 %v1196_v17, 0.0 }
 0x118   : > { %v1142_v28 = vmul.f32 %v2184_v57, %v1103_v20  ;;  %v1158_v29 = vmul.f32 %v2184_v57, %v1119_v21  ;;  %v1104_v30 = vadd.f32 %v1829_v22, %v2179_v51  ;;  %v1120_v31 = vadd.f32 %v1877_v23, %v2179_v51 }
 0x119   : > { %v1708_v32 = vpack.c.bf16 %v1212_v26, %v1211_v24  ;;  %v1748_v33 = vpack.c.bf16 %v1228_v27, %v1227_v25 }
 0x11a   : > { %v1181_v34 = vadd.f32 %v2191_v0, %v1142_v28  ;;  %v1197_v35 = vadd.f32 %v2191_v0, %v1158_v29  ;;  %v1143_v36 = vmul.f32 %v2184_v57, %v1104_v30  ;;  %v1159_v37 = vmul.f32 %v2184_v57, %v1120_v31  ;;  %v1830_v38 = vpop.f32.mrb[16].mxu0  ;;  %v1878_v39 = vpop.f32.mrb[16].mxu1 }
 0x11b   : > { %1776 = vst [vmem:[%s2207_s28 + $0x10] sm:$0xff] %v1708_v32   ;;  %1784 = vst [vmem:[%s2207_s28 + $0x50] sm:$0xff] %v1748_v33   ;;  %v1831_v40 = vpop.f32.mrb[17].mxu0  ;;  %v1879_v41 = vpop.f32.mrb[17].mxu1 }
 0x11c   : > { %v1182_v42 = vadd.f32 %v2191_v0, %v1143_v36  ;;  %v1198_v43 = vadd.f32 %v2191_v0, %v1159_v37  ;;  %v1833_v44 = vpop.f32.mrb[18].mxu0  ;;  %v1881_v45 = vpop.f32.mrb[18].mxu1  ;;  %v1213_v46 = vmax.f32 %v1181_v34, 0.0  ;;  %v1229_v47 = vmax.f32 %v1197_v35, 0.0 }
 0x11d   : > { %v1832_v48 = vadd.f32 %v1831_v40, %v1830_v38  ;;  %v1880_v49 = vadd.f32 %v1879_v41, %v1878_v39  ;;  %v1834_v50 = vpop.f32.mrb[19].mxu0  ;;  %v1882_v52 = vpop.f32.mrb[19].mxu1 }
 0x11e   : > { %v1214_v53 = vmax.f32 %v1182_v42, 0.0  ;;  %v1230_v54 = vmax.f32 %v1198_v43, 0.0  ;;  %v1835_v55 = vadd.f32 %v1834_v50, %v1833_v44  ;;  %v1883_v56 = vadd.f32 %v1882_v52, %v1881_v45 }
 0x11f   : > { %v1105_v58 = vadd.f32 %v1832_v48, %v2179_v51  ;;  %v1121_v59 = vadd.f32 %v1880_v49, %v2179_v51 }
 0x120   : > { %v1713_v60 = vpack.c.bf16 %v1214_v53, %v1213_v46  ;;  %v1753_v61 = vpack.c.bf16 %v1230_v54, %v1229_v47  ;;  %v1106_v62 = vadd.f32 %v1835_v55, %v2179_v51  ;;  %v1122_v63 = vadd.f32 %v1883_v56, %v2179_v51 }
 0x121   : > { %v1144_v1 = vmul.f32 %v2184_v57, %v1105_v58  ;;  %v1160_v2 = vmul.f32 %v2184_v57, %v1121_v59 }
 0x122   : > { %1777 = vst [vmem:[%s2207_s28 + $0x18] sm:$0xff] %v1713_v60   ;;  %1785 = vst [vmem:[%s2207_s28 + $0x58] sm:$0xff] %v1753_v61   ;;  %v1145_v3 = vmul.f32 %v2184_v57, %v1106_v62  ;;  %v1161_v4 = vmul.f32 %v2184_v57, %v1122_v63  ;;  %v1836_v5 = vpop.f32.mrb[20].mxu0  ;;  %v1884_v6 = vpop.f32.mrb[20].mxu1 }
 0x123   : > { %v1183_v7 = vadd.f32 %v2191_v0, %v1144_v1  ;;  %v1199_v8 = vadd.f32 %v2191_v0, %v1160_v2  ;;  %v1837_v9 = vpop.f32.mrb[21].mxu0  ;;  %v1885_v10 = vpop.f32.mrb[21].mxu1 }
 0x124   : > { %v1184_v11 = vadd.f32 %v2191_v0, %v1145_v3  ;;  %v1200_v12 = vadd.f32 %v2191_v0, %v1161_v4  ;;  %v1838_v13 = vadd.f32 %v1837_v9, %v1836_v5  ;;  %v1886_v14 = vadd.f32 %v1885_v10, %v1884_v6  ;;  %v1839_v15 = vpop.f32.mrb[22].mxu0  ;;  %v1887_v16 = vpop.f32.mrb[22].mxu1 }
 0x125   : > { %v1215_v17 = vmax.f32 %v1183_v7, 0.0  ;;  %v1231_v18 = vmax.f32 %v1199_v8, 0.0  ;;  %v1840_v19 = vpop.f32.mrb[23].mxu0  ;;  %v1888_v20 = vpop.f32.mrb[23].mxu1 }
 0x126   : > { %v1216_v21 = vmax.f32 %v1184_v11, 0.0  ;;  %v1232_v22 = vmax.f32 %v1200_v12, 0.0  ;;  %v1107_v23 = vadd.f32 %v1838_v13, %v2179_v51  ;;  %v1123_v24 = vadd.f32 %v1886_v14, %v2179_v51 }
 0x127   : > { %v1841_v25 = vadd.f32 %v1840_v19, %v1839_v15  ;;  %v1889_v26 = vadd.f32 %v1888_v20, %v1887_v16 }
 0x128   : > { %v1718_v27 = vpack.c.bf16 %v1216_v21, %v1215_v17  ;;  %v1758_v28 = vpack.c.bf16 %v1232_v22, %v1231_v18  ;;  %v1146_v29 = vmul.f32 %v2184_v57, %v1107_v23  ;;  %v1162_v30 = vmul.f32 %v2184_v57, %v1123_v24 }
 0x129   : > { %v1108_v31 = vadd.f32 %v1841_v25, %v2179_v51  ;;  %v1124_v32 = vadd.f32 %v1889_v26, %v2179_v51 }
 0x12a   : > { %1778 = vst [vmem:[%s2207_s28 + $0x20] sm:$0xff] %v1718_v27   ;;  %1786 = vst [vmem:[%s2207_s28 + $0x60] sm:$0xff] %v1758_v28   ;;  %v1842_v33 = vpop.f32.mrb[24].mxu0  ;;  %v1890_v34 = vpop.f32.mrb[24].mxu1  ;;  %v1185_v35 = vadd.f32 %v2191_v0, %v1146_v29  ;;  %v1201_v36 = vadd.f32 %v2191_v0, %v1162_v30 }
 0x12b   : > { %v1147_v37 = vmul.f32 %v2184_v57, %v1108_v31  ;;  %v1163_v38 = vmul.f32 %v2184_v57, %v1124_v32  ;;  %v1843_v39 = vpop.f32.mrb[25].mxu0  ;;  %v1891_v40 = vpop.f32.mrb[25].mxu1 }
 0x12c   : > { %v1844_v41 = vadd.f32 %v1843_v39, %v1842_v33  ;;  %v1892_v42 = vadd.f32 %v1891_v40, %v1890_v34  ;;  %v1845_v43 = vpop.f32.mrb[26].mxu0  ;;  %v1893_v44 = vpop.f32.mrb[26].mxu1  ;;  %v1217_v54 = vmax.f32 %v1185_v35, 0.0  ;;  %v1233_v55 = vmax.f32 %v1201_v36, 0.0 }
 0x12d   : > { %v1186_v45 = vadd.f32 %v2191_v0, %v1147_v37  ;;  %v1202_v46 = vadd.f32 %v2191_v0, %v1163_v38  ;;  %v1846_v47 = vpop.f32.mrb[27].mxu0  ;;  %v1894_v48 = vpop.f32.mrb[27].mxu1 }
 0x12e   : > { %v1109_v49 = vadd.f32 %v1844_v41, %v2179_v51  ;;  %v1125_v50 = vadd.f32 %v1892_v42, %v2179_v51  ;;  %v1847_v52 = vadd.f32 %v1846_v47, %v1845_v43  ;;  %v1895_v53 = vadd.f32 %v1894_v48, %v1893_v44 }
 0x12f   : > { %v1218_v56 = vmax.f32 %v1186_v45, 0.0  ;;  %v1234_v58 = vmax.f32 %v1202_v46, 0.0 }
 0x130   : > { %v1148_v59 = vmul.f32 %v2184_v57, %v1109_v49  ;;  %v1164_v60 = vmul.f32 %v2184_v57, %v1125_v50  ;;  %v1110_v61 = vadd.f32 %v1847_v52, %v2179_v51  ;;  %v1126_v62 = vadd.f32 %v1895_v53, %v2179_v51 }
 0x131   : > { %v1723_v63 = vpack.c.bf16 %v1218_v56, %v1217_v54  ;;  %v1763_v1 = vpack.c.bf16 %v1234_v58, %v1233_v55 }
 0x132   : > { %v1187_v2 = vadd.f32 %v2191_v0, %v1148_v59  ;;  %v1203_v3 = vadd.f32 %v2191_v0, %v1164_v60  ;;  %v1149_v4 = vmul.f32 %v2184_v57, %v1110_v61  ;;  %v1165_v5 = vmul.f32 %v2184_v57, %v1126_v62  ;;  %v1848_v6 = vpop.f32.mrb[28].mxu0  ;;  %v1896_v7 = vpop.f32.mrb[28].mxu1 }
 0x133   : > { %1779 = vst [vmem:[%s2207_s28 + $0x28] sm:$0xff] %v1723_v63   ;;  %1787 = vst [vmem:[%s2207_s28 + $0x68] sm:$0xff] %v1763_v1   ;;  %v1849_v8 = vpop.f32.mrb[29].mxu0  ;;  %v1897_v9 = vpop.f32.mrb[29].mxu1 }
 0x134   : > { %v1188_v10 = vadd.f32 %v2191_v0, %v1149_v4  ;;  %v1204_v11 = vadd.f32 %v2191_v0, %v1165_v5  ;;  %v1851_v12 = vpop.f32.mrb[30].mxu0  ;;  %v1899_v13 = vpop.f32.mrb[30].mxu1  ;;  %v1219_v14 = vmax.f32 %v1187_v2, 0.0  ;;  %v1235_v15 = vmax.f32 %v1203_v3, 0.0 }
 0x135   : > { %v1850_v16 = vadd.f32 %v1849_v8, %v1848_v6  ;;  %v1898_v17 = vadd.f32 %v1897_v9, %v1896_v7  ;;  %v1852_v18 = vpop.f32.mrb[31].mxu0  ;;  %v1900_v19 = vpop.f32.mrb[31].mxu1 }
 0x136   : > { %v1220_v20 = vmax.f32 %v1188_v10, 0.0  ;;  %v1236_v21 = vmax.f32 %v1204_v11, 0.0  ;;  %v1853_v22 = vadd.f32 %v1852_v18, %v1851_v12  ;;  %v1901_v23 = vadd.f32 %v1900_v19, %v1899_v13 }
 0x137   : > { %v1111_v24 = vadd.f32 %v1850_v16, %v2179_v51  ;;  %v1127_v25 = vadd.f32 %v1898_v17, %v2179_v51 }
 0x138   : > { %v1728_v26 = vpack.c.bf16 %v1220_v20, %v1219_v14  ;;  %v1768_v27 = vpack.c.bf16 %v1236_v21, %v1235_v15  ;;  %v1112_v28 = vadd.f32 %v1853_v22, %v2179_v51  ;;  %v1128_v29 = vadd.f32 %v1901_v23, %v2179_v51 }
 0x139   : > { %v1150_v30 = vmul.f32 %v2184_v57, %v1111_v24  ;;  %v1166_v31 = vmul.f32 %v2184_v57, %v1127_v25 }
 0x13a   : > { %1780 = vst [vmem:[%s2207_s28 + $0x30] sm:$0xff] %v1728_v26   ;;  %1788 = vst [vmem:[%s2207_s28 + $0x70] sm:$0xff] %v1768_v27   ;;  %v1151_v32 = vmul.f32 %v2184_v57, %v1112_v28  ;;  %v1167_v33 = vmul.f32 %v2184_v57, %v1128_v29 }
 0x13b   : > { %v1189_v34 = vadd.f32 %v2191_v0, %v1150_v30  ;;  %v1205_v35 = vadd.f32 %v2191_v0, %v1166_v31 }
 0x13c   : > { %v1190_v36 = vadd.f32 %v2191_v0, %v1151_v32  ;;  %v1206_v51 = vadd.f32 %v2191_v0, %v1167_v33 }
 0x13d   : > { %v1221_v37 = vmax.f32 %v1189_v34, 0.0  ;;  %v1237_v38 = vmax.f32 %v1205_v35, 0.0 }
 0x13e   : > { %v1222_v39 = vmax.f32 %v1190_v36, 0.0  ;;  %v1238_v40 = vmax.f32 %v1206_v51, 0.0 }
 0x140   : > { %v1733_v41 = vpack.c.bf16 %v1222_v39, %v1221_v37  ;;  %v1773_v42 = vpack.c.bf16 %v1238_v40, %v1237_v38 }
 0x142   : > { %1781 = vst [vmem:[%s2207_s28 + $0x38] sm:$0xff] %v1733_v41   ;;  %1789 = vst [vmem:[%s2207_s28 + $0x78] sm:$0xff] %v1773_v42  }
 0x143 PF: > { %s17_s26 = sadd.s32 1, %s2028_s26   ;;  %s2326_s24 = smov %s2024_s25 }
 0x144   : > { %p14_p5 = scmp.ge.s32.totalorder %s17_s26, 4   ;;  %s2327_s25 = smov %s2329_s3 }
 0x146   :  { %16 = sbr.rel (!%p14_p5) target bundleno = 2 (0x2), region = 104 }

// kernel: densenet_forward.16
= control target key start
LH: loop header
LB: loop body
LE: loop exit
PB: predicated region body
PF: predicated region fallthrough
CT: control target
= control target key end

     0   :  { %s966_s1 = inlined_call_operand.vmem [shape: bf16[128,128], index: 1, kind: input, shape index: {}]   ;;  %s967_s0 = inlined_call_operand.vmem [shape: bf16[128,128], index: 0, kind: input, shape index: {}]   ;;  %s968_s3 = inlined_call_operand.vmem [shape: f32[1,128], index: 3, kind: input, shape index: {}]   ;;  %s969_s4 = inlined_call_operand.vmem [shape: f32[1,128], index: 4, kind: input, shape index: {}]   ;;  %s970_s2 = inlined_call_operand.vmem [shape: f32[1,128], index: 2, kind: input, shape index: {}]   ;;  %s971_s5 = inlined_call_operand.vmem [shape: f32[1,128], index: 5, kind: input, shape index: {}]   ;;  %s972_s6 = inlined_call_operand.vmem [shape: f32[1,128], index: 6, kind: input, shape index: {}]   ;;  %s973_s7 = inlined_call_operand.vmem [shape: bf16[128,128], index: 7, kind: output, shape index: {}]  }
   0x1   :  { %v741_v0 = vld [vmem:[%s966_s1] sm:$0xff]   ;;  %v742_v1 = vld [vmem:[%s966_s1 + $0x8] sm:$0xff]   ;;  %v743_v2 = vld [vmem:[%s966_s1 + $0x10] sm:$0xff]  }
   0x2   :  { %693 = vmatprep.subr.bf16.mxu0 %v741_v0  ;;  %725 = vmatprep.subr.bf16.mxu1 %v741_v0  ;;  %v744_v3 = vld [vmem:[%s966_s1 + $0x18] sm:$0xff]   ;;  %v592_v4 = vld [vmem:[%s967_s0] sm:$0xff]   ;;  %v663_v9 = vld [vmem:[%s967_s0 + $0x8] sm:$0xff]  }
   0x3   :  { %694 = vmatpush3.bf16.msra.mxu0 %v741_v0  ;;  %733 = vmatpush3.bf16.msra.mxu1 %v741_v0  ;;  %v807_v5 = vld [vmem:[%s968_s3] ss:$0 sm:$0xff]  ;;  %v593_v6 = vunpack.c.l.bf16 %v592_v4  ;;  %v594_v7 = vunpack.c.h.bf16 %v592_v4  ;;  %v667_v13 = vld [vmem:[%s967_s0 + $0x28] sm:$0xff]   ;;  %v664_v16 = vld [vmem:[%s967_s0 + $0x10] sm:$0xff]   ;;  %v597_v20 = vunpack.c.l.bf16 %v663_v9  ;;  %v598_v21 = vunpack.c.h.bf16 %v663_v9 }
   0x4   :  { %695 = vmatprep.subr.bf16.mxu0 %v742_v1  ;;  %726 = vmatprep.subr.bf16.mxu1 %v742_v1  ;;  %v666_v8 = vld [vmem:[%s967_s0 + $0x20] sm:$0xff]   ;;  %v613_v24 = vunpack.c.l.bf16 %v667_v13  ;;  %v614_v25 = vunpack.c.h.bf16 %v667_v13  ;;  %v601_v28 = vunpack.c.l.bf16 %v664_v16  ;;  %v668_v31 = vld [vmem:[%s967_s0 + $0x30] sm:$0xff]   ;;  %v746_v32 = vld [vmem:[%s966_s1 + $0x28] sm:$0xff]   ;;  %v602_v40 = vunpack.c.h.bf16 %v664_v16 }
   0x5   :  { %v818_v10 = vld [vmem:[%s969_s4] ss:$0 sm:$0xff]  ;;  %v609_v11 = vunpack.c.l.bf16 %v666_v8  ;;  %v610_v12 = vunpack.c.h.bf16 %v666_v8  ;;  %v86_v14 = vmul.f32 %v593_v6, %v807_v5  ;;  %v87_v15 = vmul.f32 %v594_v7, %v807_v5  ;;  %v665_v44 = vld [vmem:[%s967_s0 + $0x18] sm:$0xff]   ;;  %v747_v48 = vld [vmem:[%s966_s1 + $0x30] sm:$0xff]  }
   0x6   :  { %v745_v17 = vld [vmem:[%s966_s1 + $0x20] sm:$0xff]   ;;  %v88_v35 = vmul.f32 %v597_v20, %v807_v5  ;;  %v89_v36 = vmul.f32 %v598_v21, %v807_v5  ;;  %v96_v38 = vmul.f32 %v613_v24, %v807_v5  ;;  %v97_v39 = vmul.f32 %v614_v25, %v807_v5  ;;  %v669_v47 = vld [vmem:[%s967_s0 + $0x38] sm:$0xff]  }
   0x7   :  { %696 = vmatpush3.bf16.msra.mxu0 %v742_v1  ;;  %734 = vmatpush3.bf16.msra.mxu1 %v742_v1  ;;  %v94_v18 = vmul.f32 %v609_v11, %v807_v5  ;;  %v95_v19 = vmul.f32 %v610_v12, %v807_v5  ;;  %v109_v22 = vadd.f32 %v818_v10, %v86_v14  ;;  %v617_v43 = vunpack.c.l.bf16 %v668_v31  ;;  %v748_v63 = vld [vmem:[%s966_s1 + $0x38] sm:$0xff]  }
   0x8   :  { %697 = vmatprep.subr.bf16.mxu0 %v743_v2  ;;  %727 = vmatprep.subr.bf16.mxu1 %v743_v2  ;;  %v110_v23 = vadd.f32 %v818_v10, %v87_v15  ;;  %v90_v42 = vmul.f32 %v601_v28, %v807_v5  ;;  %v91_v45 = vmul.f32 %v602_v40, %v807_v5  ;;  %v618_v46 = vunpack.c.h.bf16 %v668_v31  ;;  %v887_v28 = vld [vmem:[%s971_s5] ss:$0 sm:$0xff] }
   0x9   :  { %v117_v26 = vadd.f32 %v818_v10, %v94_v18  ;;  %v118_v27 = vadd.f32 %v818_v10, %v95_v19  ;;  %v125_v29 = vmax.f32 %v109_v22, 0.0  ;;  %v111_v49 = vadd.f32 %v818_v10, %v88_v35 }
   0xa   :  { %v126_v30 = vmax.f32 %v110_v23, 0.0  ;;  %v112_v50 = vadd.f32 %v818_v10, %v89_v36  ;;  %v98_v51 = vmul.f32 %v617_v43, %v807_v5  ;;  %v119_v52 = vadd.f32 %v818_v10, %v96_v38 }
   0xb   :  { %698 = vmatpush3.bf16.msra.mxu0 %v743_v2  ;;  %735 = vmatpush3.bf16.msra.mxu1 %v743_v2  ;;  %v133_v33 = vmax.f32 %v117_v26, 0.0  ;;  %v134_v34 = vmax.f32 %v118_v27, 0.0  ;;  %v120_v53 = vadd.f32 %v818_v10, %v97_v39  ;;  %v99_v54 = vmul.f32 %v618_v46, %v807_v5 }
   0xc   :  { %699 = vmatprep.subr.bf16.mxu0 %v744_v3  ;;  %728 = vmatprep.subr.bf16.mxu1 %v744_v3  ;;  %v141_v37 = vpack.c.bf16 %v126_v30, %v125_v29  ;;  %v605_v55 = vunpack.c.l.bf16 %v665_v44  ;;  %v113_v56 = vadd.f32 %v818_v10, %v90_v42  ;;  %v606_v57 = vunpack.c.h.bf16 %v665_v44 }
   0xd   :  { %v145_v41 = vpack.c.bf16 %v134_v34, %v133_v33  ;;  %v621_v58 = vunpack.c.l.bf16 %v669_v47  ;;  %v622_v59 = vunpack.c.h.bf16 %v669_v47  ;;  %v114_v60 = vadd.f32 %v818_v10, %v91_v45  ;;  %v894_v34 = vld [vmem:[%s972_s6] ss:$0 sm:$0xff] }
   0xe   :  { %709 = vmatprep.mubr.bf16.mxu0 %v141_v37  ;;  %v121_v61 = vadd.f32 %v818_v10, %v98_v51  ;;  %v122_v62 = vadd.f32 %v818_v10, %v99_v54  ;;  %v127_v0 = vmax.f32 %v111_v49, 0.0  ;;  %v128_v1 = vmax.f32 %v112_v50, 0.0 }
   0xf   :  { %700 = vmatpush3.bf16.msra.mxu0 %v744_v3  ;;  %736 = vmatpush3.bf16.msra.mxu1 %v744_v3  ;;  %v135_v2 = vmax.f32 %v119_v52, 0.0  ;;  %v136_v3 = vmax.f32 %v120_v53, 0.0  ;;  %v92_v4 = vmul.f32 %v605_v55, %v807_v5  ;;  %v93_v6 = vmul.f32 %v606_v57, %v807_v5 }
  0x10   :  { %701 = vmatprep.subr.bf16.mxu0 %v745_v17  ;;  %729 = vmatprep.subr.bf16.mxu1 %v745_v17  ;;  %v100_v7 = vmul.f32 %v621_v58, %v807_v5  ;;  %v101_v8 = vmul.f32 %v622_v59, %v807_v5  ;;  %v129_v9 = vmax.f32 %v113_v56, 0.0  ;;  %v130_v11 = vmax.f32 %v114_v60, 0.0 }
  0x11   :  { %717 = vmatprep.mubr.bf16.mxu1 %v145_v41  ;;  %v137_v12 = vmax.f32 %v121_v61, 0.0  ;;  %v138_v13 = vmax.f32 %v122_v62, 0.0  ;;  %v142_v14 = vpack.c.bf16 %v128_v1, %v127_v0  ;;  %v146_v15 = vpack.c.bf16 %v136_v3, %v135_v2 }
  0x12   :  { %v115_v16 = vadd.f32 %v818_v10, %v92_v4  ;;  %v123_v18 = vadd.f32 %v818_v10, %v100_v7  ;;  %v124_v19 = vadd.f32 %v818_v10, %v101_v8  ;;  %v143_v5 = vpack.c.bf16 %v130_v11, %v129_v9 }
  0x13   :  { %702 = vmatpush3.bf16.msra.mxu0 %v745_v17  ;;  %737 = vmatpush3.bf16.msra.mxu1 %v745_v17  ;;  %v116_v17 = vadd.f32 %v818_v10, %v93_v6  ;;  %v147_v20 = vpack.c.bf16 %v138_v13, %v137_v12  ;;  %v882_v10 = vld [vmem:[%s970_s2] ss:$0 sm:$0xff] }
  0x14   :  { %703 = vmatprep.subr.bf16.mxu0 %v746_v32  ;;  %730 = vmatprep.subr.bf16.mxu1 %v746_v32  ;;  %v131_v21 = vmax.f32 %v115_v16, 0.0  ;;  %v139_v23 = vmax.f32 %v123_v18, 0.0  ;;  %v140_v24 = vmax.f32 %v124_v19, 0.0 }
  0x15   :  { %v132_v22 = vmax.f32 %v116_v17, 0.0 }
  0x16   :  { %v148_v26 = vpack.c.bf16 %v140_v24, %v139_v23 }
  0x17   :  { %704 = vmatpush3.bf16.msra.mxu0 %v746_v32  ;;  %738 = vmatpush3.bf16.msra.mxu1 %v746_v32  ;;  %v144_v25 = vpack.c.bf16 %v132_v22, %v131_v21 }
  0x18   :  { %705 = vmatprep.subr.bf16.mxu0 %v747_v48  ;;  %731 = vmatprep.subr.bf16.mxu1 %v747_v48 }
  0x1b   :  { %706 = vmatpush3.bf16.msra.mxu0 %v747_v48  ;;  %739 = vmatpush3.bf16.msra.mxu1 %v747_v48 }
  0x1c   :  { %707 = vmatprep.subr.bf16.mxu0 %v748_v63  ;;  %732 = vmatprep.subr.bf16.mxu1 %v748_v63 }
  0x1f   :  { %708 = vmatpush3.bf16.msra.mxu0 %v748_v63  ;;  %740 = vmatpush3.bf16.msra.mxu1 %v748_v63 }
  0x22   :  { %710 = vmatmul.mubr.bf16.vlgmr.msra.gmra.mrb[0].mxu0 %v142_v14  ;;  %718 = vmatmul.mubr.bf16.vlgmr.msra.gmra.mrb[0].mxu1 %v146_v15 }
  0x23   :  { %713 = vmatprep.mubr.bf16.mxu0 %v143_v5  ;;  %721 = vmatprep.mubr.bf16.mxu1 %v147_v20 }
  0x2a   :  { %714 = vmatmul.mubr.bf16.gmra.mrb[4].mxu0 %v144_v25  ;;  %722 = vmatmul.mubr.bf16.gmra.mrb[4].mxu1 %v148_v26 }
  0xf5   :  { %v711_v27 = vpop.f32.mrb[0].mxu0  ;;  %v719_v29 = vpop.f32.mrb[0].mxu1 }
  0xf6   :  { %v386_v30 = vadd.f32 %v711_v27, %v882_v10  ;;  %v394_v31 = vadd.f32 %v719_v29, %v882_v10  ;;  %v263_v32 = vpop.f32.mrb[1].mxu0  ;;  %v295_v33 = vpop.f32.mrb[1].mxu1 }
  0xf7   :  { %v384_v35 = vadd.f32 %v882_v10, %v263_v32  ;;  %v392_v36 = vadd.f32 %v882_v10, %v295_v33  ;;  %v712_v37 = vpop.f32.mrb[2].mxu0  ;;  %v720_v38 = vpop.f32.mrb[2].mxu1 }
  0xf8   :  { %v409_v39 = vmul.f32 %v887_v28, %v386_v30  ;;  %v417_v40 = vmul.f32 %v887_v28, %v394_v31  ;;  %v387_v41 = vadd.f32 %v712_v37, %v882_v10  ;;  %v395_v42 = vadd.f32 %v720_v38, %v882_v10  ;;  %v266_v43 = vpop.f32.mrb[3].mxu0  ;;  %v298_v44 = vpop.f32.mrb[3].mxu1 }
  0xf9   :  { %v407_v45 = vmul.f32 %v887_v28, %v384_v35  ;;  %v415_v46 = vmul.f32 %v887_v28, %v392_v36  ;;  %v385_v47 = vadd.f32 %v882_v10, %v266_v43  ;;  %v393_v48 = vadd.f32 %v882_v10, %v298_v44 }
  0xfa   :  { %v432_v49 = vadd.f32 %v894_v34, %v409_v39  ;;  %v440_v50 = vadd.f32 %v894_v34, %v417_v40  ;;  %v410_v51 = vmul.f32 %v887_v28, %v387_v41  ;;  %v418_v52 = vmul.f32 %v887_v28, %v395_v42 }
  0xfb   :  { %v430_v53 = vadd.f32 %v894_v34, %v407_v45  ;;  %v438_v54 = vadd.f32 %v894_v34, %v415_v46  ;;  %v408_v55 = vmul.f32 %v887_v28, %v385_v47  ;;  %v416_v56 = vmul.f32 %v887_v28, %v393_v48 }
  0xfc   :  { %v448_v57 = vmax.f32 %v432_v49, 0.0  ;;  %v456_v58 = vmax.f32 %v440_v50, 0.0  ;;  %v433_v59 = vadd.f32 %v894_v34, %v410_v51  ;;  %v441_v60 = vadd.f32 %v894_v34, %v418_v52 }
  0xfd   :  { %v446_v61 = vmax.f32 %v430_v53, 0.0  ;;  %v454_v62 = vmax.f32 %v438_v54, 0.0  ;;  %v431_v63 = vadd.f32 %v894_v34, %v408_v55  ;;  %v439_v0 = vadd.f32 %v894_v34, %v416_v56  ;;  %v715_v1 = vpop.f32.mrb[4].mxu0  ;;  %v723_v2 = vpop.f32.mrb[4].mxu1 }
  0xfe   :  { %v449_v3 = vmax.f32 %v433_v59, 0.0  ;;  %v457_v4 = vmax.f32 %v441_v60, 0.0  ;;  %v390_v6 = vadd.f32 %v715_v1, %v882_v10  ;;  %v398_v7 = vadd.f32 %v723_v2, %v882_v10  ;;  %v279_v8 = vpop.f32.mrb[5].mxu0  ;;  %v311_v9 = vpop.f32.mrb[5].mxu1 }
  0xff   :  { %v447_v11 = vmax.f32 %v431_v63, 0.0  ;;  %v455_v12 = vmax.f32 %v439_v0, 0.0  ;;  %v388_v13 = vadd.f32 %v882_v10, %v279_v8  ;;  %v396_v14 = vadd.f32 %v882_v10, %v311_v9  ;;  %v716_v15 = vpop.f32.mrb[6].mxu0  ;;  %v724_v16 = vpop.f32.mrb[6].mxu1 }
 0x100   :  { %v631_v17 = vpack.c.bf16 %v449_v3, %v448_v57  ;;  %v651_v18 = vpack.c.bf16 %v457_v4, %v456_v58  ;;  %v413_v19 = vmul.f32 %v887_v28, %v390_v6  ;;  %v421_v5 = vmul.f32 %v887_v28, %v398_v7  ;;  %v282_v20 = vpop.f32.mrb[7].mxu0  ;;  %v314_v21 = vpop.f32.mrb[7].mxu1 }
 0x101   :  { %v626_v22 = vpack.c.bf16 %v447_v11, %v446_v61  ;;  %v646_v23 = vpack.c.bf16 %v455_v12, %v454_v62  ;;  %v411_v24 = vmul.f32 %v887_v28, %v388_v13  ;;  %v419_v25 = vmul.f32 %v887_v28, %v396_v14 }
 0x102   :  { %670 = vst [vmem:[%s973_s7 + $0x8] sm:$0xff] %v631_v17   ;;  %674 = vst [vmem:[%s973_s7 + $0x28] sm:$0xff] %v651_v18   ;;  %v391_v26 = vadd.f32 %v716_v15, %v882_v10  ;;  %v399_v27 = vadd.f32 %v724_v16, %v882_v10  ;;  %v389_v29 = vadd.f32 %v882_v10, %v282_v20 }
 0x103   :  { %627 = vst [vmem:[%s973_s7] sm:$0xff] %v626_v22   ;;  %673 = vst [vmem:[%s973_s7 + $0x20] sm:$0xff] %v646_v23   ;;  %v397_v30 = vadd.f32 %v882_v10, %v314_v21  ;;  %v436_v31 = vadd.f32 %v894_v34, %v413_v19  ;;  %v444_v32 = vadd.f32 %v894_v34, %v421_v5 }
 0x104   :  { %v414_v33 = vmul.f32 %v887_v28, %v391_v26  ;;  %v422_v35 = vmul.f32 %v887_v28, %v399_v27  ;;  %v434_v36 = vadd.f32 %v894_v34, %v411_v24  ;;  %v442_v37 = vadd.f32 %v894_v34, %v419_v25 }
 0x105   :  { %v412_v38 = vmul.f32 %v887_v28, %v389_v29  ;;  %v420_v39 = vmul.f32 %v887_v28, %v397_v30  ;;  %v452_v43 = vmax.f32 %v436_v31, 0.0  ;;  %v460_v44 = vmax.f32 %v444_v32, 0.0 }
 0x106   :  { %v437_v40 = vadd.f32 %v894_v34, %v414_v33  ;;  %v445_v10 = vadd.f32 %v894_v34, %v422_v35  ;;  %v450_v47 = vmax.f32 %v434_v36, 0.0  ;;  %v458_v48 = vmax.f32 %v442_v37, 0.0 }
 0x107   :  { %v435_v41 = vadd.f32 %v894_v34, %v412_v38  ;;  %v443_v42 = vadd.f32 %v894_v34, %v420_v39 }
 0x108   :  { %v453_v45 = vmax.f32 %v437_v40, 0.0  ;;  %v461_v46 = vmax.f32 %v445_v10, 0.0 }
 0x109   :  { %v451_v49 = vmax.f32 %v435_v41, 0.0  ;;  %v459_v50 = vmax.f32 %v443_v42, 0.0 }
 0x10a   :  { %v641_v51 = vpack.c.bf16 %v453_v45, %v452_v43  ;;  %v661_v52 = vpack.c.bf16 %v461_v46, %v460_v44 }
 0x10b   :  { %v636_v53 = vpack.c.bf16 %v451_v49, %v450_v47  ;;  %v656_v28 = vpack.c.bf16 %v459_v50, %v458_v48 }
 0x10c   :  { %672 = vst [vmem:[%s973_s7 + $0x18] sm:$0xff] %v641_v51   ;;  %676 = vst [vmem:[%s973_s7 + $0x38] sm:$0xff] %v661_v52  }
 0x10d   :  { %671 = vst [vmem:[%s973_s7 + $0x10] sm:$0xff] %v636_v53   ;;  %675 = vst [vmem:[%s973_s7 + $0x30] sm:$0xff] %v656_v28  }

// kernel: densenet_forward.17
= control target key start
LH: loop header
LB: loop body
LE: loop exit
PB: predicated region body
PF: predicated region fallthrough
CT: control target
= control target key end

     0   :  { %s955_s1 = inlined_call_operand.vmem [shape: bf16[256,128], index: 1, kind: input, shape index: {}]   ;;  %s956_s3 = inlined_call_operand.vmem [shape: f32[1,256], index: 3, kind: input, shape index: {}, may-alias: {3,4}]   ;;  %s957_s4 = inlined_call_operand.vmem [shape: f32[1,256], index: 4, kind: input, shape index: {}, may-alias: {3,4}]   ;;  %s958_s5 = inlined_call_operand.vmem [shape: f32[1,128], index: 5, kind: input, shape index: {}, may-alias: {5,6}]   ;;  %s959_s6 = inlined_call_operand.vmem [shape: f32[1,128], index: 6, kind: input, shape index: {}, may-alias: {5,6}]   ;;  %s960_s0 = inlined_call_operand.vmem [shape: bf16[128,256], index: 0, kind: input, shape index: {}]   ;;  %s961_s2 = inlined_call_operand.vmem [shape: f32[1,128], index: 2, kind: input, shape index: {}]   ;;  %s962_s7 = inlined_call_operand.vmem [shape: bf16[128,128], index: 7, kind: output, shape index: {}]  }
   0x1   :  { %v734_v0 = vld [vmem:[%s955_s1 + $0x40] sm:$0xff]   ;;  %v736_v2 = vld [vmem:[%s955_s1 + $0x48] sm:$0xff]   ;;  %v738_v4 = vld [vmem:[%s955_s1 + $0x50] sm:$0xff]  }
   0x2   :  { %v735_v1 = vld [vmem:[%s955_s1] sm:$0xff]   ;;  %654 = vmatprep.subr.bf16.mxu0 %v734_v0  ;;  %718 = vmatprep.subr.bf16.mxu1 %v734_v0  ;;  %v737_v3 = vld [vmem:[%s955_s1 + $0x8] sm:$0xff]   ;;  %v739_v5 = vld [vmem:[%s955_s1 + $0x10] sm:$0xff]  }
   0x3   :  { %655 = vmatpush3.bf16.msra.mxu0 %v735_v1  ;;  %726 = vmatpush3.bf16.msra.mxu1 %v735_v1  ;;  %v740_v6 = vld [vmem:[%s955_s1 + $0x58] sm:$0xff]   ;;  %v742_v8 = vld [vmem:[%s955_s1 + $0x60] sm:$0xff]   ;;  %v744_v10 = vld [vmem:[%s955_s1 + $0x68] sm:$0xff]  }
   0x4   :  { %656 = vmatprep.subr.bf16.mxu0 %v736_v2  ;;  %719 = vmatprep.subr.bf16.mxu1 %v736_v2  ;;  %v741_v7 = vld [vmem:[%s955_s1 + $0x18] sm:$0xff]   ;;  %v743_v9 = vld [vmem:[%s955_s1 + $0x20] sm:$0xff]   ;;  %v745_v13 = vld [vmem:[%s955_s1 + $0x28] sm:$0xff]  }
   0x5   :  { %v752_v11 = vld [vmem:[%s960_s0 + $0x4] ss:$8 sps:$4 sm:$0xff]   ;;  %v746_v14 = vld [vmem:[%s955_s1 + $0x70] sm:$0xff]   ;;  %v748_v16 = vld [vmem:[%s955_s1 + $0x78] sm:$0xff]  }
   0x6   :  { %v755_v12 = vld [vmem:[%s960_s0 + $0x44] ss:$8 sps:$4 sm:$0xff]   ;;  %319 = vmatprep.mubr.bf16.mxu0 %v752_v11  ;;  %v747_v15 = vld [vmem:[%s955_s1 + $0x30] sm:$0xff]   ;;  %v749_v17 = vld [vmem:[%s955_s1 + $0x38] sm:$0xff]  }
   0x7   :  { %657 = vmatpush3.bf16.msra.mxu0 %v737_v3  ;;  %727 = vmatpush3.bf16.msra.mxu1 %v737_v3  ;;  %v750_v18 = vld [vmem:[%s960_s0] ss:$8 sps:$4 sm:$0xff]   ;;  %v756_v20 = vld [vmem:[%s960_s0 + $0x14] ss:$8 sps:$4 sm:$0xff]   ;;  %v760_v22 = vld [vmem:[%s960_s0 + $0x10] ss:$8 sps:$4 sm:$0xff]  }
   0x8   :  { %658 = vmatprep.subr.bf16.mxu0 %v738_v4  ;;  %720 = vmatprep.subr.bf16.mxu1 %v738_v4  ;;  %v753_v19 = vld [vmem:[%s960_s0 + $0x40] ss:$8 sps:$4 sm:$0xff]   ;;  %v758_v21 = vld [vmem:[%s960_s0 + $0x54] ss:$8 sps:$4 sm:$0xff]   ;;  %v761_v23 = vld [vmem:[%s960_s0 + $0x50] ss:$8 sps:$4 sm:$0xff]  }
   0x9   :  { %351 = vmatprep.mubr.bf16.mxu1 %v755_v12  ;;  %v762_v24 = vld [vmem:[%s960_s0 + $0x24] ss:$8 sps:$4 sm:$0xff]   ;;  %v766_v26 = vld [vmem:[%s960_s0 + $0x20] ss:$8 sps:$4 sm:$0xff]   ;;  %v768_v28 = vld [vmem:[%s960_s0 + $0x34] ss:$8 sps:$4 sm:$0xff]  }
   0xa   :  { %v764_v25 = vld [vmem:[%s960_s0 + $0x64] ss:$8 sps:$4 sm:$0xff]   ;;  %v767_v27 = vld [vmem:[%s960_s0 + $0x60] ss:$8 sps:$4 sm:$0xff]   ;;  %v770_v29 = vld [vmem:[%s960_s0 + $0x74] ss:$8 sps:$4 sm:$0xff]  }
   0xb   :  { %659 = vmatpush3.bf16.msra.mxu0 %v739_v5  ;;  %728 = vmatpush3.bf16.msra.mxu1 %v739_v5  ;;  %v772_v30 = vld [vmem:[%s960_s0 + $0x30] ss:$8 sps:$4 sm:$0xff]   ;;  %v913_v40 = vld [vmem:[%s961_s2] ss:$0 sm:$0xff] }
   0xc   :  { %660 = vmatprep.subr.bf16.mxu0 %v740_v6  ;;  %721 = vmatprep.subr.bf16.mxu1 %v740_v6  ;;  %v773_v31 = vld [vmem:[%s960_s0 + $0x70] ss:$8 sps:$4 sm:$0xff]  }
   0xf   :  { %661 = vmatpush3.bf16.msra.mxu0 %v741_v7  ;;  %729 = vmatpush3.bf16.msra.mxu1 %v741_v7 }
  0x10   :  { %662 = vmatprep.subr.bf16.mxu0 %v742_v8  ;;  %722 = vmatprep.subr.bf16.mxu1 %v742_v8 }
  0x13   :  { %663 = vmatpush3.bf16.msra.mxu0 %v743_v9  ;;  %730 = vmatpush3.bf16.msra.mxu1 %v743_v9 }
  0x14   :  { %664 = vmatprep.subr.bf16.mxu0 %v744_v10  ;;  %723 = vmatprep.subr.bf16.mxu1 %v744_v10 }
  0x17   :  { %665 = vmatpush3.bf16.msra.mxu0 %v745_v13  ;;  %731 = vmatpush3.bf16.msra.mxu1 %v745_v13 }
  0x18   :  { %666 = vmatprep.subr.bf16.mxu0 %v746_v14  ;;  %724 = vmatprep.subr.bf16.mxu1 %v746_v14 }
  0x1b   :  { %667 = vmatpush3.bf16.msra.mxu0 %v747_v15  ;;  %732 = vmatpush3.bf16.msra.mxu1 %v747_v15 }
  0x1c   :  { %668 = vmatprep.subr.bf16.mxu0 %v748_v16  ;;  %725 = vmatprep.subr.bf16.mxu1 %v748_v16 }
  0x1f   :  { %669 = vmatpush3.bf16.msra.mxu0 %v749_v17  ;;  %733 = vmatpush3.bf16.msra.mxu1 %v749_v17 }
  0x22   :  { %320 = vmatmul.mubr.bf16.vlgmr.msra.gmra.mrb[0].mxu0 %v750_v18  ;;  %352 = vmatmul.mubr.bf16.vlgmr.msra.gmra.mrb[0].mxu1 %v753_v19 }
  0x23   :  { %327 = vmatprep.mubr.bf16.mxu0 %v756_v20  ;;  %359 = vmatprep.mubr.bf16.mxu1 %v758_v21 }
  0x2a   :  { %328 = vmatmul.mubr.bf16.gmra.mrb[4].mxu0 %v760_v22  ;;  %360 = vmatmul.mubr.bf16.gmra.mrb[4].mxu1 %v761_v23 }
  0x2b   :  { %335 = vmatprep.mubr.bf16.mxu0 %v762_v24  ;;  %367 = vmatprep.mubr.bf16.mxu1 %v764_v25 }
  0x32   :  { %336 = vmatmul.mubr.bf16.gmra.mrb[8].mxu0 %v766_v26  ;;  %368 = vmatmul.mubr.bf16.gmra.mrb[8].mxu1 %v767_v27 }
  0x33   :  { %343 = vmatprep.mubr.bf16.mxu0 %v768_v28  ;;  %375 = vmatprep.mubr.bf16.mxu1 %v770_v29 }
  0x3a   :  { %344 = vmatmul.mubr.bf16.gmra.mrb[12].mxu0 %v772_v30  ;;  %376 = vmatmul.mubr.bf16.gmra.mrb[12].mxu1 %v773_v31 }
  0xf5   :  { %v670_v32 = vpop.f32.mrb[0].mxu0  ;;  %v694_v33 = vpop.f32.mrb[0].mxu1 }
  0xf6   :  { %v671_v34 = vpop.f32.mrb[1].mxu0  ;;  %v695_v35 = vpop.f32.mrb[1].mxu1 }
  0xf7   :  { %v672_v36 = vadd.f32 %v671_v34, %v670_v32  ;;  %v696_v37 = vadd.f32 %v695_v35, %v694_v33  ;;  %v673_v38 = vpop.f32.mrb[2].mxu0  ;;  %v697_v39 = vpop.f32.mrb[2].mxu1 }
  0xf8   :  { %v674_v41 = vpop.f32.mrb[3].mxu0  ;;  %v698_v42 = vpop.f32.mrb[3].mxu1 }
  0xf9   :  { %v675_v43 = vadd.f32 %v674_v41, %v673_v38  ;;  %v699_v44 = vadd.f32 %v698_v42, %v697_v39  ;;  %v442_v45 = vadd.f32 %v672_v36, %v913_v40  ;;  %v450_v46 = vadd.f32 %v696_v37, %v913_v40 }
  0xfb   :  { %v443_v47 = vadd.f32 %v675_v43, %v913_v40  ;;  %v451_v48 = vadd.f32 %v699_v44, %v913_v40 }
  0xfd   :  { %v610_v49 = vpack.c.bf16 %v443_v47, %v442_v45  ;;  %v630_v50 = vpack.c.bf16 %v451_v48, %v450_v46  ;;  %v676_v51 = vpop.f32.mrb[4].mxu0  ;;  %v700_v52 = vpop.f32.mrb[4].mxu1 }
  0xfe   :  { %v677_v53 = vpop.f32.mrb[5].mxu0  ;;  %v701_v54 = vpop.f32.mrb[5].mxu1 }
  0xff   :  { %611 = vst [vmem:[%s962_s7] sm:$0xff] %v610_v49   ;;  %650 = vst [vmem:[%s962_s7 + $0x20] sm:$0xff] %v630_v50   ;;  %v678_v55 = vadd.f32 %v677_v53, %v676_v51  ;;  %v702_v56 = vadd.f32 %v701_v54, %v700_v52  ;;  %v679_v57 = vpop.f32.mrb[6].mxu0  ;;  %v703_v58 = vpop.f32.mrb[6].mxu1 }
 0x100   :  { %v680_v59 = vpop.f32.mrb[7].mxu0  ;;  %v704_v60 = vpop.f32.mrb[7].mxu1 }
 0x101   :  { %v681_v61 = vadd.f32 %v680_v59, %v679_v57  ;;  %v705_v62 = vadd.f32 %v704_v60, %v703_v58  ;;  %v444_v63 = vadd.f32 %v678_v55, %v913_v40  ;;  %v452_v0 = vadd.f32 %v702_v56, %v913_v40 }
 0x103   :  { %v445_v1 = vadd.f32 %v681_v61, %v913_v40  ;;  %v453_v2 = vadd.f32 %v705_v62, %v913_v40 }
 0x105   :  { %v615_v3 = vpack.c.bf16 %v445_v1, %v444_v63  ;;  %v635_v4 = vpack.c.bf16 %v453_v2, %v452_v0  ;;  %v682_v5 = vpop.f32.mrb[8].mxu0  ;;  %v706_v6 = vpop.f32.mrb[8].mxu1 }
 0x106   :  { %v683_v7 = vpop.f32.mrb[9].mxu0  ;;  %v707_v8 = vpop.f32.mrb[9].mxu1 }
 0x107   :  { %647 = vst [vmem:[%s962_s7 + $0x8] sm:$0xff] %v615_v3   ;;  %651 = vst [vmem:[%s962_s7 + $0x28] sm:$0xff] %v635_v4   ;;  %v684_v9 = vadd.f32 %v683_v7, %v682_v5  ;;  %v708_v10 = vadd.f32 %v707_v8, %v706_v6  ;;  %v685_v11 = vpop.f32.mrb[10].mxu0  ;;  %v709_v12 = vpop.f32.mrb[10].mxu1 }
 0x108   :  { %v686_v13 = vpop.f32.mrb[11].mxu0  ;;  %v710_v14 = vpop.f32.mrb[11].mxu1 }
 0x109   :  { %v687_v15 = vadd.f32 %v686_v13, %v685_v11  ;;  %v711_v16 = vadd.f32 %v710_v14, %v709_v12  ;;  %v446_v17 = vadd.f32 %v684_v9, %v913_v40  ;;  %v454_v18 = vadd.f32 %v708_v10, %v913_v40 }
 0x10b   :  { %v447_v19 = vadd.f32 %v687_v15, %v913_v40  ;;  %v455_v20 = vadd.f32 %v711_v16, %v913_v40 }
 0x10d   :  { %v620_v21 = vpack.c.bf16 %v447_v19, %v446_v17  ;;  %v640_v22 = vpack.c.bf16 %v455_v20, %v454_v18  ;;  %v688_v23 = vpop.f32.mrb[12].mxu0  ;;  %v712_v24 = vpop.f32.mrb[12].mxu1 }
 0x10e   :  { %v689_v25 = vpop.f32.mrb[13].mxu0  ;;  %v713_v26 = vpop.f32.mrb[13].mxu1 }
 0x10f   :  { %648 = vst [vmem:[%s962_s7 + $0x10] sm:$0xff] %v620_v21   ;;  %652 = vst [vmem:[%s962_s7 + $0x30] sm:$0xff] %v640_v22   ;;  %v690_v27 = vadd.f32 %v689_v25, %v688_v23  ;;  %v714_v28 = vadd.f32 %v713_v26, %v712_v24  ;;  %v691_v29 = vpop.f32.mrb[14].mxu0  ;;  %v715_v30 = vpop.f32.mrb[14].mxu1 }
 0x110   :  { %v692_v31 = vpop.f32.mrb[15].mxu0  ;;  %v716_v32 = vpop.f32.mrb[15].mxu1 }
 0x111   :  { %v693_v33 = vadd.f32 %v692_v31, %v691_v29  ;;  %v717_v34 = vadd.f32 %v716_v32, %v715_v30  ;;  %v448_v35 = vadd.f32 %v690_v27, %v913_v40  ;;  %v456_v36 = vadd.f32 %v714_v28, %v913_v40 }
 0x113   :  { %v449_v37 = vadd.f32 %v693_v33, %v913_v40  ;;  %v457_v38 = vadd.f32 %v717_v34, %v913_v40 }
 0x115   :  { %v625_v39 = vpack.c.bf16 %v449_v37, %v448_v35  ;;  %v645_v41 = vpack.c.bf16 %v457_v38, %v456_v36 }
 0x117   :  { %649 = vst [vmem:[%s962_s7 + $0x18] sm:$0xff] %v625_v39   ;;  %653 = vst [vmem:[%s962_s7 + $0x38] sm:$0xff] %v645_v41  }

// kernel: densenet_forward.20
= control target key start
LH: loop header
LB: loop body
LE: loop exit
PB: predicated region body
PF: predicated region fallthrough
CT: control target
= control target key end

     0   :  { %s737_s1 = inlined_call_operand.vmem [shape: bf16[128,128], index: 1, kind: input, shape index: {}]   ;;  %s738_s3 = inlined_call_operand.vmem [shape: f32[1,128], index: 3, kind: input, shape index: {}, may-alias: {3,4,5,6}]   ;;  %s739_s4 = inlined_call_operand.vmem [shape: f32[1,128], index: 4, kind: input, shape index: {}, may-alias: {3,4,5,6}]   ;;  %s740_s5 = inlined_call_operand.vmem [shape: f32[1,128], index: 5, kind: input, shape index: {}, may-alias: {3,4,5,6}]   ;;  %s741_s6 = inlined_call_operand.vmem [shape: f32[1,128], index: 6, kind: input, shape index: {}, may-alias: {3,4,5,6}]   ;;  %s742_s0 = inlined_call_operand.vmem [shape: bf16[128,128], index: 0, kind: input, shape index: {}]   ;;  %s743_s2 = inlined_call_operand.vmem [shape: f32[1,128], index: 2, kind: input, shape index: {}]   ;;  %s744_s7 = inlined_call_operand.vmem [shape: bf16[128,128], index: 7, kind: output, shape index: {}]  }
   0x1   :  { %v606_v0 = vld [vmem:[%s737_s1] sm:$0xff]   ;;  %v607_v1 = vld [vmem:[%s737_s1 + $0x8] sm:$0xff]   ;;  %v608_v2 = vld [vmem:[%s737_s1 + $0x10] sm:$0xff]  }
   0x2   :  { %558 = vmatprep.subr.bf16.mxu0 %v606_v0  ;;  %590 = vmatprep.subr.bf16.mxu1 %v606_v0  ;;  %v609_v3 = vld [vmem:[%s737_s1 + $0x18] sm:$0xff]   ;;  %v614_v4 = vld [vmem:[%s742_s0] sm:$0xff]   ;;  %v611_v7 = vld [vmem:[%s737_s1 + $0x28] sm:$0xff]  }
   0x3   :  { %559 = vmatpush3.bf16.msra.mxu0 %v606_v0  ;;  %598 = vmatpush3.bf16.msra.mxu1 %v606_v0  ;;  %v615_v5 = vld [vmem:[%s742_s0 + $0x20] sm:$0xff]   ;;  %v612_v8 = vld [vmem:[%s737_s1 + $0x30] sm:$0xff]   ;;  %v613_v9 = vld [vmem:[%s737_s1 + $0x38] sm:$0xff]  }
   0x4   :  { %560 = vmatprep.subr.bf16.mxu0 %v607_v1  ;;  %591 = vmatprep.subr.bf16.mxu1 %v607_v1  ;;  %v610_v6 = vld [vmem:[%s737_s1 + $0x20] sm:$0xff]   ;;  %v616_v10 = vld [vmem:[%s742_s0 + $0x8] sm:$0xff]   ;;  %v618_v12 = vld [vmem:[%s742_s0 + $0x10] sm:$0xff]  }
   0x5   :  { %574 = vmatprep.mubr.bf16.mxu0 %v614_v4  ;;  %582 = vmatprep.mubr.bf16.mxu1 %v615_v5  ;;  %v617_v11 = vld [vmem:[%s742_s0 + $0x28] sm:$0xff]   ;;  %v619_v13 = vld [vmem:[%s742_s0 + $0x30] sm:$0xff]   ;;  %v620_v14 = vld [vmem:[%s742_s0 + $0x18] sm:$0xff]  }
   0x6   :  { %v621_v15 = vld [vmem:[%s742_s0 + $0x38] sm:$0xff]   ;;  %v462_v17 = vld [vmem:[%s743_s2] ss:$0 sm:$0xff] }
   0x7   :  { %561 = vmatpush3.bf16.msra.mxu0 %v607_v1  ;;  %599 = vmatpush3.bf16.msra.mxu1 %v607_v1 }
   0x8   :  { %562 = vmatprep.subr.bf16.mxu0 %v608_v2  ;;  %592 = vmatprep.subr.bf16.mxu1 %v608_v2 }
   0xb   :  { %563 = vmatpush3.bf16.msra.mxu0 %v608_v2  ;;  %600 = vmatpush3.bf16.msra.mxu1 %v608_v2 }
   0xc   :  { %564 = vmatprep.subr.bf16.mxu0 %v609_v3  ;;  %593 = vmatprep.subr.bf16.mxu1 %v609_v3 }
   0xf   :  { %565 = vmatpush3.bf16.msra.mxu0 %v609_v3  ;;  %601 = vmatpush3.bf16.msra.mxu1 %v609_v3 }
  0x10   :  { %566 = vmatprep.subr.bf16.mxu0 %v610_v6  ;;  %594 = vmatprep.subr.bf16.mxu1 %v610_v6 }
  0x13   :  { %567 = vmatpush3.bf16.msra.mxu0 %v610_v6  ;;  %602 = vmatpush3.bf16.msra.mxu1 %v610_v6 }
  0x14   :  { %568 = vmatprep.subr.bf16.mxu0 %v611_v7  ;;  %595 = vmatprep.subr.bf16.mxu1 %v611_v7 }
  0x17   :  { %569 = vmatpush3.bf16.msra.mxu0 %v611_v7  ;;  %603 = vmatpush3.bf16.msra.mxu1 %v611_v7 }
  0x18   :  { %570 = vmatprep.subr.bf16.mxu0 %v612_v8  ;;  %596 = vmatprep.subr.bf16.mxu1 %v612_v8 }
  0x1b   :  { %571 = vmatpush3.bf16.msra.mxu0 %v612_v8  ;;  %604 = vmatpush3.bf16.msra.mxu1 %v612_v8 }
  0x1c   :  { %572 = vmatprep.subr.bf16.mxu0 %v613_v9  ;;  %597 = vmatprep.subr.bf16.mxu1 %v613_v9 }
  0x1f   :  { %573 = vmatpush3.bf16.msra.mxu0 %v613_v9  ;;  %605 = vmatpush3.bf16.msra.mxu1 %v613_v9 }
  0x22   :  { %575 = vmatmul.mubr.bf16.vlgmr.msra.gmra.mrb[0].mxu0 %v616_v10  ;;  %583 = vmatmul.mubr.bf16.vlgmr.msra.gmra.mrb[0].mxu1 %v617_v11 }
  0x23   :  { %578 = vmatprep.mubr.bf16.mxu0 %v618_v12  ;;  %586 = vmatprep.mubr.bf16.mxu1 %v619_v13 }
  0x2a   :  { %579 = vmatmul.mubr.bf16.gmra.mrb[4].mxu0 %v620_v14  ;;  %587 = vmatmul.mubr.bf16.gmra.mrb[4].mxu1 %v621_v15 }
  0xf5   :  { %v576_v16 = vpop.f32.mrb[0].mxu0  ;;  %v584_v18 = vpop.f32.mrb[0].mxu1 }
  0xf6   :  { %v225_v19 = vpop.f32.mrb[1].mxu0  ;;  %v257_v20 = vpop.f32.mrb[1].mxu1  ;;  %v348_v23 = vadd.f32 %v576_v16, %v462_v17  ;;  %v356_v24 = vadd.f32 %v584_v18, %v462_v17 }
  0xf7   :  { %v577_v21 = vpop.f32.mrb[2].mxu0  ;;  %v585_v22 = vpop.f32.mrb[2].mxu1  ;;  %v346_v29 = vadd.f32 %v462_v17, %v225_v19  ;;  %v354_v30 = vadd.f32 %v462_v17, %v257_v20 }
  0xf8   :  { %v349_v25 = vadd.f32 %v577_v21, %v462_v17  ;;  %v357_v26 = vadd.f32 %v585_v22, %v462_v17  ;;  %v228_v27 = vpop.f32.mrb[3].mxu0  ;;  %v260_v28 = vpop.f32.mrb[3].mxu1 }
  0xf9   :  { %v347_v31 = vadd.f32 %v462_v17, %v228_v27  ;;  %v355_v32 = vadd.f32 %v462_v17, %v260_v28 }
  0xfa   :  { %v503_v33 = vpack.c.bf16 %v349_v25, %v348_v23  ;;  %v523_v34 = vpack.c.bf16 %v357_v26, %v356_v24 }
  0xfb   :  { %v498_v35 = vpack.c.bf16 %v347_v31, %v346_v29  ;;  %v518_v36 = vpack.c.bf16 %v355_v32, %v354_v30 }
  0xfc   :  { %535 = vst [vmem:[%s744_s7 + $0x8] sm:$0xff] %v503_v33   ;;  %539 = vst [vmem:[%s744_s7 + $0x28] sm:$0xff] %v523_v34  }
  0xfd   :  { %499 = vst [vmem:[%s744_s7] sm:$0xff] %v498_v35   ;;  %538 = vst [vmem:[%s744_s7 + $0x20] sm:$0xff] %v518_v36   ;;  %v580_v37 = vpop.f32.mrb[4].mxu0  ;;  %v588_v38 = vpop.f32.mrb[4].mxu1 }
  0xfe   :  { %v241_v39 = vpop.f32.mrb[5].mxu0  ;;  %v273_v40 = vpop.f32.mrb[5].mxu1  ;;  %v352_v43 = vadd.f32 %v580_v37, %v462_v17  ;;  %v360_v44 = vadd.f32 %v588_v38, %v462_v17 }
  0xff   :  { %v581_v41 = vpop.f32.mrb[6].mxu0  ;;  %v589_v42 = vpop.f32.mrb[6].mxu1  ;;  %v350_v49 = vadd.f32 %v462_v17, %v241_v39  ;;  %v358_v50 = vadd.f32 %v462_v17, %v273_v40 }
 0x100   :  { %v353_v45 = vadd.f32 %v581_v41, %v462_v17  ;;  %v361_v46 = vadd.f32 %v589_v42, %v462_v17  ;;  %v244_v47 = vpop.f32.mrb[7].mxu0  ;;  %v276_v48 = vpop.f32.mrb[7].mxu1 }
 0x101   :  { %v351_v51 = vadd.f32 %v462_v17, %v244_v47  ;;  %v359_v52 = vadd.f32 %v462_v17, %v276_v48 }
 0x102   :  { %v513_v53 = vpack.c.bf16 %v353_v45, %v352_v43  ;;  %v533_v54 = vpack.c.bf16 %v361_v46, %v360_v44 }
 0x103   :  { %v508_v55 = vpack.c.bf16 %v351_v51, %v350_v49  ;;  %v528_v56 = vpack.c.bf16 %v359_v52, %v358_v50 }
 0x104   :  { %537 = vst [vmem:[%s744_s7 + $0x18] sm:$0xff] %v513_v53   ;;  %541 = vst [vmem:[%s744_s7 + $0x38] sm:$0xff] %v533_v54  }
 0x105   :  { %536 = vst [vmem:[%s744_s7 + $0x10] sm:$0xff] %v508_v55   ;;  %540 = vst [vmem:[%s744_s7 + $0x30] sm:$0xff] %v528_v56  }

// kernel: densenet_forward.21
= control target key start
LH: loop header
LB: loop body
LE: loop exit
PB: predicated region body
PF: predicated region fallthrough
CT: control target
= control target key end

     0   :  { %s367_s6 = smov 0   ;;  %s369_s7 = smov 0   ;;  %s415_s0 = inlined_call_operand.vmem [shape: bf16[4,32,16], index: 0, kind: input, shape index: {}]   ;;  %s416_s1 = inlined_call_operand.vmem [shape: bf16[32,16], index: 1, kind: output, shape index: {}]  }
   0x1   :  { %s371_s8 = smov 0  }
   0x2 LB: > { %s20_s9 = sadd.s32 1, %s350_s7  ;;  %p280_p0 = scmp.ge.s32.totalorder %s354_s8, 1  ;;  %s354_s8 = sphi %s371_s8, %s11_s8   ;;  %s350_s7 = sphi %s369_s7, %s418_s7   ;;  %s346_s6 = sphi %s367_s6, %s417_s6  }
   0x3   : > { %p21_p1 = scmp.ge.s32.totalorder %s20_s9, 4  ;;  %p106_p2 = scmp.lt.s32.totalorder %s354_s8, 5 }
   0x5   : > { %s420_s9 = smov (%p21_p1, %s20_s9), 0  ;;  %p107_p3 = pnand %p280_p0, %p106_p2 }
   0x6   : > { %p131_p4 = scmp.lt.s32.totalorder (!%p107_p3), %s346_s6, 3  ;;  %p283_p5 = scmp.ne.s32.totalorder (!%p107_p3), %s346_s6, 0 }
   0x7   : > { %110 = sbr.rel (%p107_p3) target bundleno = 41 (0x29), region = 24 }
   0xe   : > { %s132_s10 = scalar_select %p131_p4, %s346_s6, 3 }
   0xf   : > { %149 = sbr.rel (%p283_p5) target bundleno = 22 (0x16), region = 28  ;;  %vm150_vm0 = vcmask (!%p283_p5), 130048   ;;  %v356_v0 = vmov (!%p283_p5), 0.0  }
  0x10   : > { %s293_s11 = sshll.u32 %s132_s10, 4  ;;  %151 = vst.msk [vmem:[#allocation2] sm:$0xff] (!%p283_p5), %vm150_vm0, %v356_v0  ;;  %152 = vst.msk [vmem:[#allocation2 + $0x8] sm:$0xff] (!%p283_p5), %vm150_vm0, %v356_v0 }
  0x11   : > { %s138_s14 = scalar_lea.vmem %s415_s0, %s293_s11  ;;  %153 = vst.msk [vmem:[#allocation2 + $0x10] sm:$0xff] (!%p283_p5), %vm150_vm0, %v356_v0  ;;  %154 = vst.msk [vmem:[#allocation2 + $0x18] sm:$0xff] (!%p283_p5), %vm150_vm0, %v356_v0 }
  0x16 PF: > { %v299_v1 = vld [vmem:[%s138_s14] sm:$0xff]   ;;  %v306_v4 = vld [vmem:[%s138_s14 + $0x8] sm:$0xff]   ;;  %vm175_vm1 = vcmask 130048   ;;  %p284_p6 = scmp.ne.s32.totalorder %s346_s6, 3 }
  0x17   : > { %v300_v2 = vunpack.c.l.bf16 %v299_v1  ;;  %v301_v3 = vunpack.c.h.bf16 %v299_v1  ;;  %v155_v5 = vld [vmem:[#allocation2] sm:$0xff]  ;;  %v156_v6 = vld [vmem:[#allocation2 + $0x8] sm:$0xff]  ;;  %v304_v7 = vunpack.c.l.bf16 %v306_v4  ;;  %v305_v8 = vunpack.c.h.bf16 %v306_v4 }
  0x18   : > { %v157_v11 = vld [vmem:[#allocation2 + $0x10] sm:$0xff]  ;;  %v158_v12 = vld [vmem:[#allocation2 + $0x18] sm:$0xff]  ;;  %183 = sbr.rel (%p284_p6) target bundleno = 41 (0x29), region = 32  ;;  %vm204_vm2 = vcmask (!%p284_p6), 125952  }
  0x19   : > { %v167_v9 = vmul.f32 0.25, %v300_v2  ;;  %v168_v10 = vmul.f32 0.25, %v301_v3  ;;  %v169_v13 = vmul.f32 0.25, %v304_v7  ;;  %v170_v14 = vmul.f32 0.25, %v305_v8 }
  0x1b   : > { %v171_v15 = vadd.f32 %v167_v9, %v155_v5  ;;  %v172_v16 = vadd.f32 %v168_v10, %v156_v6  ;;  %v173_v17 = vadd.f32 %v169_v13, %v157_v11  ;;  %v174_v18 = vadd.f32 %v170_v14, %v158_v12 }
  0x1d   : > { %176 = vst.msk [vmem:[#allocation2] sm:$0xff] %vm175_vm1, %v171_v15  ;;  %177 = vst.msk [vmem:[#allocation2 + $0x8] sm:$0xff] %vm175_vm1, %v172_v16 }
  0x1e   : > { %178 = vst.msk [vmem:[#allocation2 + $0x10] sm:$0xff] %vm175_vm1, %v173_v17  ;;  %179 = vst.msk [vmem:[#allocation2 + $0x18] sm:$0xff] %vm175_vm1, %v174_v18 }
  0x24   : > { %v184_v19 = vld [vmem:[#allocation2] sm:$0xff]  ;;  %v185_v20 = vld [vmem:[#allocation2 + $0x8] sm:$0xff] }
  0x25   : > { %v186_v21 = vld [vmem:[#allocation2 + $0x10] sm:$0xff]  ;;  %v294_v22 = vpack.c.bf16 %v184_v19, %v184_v19  ;;  %v295_v23 = vpack.c.bf16 %v185_v20, %v185_v20  ;;  %v187_v25 = vld [vmem:[#allocation2 + $0x18] sm:$0xff] }
  0x26   : > { %v296_v24 = vpack.c.bf16 %v186_v21, %v186_v21  ;;  %v297_v26 = vpack.c.bf16 %v187_v25, %v187_v25 }
  0x27   : > { %205 = vst.msk [vmem:[%s416_s1] sm:$0xf] %vm204_vm2, %v294_v22  ;;  %206 = vst.msk [vmem:[%s416_s1 + $0x4] sm:$0xf] %vm204_vm2, %v295_v23 }
  0x28   : > { %207 = vst.msk [vmem:[%s416_s1 + $0x8] sm:$0xf] %vm204_vm2, %v296_v24  ;;  %208 = vst.msk [vmem:[%s416_s1 + $0xc] sm:$0xf] %vm204_vm2, %v297_v26 }
  0x29 PF: > { %s11_s8 = sadd.s32 1, %s354_s8   ;;  %s417_s6 = smov %s350_s7 }
  0x2a   : > { %p8_p7 = scmp.ge.s32.totalorder %s11_s8, 6   ;;  %s418_s7 = smov %s420_s9 }
  0x2c   :  { %10 = sbr.rel (!%p8_p7) target bundleno = 2 (0x2), region = 62 }

// kernel: densenet_forward.22
= control target key start
LH: loop header
LB: loop body
LE: loop exit
PB: predicated region body
PF: predicated region fallthrough
CT: control target
= control target key end

     0   :  { %s434_s1 = inlined_call_operand.vmem [shape: bf16[128,128], index: 1, kind: input, shape index: {}]   ;;  %s435_s0 = inlined_call_operand.vmem [shape: bf16[32,128], index: 0, kind: input, shape index: {}]   ;;  %s436_s3 = inlined_call_operand.vmem [shape: f32[1,128], index: 3, kind: input, shape index: {}]   ;;  %s437_s4 = inlined_call_operand.vmem [shape: f32[1,128], index: 4, kind: input, shape index: {}]   ;;  %s438_s2 = inlined_call_operand.vmem [shape: f32[1,128], index: 2, kind: input, shape index: {}]   ;;  %s439_s5 = inlined_call_operand.vmem [shape: f32[1,128], index: 5, kind: input, shape index: {}]   ;;  %s440_s6 = inlined_call_operand.vmem [shape: f32[1,128], index: 6, kind: input, shape index: {}]   ;;  %s441_s7 = inlined_call_operand.vmem [shape: bf16[32,128], index: 7, kind: output, shape index: {}]  }
   0x1   :  { %v335_v0 = vld [vmem:[%s434_s1] sm:$0xff]   ;;  %v336_v1 = vld [vmem:[%s434_s1 + $0x8] sm:$0xff]   ;;  %v337_v2 = vld [vmem:[%s434_s1 + $0x10] sm:$0xff]  }
   0x2   :  { %315 = vmatprep.subr.bf16.mxu0 %v335_v0  ;;  %v338_v3 = vld [vmem:[%s434_s1 + $0x18] sm:$0xff]   ;;  %v286_v4 = vld [vmem:[%s435_s0] sm:$0xff]   ;;  %v303_v9 = vld [vmem:[%s435_s0 + $0x8] sm:$0xff]  }
   0x3   :  { %316 = vmatpush3.bf16.msra.mxu0 %v335_v0  ;;  %v264_v5 = vld [vmem:[%s436_s3] ss:$0 sm:$0xff]  ;;  %v287_v6 = vunpack.c.l.bf16 %v286_v4  ;;  %v288_v7 = vunpack.c.h.bf16 %v286_v4  ;;  %v291_v15 = vunpack.c.l.bf16 %v303_v9  ;;  %v292_v16 = vunpack.c.h.bf16 %v303_v9  ;;  %v340_v19 = vld [vmem:[%s434_s1 + $0x28] sm:$0xff]   ;;  %v341_v23 = vld [vmem:[%s434_s1 + $0x30] sm:$0xff]  }
   0x4   :  { %317 = vmatprep.subr.bf16.mxu0 %v336_v1  ;;  %v265_v8 = vld [vmem:[%s437_s4] ss:$0 sm:$0xff]  ;;  %v342_v26 = vld [vmem:[%s434_s1 + $0x38] sm:$0xff]  }
   0x5   :  { %v50_v10 = vmul.f32 %v287_v6, %v264_v5  ;;  %v51_v11 = vmul.f32 %v288_v7, %v264_v5  ;;  %v339_v12 = vld [vmem:[%s434_s1 + $0x20] sm:$0xff]   ;;  %v52_v21 = vmul.f32 %v291_v15, %v264_v5  ;;  %v53_v22 = vmul.f32 %v292_v16, %v264_v5 }
   0x6   :  { %v274_v30 = vld [vmem:[%s438_s2] ss:$0 sm:$0xff] }
   0x7   :  { %318 = vmatpush3.bf16.msra.mxu0 %v336_v1  ;;  %v61_v13 = vadd.f32 %v265_v8, %v50_v10  ;;  %v62_v14 = vadd.f32 %v265_v8, %v51_v11  ;;  %v63_v24 = vadd.f32 %v265_v8, %v52_v21  ;;  %v64_v25 = vadd.f32 %v265_v8, %v53_v22  ;;  %v275_v32 = vld [vmem:[%s439_s5] ss:$0 sm:$0xff] }
   0x8   :  { %319 = vmatprep.subr.bf16.mxu0 %v337_v2  ;;  %v276_v35 = vld [vmem:[%s440_s6] ss:$0 sm:$0xff] }
   0x9   :  { %v65_v17 = vmax.f32 %v61_v13, 0.0  ;;  %v66_v18 = vmax.f32 %v62_v14, 0.0  ;;  %v67_v27 = vmax.f32 %v63_v24, 0.0  ;;  %v68_v28 = vmax.f32 %v64_v25, 0.0 }
   0xb   :  { %320 = vmatpush3.bf16.msra.mxu0 %v337_v2  ;;  %v69_v20 = vpack.c.bf16 %v66_v18, %v65_v17  ;;  %v70_v29 = vpack.c.bf16 %v68_v28, %v67_v27 }
   0xc   :  { %321 = vmatprep.subr.bf16.mxu0 %v338_v3 }
   0xd   :  { %331 = vmatprep.mubr.bf16.mxu0 %v69_v20 }
   0xf   :  { %322 = vmatpush3.bf16.msra.mxu0 %v338_v3 }
  0x10   :  { %323 = vmatprep.subr.bf16.mxu0 %v339_v12 }
  0x13   :  { %324 = vmatpush3.bf16.msra.mxu0 %v339_v12 }
  0x14   :  { %325 = vmatprep.subr.bf16.mxu0 %v340_v19 }
  0x17   :  { %326 = vmatpush3.bf16.msra.mxu0 %v340_v19 }
  0x18   :  { %327 = vmatprep.subr.bf16.mxu0 %v341_v23 }
  0x1b   :  { %328 = vmatpush3.bf16.msra.mxu0 %v341_v23 }
  0x1c   :  { %329 = vmatprep.subr.bf16.mxu0 %v342_v26 }
  0x1f   :  { %330 = vmatpush3.bf16.msra.mxu0 %v342_v26 }
  0x22   :  { %332 = vmatmul.mubr.bf16.vlgmr.msra.gmra.mrb[0].mxu0 %v70_v29 }
  0xf5   :  { %v333_v31 = vpop.f32.mrb[0].mxu0 }
  0xf6   :  { %v212_v33 = vadd.f32 %v333_v31, %v274_v30  ;;  %v173_v34 = vpop.f32.mrb[1].mxu0 }
  0xf7   :  { %v210_v36 = vadd.f32 %v274_v30, %v173_v34  ;;  %v334_v37 = vpop.f32.mrb[2].mxu0 }
  0xf8   :  { %v223_v38 = vmul.f32 %v275_v32, %v212_v33  ;;  %v213_v39 = vadd.f32 %v334_v37, %v274_v30  ;;  %v176_v40 = vpop.f32.mrb[3].mxu0 }
  0xf9   :  { %v221_v41 = vmul.f32 %v275_v32, %v210_v36  ;;  %v211_v42 = vadd.f32 %v274_v30, %v176_v40 }
  0xfa   :  { %v234_v43 = vadd.f32 %v276_v35, %v223_v38  ;;  %v224_v44 = vmul.f32 %v275_v32, %v213_v39 }
  0xfb   :  { %v232_v45 = vadd.f32 %v276_v35, %v221_v41  ;;  %v222_v46 = vmul.f32 %v275_v32, %v211_v42 }
  0xfc   :  { %v235_v47 = vadd.f32 %v276_v35, %v224_v44  ;;  %v238_v49 = vmax.f32 %v234_v43, 0.0 }
  0xfd   :  { %v233_v48 = vadd.f32 %v276_v35, %v222_v46  ;;  %v236_v51 = vmax.f32 %v232_v45, 0.0 }
  0xfe   :  { %v239_v50 = vmax.f32 %v235_v47, 0.0 }
  0xff   :  { %v237_v52 = vmax.f32 %v233_v48, 0.0 }
 0x100   :  { %v301_v53 = vpack.c.bf16 %v239_v50, %v238_v49 }
 0x101   :  { %v296_v54 = vpack.c.bf16 %v237_v52, %v236_v51 }
 0x102   :  { %304 = vst [vmem:[%s441_s7 + $0x8] sm:$0xff] %v301_v53  }
 0x103   :  { %297 = vst [vmem:[%s441_s7] sm:$0xff] %v296_v54  }

// kernel: densenet_forward.23
= control target key start
LH: loop header
LB: loop body
LE: loop exit
PB: predicated region body
PF: predicated region fallthrough
CT: control target
= control target key end

     0   :  { %s505_s1 = inlined_call_operand.vmem [shape: bf16[256,128], index: 1, kind: input, shape index: {}]   ;;  %s506_s3 = inlined_call_operand.vmem [shape: f32[1,256], index: 3, kind: input, shape index: {}, may-alias: {3,4}]   ;;  %s507_s4 = inlined_call_operand.vmem [shape: f32[1,256], index: 4, kind: input, shape index: {}, may-alias: {3,4}]   ;;  %s508_s5 = inlined_call_operand.vmem [shape: f32[1,128], index: 5, kind: input, shape index: {}, may-alias: {5,6}]   ;;  %s509_s6 = inlined_call_operand.vmem [shape: f32[1,128], index: 6, kind: input, shape index: {}, may-alias: {5,6}]   ;;  %s510_s0 = inlined_call_operand.vmem [shape: bf16[32,256], index: 0, kind: input, shape index: {}]   ;;  %s511_s2 = inlined_call_operand.vmem [shape: f32[1,128], index: 2, kind: input, shape index: {}]   ;;  %s512_s7 = inlined_call_operand.vmem [shape: bf16[32,128], index: 7, kind: output, shape index: {}]  }
   0x1   :  { %v374_v0 = vld [vmem:[%s505_s1 + $0x40] sm:$0xff]   ;;  %v376_v2 = vld [vmem:[%s505_s1 + $0x48] sm:$0xff]   ;;  %v378_v4 = vld [vmem:[%s505_s1 + $0x50] sm:$0xff]  }
   0x2   :  { %v375_v1 = vld [vmem:[%s505_s1] sm:$0xff]   ;;  %330 = vmatprep.subr.bf16.mxu0 %v374_v0  ;;  %358 = vmatprep.subr.bf16.mxu1 %v374_v0  ;;  %v377_v3 = vld [vmem:[%s505_s1 + $0x8] sm:$0xff]   ;;  %v379_v5 = vld [vmem:[%s505_s1 + $0x10] sm:$0xff]  }
   0x3   :  { %331 = vmatpush3.bf16.msra.mxu0 %v375_v1  ;;  %366 = vmatpush3.bf16.msra.mxu1 %v375_v1  ;;  %v380_v6 = vld [vmem:[%s505_s1 + $0x58] sm:$0xff]   ;;  %v382_v8 = vld [vmem:[%s505_s1 + $0x60] sm:$0xff]   ;;  %v384_v10 = vld [vmem:[%s505_s1 + $0x68] sm:$0xff]  }
   0x4   :  { %332 = vmatprep.subr.bf16.mxu0 %v376_v2  ;;  %359 = vmatprep.subr.bf16.mxu1 %v376_v2  ;;  %v381_v7 = vld [vmem:[%s505_s1 + $0x18] sm:$0xff]   ;;  %v383_v9 = vld [vmem:[%s505_s1 + $0x20] sm:$0xff]   ;;  %v385_v13 = vld [vmem:[%s505_s1 + $0x28] sm:$0xff]  }
   0x5   :  { %v392_v11 = vld [vmem:[%s510_s0 + $0x4] ss:$8 sps:$4 sm:$0xff]   ;;  %v395_v12 = vld [vmem:[%s510_s0 + $0x14] ss:$8 sps:$4 sm:$0xff]   ;;  %v390_v18 = vld [vmem:[%s510_s0] ss:$8 sps:$4 sm:$0xff]  }
   0x6   :  { %v386_v14 = vld [vmem:[%s505_s1 + $0x70] sm:$0xff]   ;;  %223 = vmatprep.mubr.bf16.mxu0 %v392_v11  ;;  %231 = vmatprep.mubr.bf16.mxu1 %v395_v12  ;;  %v388_v16 = vld [vmem:[%s505_s1 + $0x78] sm:$0xff]   ;;  %v310_v28 = vld [vmem:[%s511_s2] ss:$0 sm:$0xff] }
   0x7   :  { %333 = vmatpush3.bf16.msra.mxu0 %v377_v3  ;;  %367 = vmatpush3.bf16.msra.mxu1 %v377_v3  ;;  %v387_v15 = vld [vmem:[%s505_s1 + $0x30] sm:$0xff]   ;;  %v389_v17 = vld [vmem:[%s505_s1 + $0x38] sm:$0xff]  }
   0x8   :  { %334 = vmatprep.subr.bf16.mxu0 %v378_v4  ;;  %360 = vmatprep.subr.bf16.mxu1 %v378_v4  ;;  %v393_v19 = vld [vmem:[%s510_s0 + $0x10] ss:$8 sps:$4 sm:$0xff]  }
   0xb   :  { %335 = vmatpush3.bf16.msra.mxu0 %v379_v5  ;;  %368 = vmatpush3.bf16.msra.mxu1 %v379_v5 }
   0xc   :  { %336 = vmatprep.subr.bf16.mxu0 %v380_v6  ;;  %361 = vmatprep.subr.bf16.mxu1 %v380_v6 }
   0xf   :  { %337 = vmatpush3.bf16.msra.mxu0 %v381_v7  ;;  %369 = vmatpush3.bf16.msra.mxu1 %v381_v7 }
  0x10   :  { %338 = vmatprep.subr.bf16.mxu0 %v382_v8  ;;  %362 = vmatprep.subr.bf16.mxu1 %v382_v8 }
  0x13   :  { %339 = vmatpush3.bf16.msra.mxu0 %v383_v9  ;;  %370 = vmatpush3.bf16.msra.mxu1 %v383_v9 }
  0x14   :  { %340 = vmatprep.subr.bf16.mxu0 %v384_v10  ;;  %363 = vmatprep.subr.bf16.mxu1 %v384_v10 }
  0x17   :  { %341 = vmatpush3.bf16.msra.mxu0 %v385_v13  ;;  %371 = vmatpush3.bf16.msra.mxu1 %v385_v13 }
  0x18   :  { %342 = vmatprep.subr.bf16.mxu0 %v386_v14  ;;  %364 = vmatprep.subr.bf16.mxu1 %v386_v14 }
  0x1b   :  { %343 = vmatpush3.bf16.msra.mxu0 %v387_v15  ;;  %372 = vmatpush3.bf16.msra.mxu1 %v387_v15 }
  0x1c   :  { %344 = vmatprep.subr.bf16.mxu0 %v388_v16  ;;  %365 = vmatprep.subr.bf16.mxu1 %v388_v16 }
  0x1f   :  { %345 = vmatpush3.bf16.msra.mxu0 %v389_v17  ;;  %373 = vmatpush3.bf16.msra.mxu1 %v389_v17 }
  0x22   :  { %224 = vmatmul.mubr.bf16.vlgmr.msra.gmra.mrb[0].mxu0 %v390_v18  ;;  %232 = vmatmul.mubr.bf16.vlgmr.msra.gmra.mrb[0].mxu1 %v393_v19 }
  0xf5   :  { %v346_v20 = vpop.f32.mrb[0].mxu0  ;;  %v352_v21 = vpop.f32.mrb[0].mxu1 }
  0xf6   :  { %v347_v22 = vpop.f32.mrb[1].mxu0  ;;  %v353_v23 = vpop.f32.mrb[1].mxu1 }
  0xf7   :  { %v348_v24 = vadd.f32 %v347_v22, %v346_v20  ;;  %v354_v25 = vadd.f32 %v353_v23, %v352_v21  ;;  %v349_v26 = vpop.f32.mrb[2].mxu0  ;;  %v355_v27 = vpop.f32.mrb[2].mxu1 }
  0xf8   :  { %v350_v29 = vpop.f32.mrb[3].mxu0  ;;  %v356_v30 = vpop.f32.mrb[3].mxu1 }
  0xf9   :  { %v351_v31 = vadd.f32 %v350_v29, %v349_v26  ;;  %v357_v32 = vadd.f32 %v356_v30, %v355_v27  ;;  %v262_v33 = vadd.f32 %v348_v24, %v310_v28  ;;  %v264_v34 = vadd.f32 %v354_v25, %v310_v28 }
  0xfb   :  { %v263_v35 = vadd.f32 %v351_v31, %v310_v28  ;;  %v265_v36 = vadd.f32 %v357_v32, %v310_v28 }
  0xfd   :  { %v322_v37 = vpack.c.bf16 %v263_v35, %v262_v33  ;;  %v327_v38 = vpack.c.bf16 %v265_v36, %v264_v34 }
  0xff   :  { %323 = vst [vmem:[%s512_s7] sm:$0xff] %v322_v37   ;;  %329 = vst [vmem:[%s512_s7 + $0x8] sm:$0xff] %v327_v38  }

// kernel: densenet_forward.26
= control target key start
LH: loop header
LB: loop body
LE: loop exit
PB: predicated region body
PF: predicated region fallthrough
CT: control target
= control target key end

     0   :  { %vm48_vm0 = vcmask 195584   ;;  %vm72_vm1 = vcmask 1041409   ;;  %vm75_vm2 = vcmask 189440   ;;  %s127_s0 = inlined_call_operand.vmem [shape: bf16[2,16,24], index: 0, kind: input, shape index: {}]   ;;  %s128_s1 = inlined_call_operand.vmem [shape: f32[1,1,24], index: 1, kind: input, shape index: {}]   ;;  %s129_s2 = inlined_call_operand.vmem [shape: f32[1,1,24], index: 2, kind: input, shape index: {}]   ;;  %s130_s3 = inlined_call_operand.vmem [shape: f32[2,24], index: 3, kind: output, shape index: {}]  }
   0x1   :  { %v84_v0 = vld [vmem:[%s127_s0] sm:$0xff]   ;;  %v91_v1 = vld [vmem:[%s127_s0 + $0x8] sm:$0xff]  }
   0x2   :  { %v81_v2 = vld [vmem:[%s128_s1] ss:$0 sm:$0xff]  ;;  %v85_v3 = vunpack.c.l.bf16 %v84_v0  ;;  %v86_v4 = vunpack.c.h.bf16 %v84_v0  ;;  %v89_v5 = vunpack.c.l.bf16 %v91_v1  ;;  %v90_v6 = vunpack.c.h.bf16 %v91_v1 }
   0x3   :  { %v82_v7 = vld [vmem:[%s129_s2] ss:$0 sm:$0xff] }
   0x4   :  { %v29_v8 = vmul.f32 %v85_v3, %v81_v2  ;;  %v30_v9 = vmul.f32 %v86_v4, %v81_v2  ;;  %v31_v10 = vmul.f32 %v89_v5, %v81_v2  ;;  %v32_v11 = vmul.f32 %v90_v6, %v81_v2 }
   0x6   :  { %v40_v12 = vadd.f32 %v82_v7, %v29_v8  ;;  %v41_v13 = vadd.f32 %v82_v7, %v30_v9  ;;  %v42_v14 = vadd.f32 %v82_v7, %v31_v10  ;;  %v43_v15 = vadd.f32 %v82_v7, %v32_v11 }
   0x8   :  { %v44_v16 = vmax.f32 %v40_v12, 0.0  ;;  %v45_v17 = vmax.f32 %v41_v13, 0.0  ;;  %v46_v18 = vmax.f32 %v42_v14, 0.0  ;;  %v47_v19 = vmax.f32 %v43_v15, 0.0 }
   0xa   :  { %v49_v20 = vsel %vm48_vm0, %v44_v16, 0.0  ;;  %v50_v21 = vsel %vm48_vm0, %v45_v17, 0.0  ;;  %v58_v22 = vsel %vm48_vm0, %v46_v18, 0.0  ;;  %v59_v23 = vsel %vm48_vm0, %v47_v19, 0.0 }
   0xb   :  { %v51_v24 = vadd.f32 %v50_v21, %v49_v20  ;;  %v60_v25 = vadd.f32 %v59_v23, %v58_v22 }
   0xd   :  { %v52_v26 = vrot.slane %v51_v24, 4  ;;  %v61_v27 = vrot.slane %v60_v25, 4 }
   0xf   :  { %v53_v28 = vadd.f32 %v52_v26, %v51_v24  ;;  %v62_v29 = vadd.f32 %v61_v27, %v60_v25 }
  0x11   :  { %v54_v30 = vrot.slane %v53_v28, 2  ;;  %v63_v31 = vrot.slane %v62_v29, 2 }
  0x13   :  { %v55_v32 = vadd.f32 %v54_v30, %v53_v28  ;;  %v64_v33 = vadd.f32 %v63_v31, %v62_v29 }
  0x15   :  { %v56_v34 = vrot.slane %v55_v32, 1  ;;  %v65_v35 = vrot.slane %v64_v33, 1 }
  0x17   :  { %v57_v36 = vadd.f32 %v56_v34, %v55_v32  ;;  %v66_v37 = vadd.f32 %v65_v35, %v64_v33 }
  0x19   :  { %v68_v38 = vmul.f32 0.0625, %v57_v36  ;;  %v69_v39 = vmul.f32 0.0625, %v66_v37 }
  0x1b   :  { %v73_v40 = vsel %vm72_vm1, %v69_v39, %v68_v38 }
  0x1c   :  { %76 = vst.msk [vmem:[%s130_s3] sm:$0x3] %vm75_vm2, %v73_v40 }

// kernel: densenet_forward.27
= control target key start
LH: loop header
LB: loop body
LE: loop exit
PB: predicated region body
PF: predicated region fallthrough
CT: control target
= control target key end

     0   :  { %v222_v0 = vmov 0.0   ;;  %vm223_vm0 = vmmov 0   ;;  %s300_s3 = inlined_call_operand.vmem [shape: f32[1,128], index: 3, kind: input, shape index: {}, may-alias: {3,4,5,6}]   ;;  %s301_s4 = inlined_call_operand.vmem [shape: f32[1,128], index: 4, kind: input, shape index: {}, may-alias: {3,4,5,6}]   ;;  %s302_s5 = inlined_call_operand.vmem [shape: f32[1,128], index: 5, kind: input, shape index: {}, may-alias: {3,4,5,6}]   ;;  %s303_s6 = inlined_call_operand.vmem [shape: f32[1,128], index: 6, kind: input, shape index: {}, may-alias: {3,4,5,6}]   ;;  %s304_s1 = inlined_call_operand.vmem [shape: bf16[128,128], index: 1, kind: input, shape index: {}]   ;;  %s305_s0 = inlined_call_operand.vmem [shape: bf16[16,128], index: 0, kind: input, shape index: {}]   ;;  %s306_s2 = inlined_call_operand.vmem [shape: f32[1,128], index: 2, kind: input, shape index: {}]   ;;  %s307_s7 = inlined_call_operand.vmem [shape: f32[16,128], index: 7, kind: output, shape index: {}]  }
   0x1   :  { %191 = vmatprep.subr.bf16.mxu0 %v222_v0  ;;  %v213_v1 = vld [vmem:[%s304_s1] sm:$0xff]   ;;  %207 = vmatprep.mubr.msk.bf16.mxu0 %vm223_vm0, %v222_v0  ;;  %v214_v2 = vld [vmem:[%s304_s1 + $0x8] sm:$0xff]   ;;  %v215_v3 = vld [vmem:[%s304_s1 + $0x10] sm:$0xff]  }
   0x2   :  { %192 = vmatpush3.bf16.msra.mxu0 %v213_v1  ;;  %v216_v4 = vld [vmem:[%s304_s1 + $0x18] sm:$0xff]   ;;  %v217_v5 = vld [vmem:[%s304_s1 + $0x20] sm:$0xff]   ;;  %v218_v6 = vld [vmem:[%s304_s1 + $0x28] sm:$0xff]  }
   0x3   :  { %193 = vmatprep.subr.bf16.mxu0 %v222_v0  ;;  %v219_v7 = vld [vmem:[%s304_s1 + $0x30] sm:$0xff]   ;;  %v220_v8 = vld [vmem:[%s304_s1 + $0x38] sm:$0xff]   ;;  %v221_v9 = vld [vmem:[%s305_s0] sm:$0xff]  }
   0x4   :  { %v181_v10 = vld [vmem:[%s306_s2] ss:$0 sm:$0xff] }
   0x6   :  { %194 = vmatpush3.bf16.msra.mxu0 %v214_v2 }
   0x7   :  { %195 = vmatprep.subr.bf16.mxu0 %v222_v0 }
   0xa   :  { %196 = vmatpush3.bf16.msra.mxu0 %v215_v3 }
   0xb   :  { %197 = vmatprep.subr.bf16.mxu0 %v222_v0 }
   0xe   :  { %198 = vmatpush3.bf16.msra.mxu0 %v216_v4 }
   0xf   :  { %199 = vmatprep.subr.bf16.mxu0 %v222_v0 }
  0x12   :  { %200 = vmatpush3.bf16.msra.mxu0 %v217_v5 }
  0x13   :  { %201 = vmatprep.subr.bf16.mxu0 %v222_v0 }
  0x16   :  { %202 = vmatpush3.bf16.msra.mxu0 %v218_v6 }
  0x17   :  { %203 = vmatprep.subr.bf16.mxu0 %v222_v0 }
  0x1a   :  { %204 = vmatpush3.bf16.msra.mxu0 %v219_v7 }
  0x1b   :  { %205 = vmatprep.subr.bf16.mxu0 %v222_v0 }
  0x1e   :  { %206 = vmatpush3.bf16.msra.mxu0 %v220_v8 }
  0x21   :  { %208 = vmatmul.mubr.bf16.vlgmr.msra.gmra.mrb[0].mxu0 %v221_v9 }
  0xf4   :  { %v141_v11 = vpop.f32.mrb[0].mxu0 }
  0xf5   :  { %v164_v12 = vadd.f32 %v181_v10, %v141_v11  ;;  %v209_v13 = vpop.f32.mrb[1].mxu0 }
  0xf6   :  { %v144_v14 = vpop.f32.mrb[2].mxu0 }
  0xf7   :  { %166 = vst [vmem:[%s307_s7] sm:$0xff] %v164_v12  ;;  %v165_v15 = vadd.f32 %v181_v10, %v144_v14  ;;  %v210_v16 = vpop.f32.mrb[3].mxu0 }
  0xf9   :  { %167 = vst [vmem:[%s307_s7 + $0x8] sm:$0xff] %v165_v15 }

</bundles_post_ra>
